<compile_context>
chip_gen: v7x
topology: tpu7x:2x2x1
jax: 0.10.0
libtpu: 0.0.40
codegen_flags: <defaults>
</compile_context>

<pallas_src>
import functools

import jax
import jax.numpy as jnp
from jax import lax
from jax.experimental import pallas as pl
from jax.experimental.pallas import tpu as pltpu


# ----------------------------------------------------------------------------
# Weight packing (plain JAX, done once in the wrapper)
# ----------------------------------------------------------------------------
# PyTorch gate order within a 4H weight is [i, f, g, o]; we pack as [i, f, o, g]
# so the three sigmoid gates are contiguous (one wide sigmoid per step).
_GATE_ORDER = (0, 1, 3, 2)


def _gate_major_cols(w_f, w_r, H):
    """Interleave gate columns of two (rows, 4H) mats -> (rows, 8H):
    [i_f i_r f_f f_r o_f o_r g_f g_r]."""
    cols = []
    for g in _GATE_ORDER:
        cols.append(w_f[:, g * H:(g + 1) * H])
        cols.append(w_r[:, g * H:(g + 1) * H])
    return jnp.concatenate(cols, axis=1)


def pack_params(p, H):
    """Pack per-direction LSTM weights into fused, gate-major matrices.

    For each layer the fused recurrence at step i is
        gx[i]  = [inp(i) | inp(T-1-i)] @ W_in + b      (ONE hoisted matmul)
        gates  = gx[i] + [h_f | h_r] @ W_hh_blk        (per-step matmul)
    with the reverse direction advancing from time T-1 downwards.
    Matmul-path weights are stored in bf16 (accumulation stays f32).
    """
    bf16 = jnp.bfloat16
    D = p['w_ih_f0'].shape[0]
    zD = jnp.zeros((D, 4 * H), jnp.float32)
    zH = jnp.zeros((H, 4 * H), jnp.float32)

    # ---- layer 0: paired input is [x(t) | x(T-1-t)], width 2D ----
    w0 = _gate_major_cols(
        jnp.concatenate([p['w_ih_f0'], zD], axis=0),     # rows 0:D  -> fwd gates
        jnp.concatenate([zD, p['w_ih_r0']], axis=0), H)  # rows D:2D -> rev gates
    b0 = _gate_major_cols(p['b_f0'], p['b_r0'], H)
    whh0 = _gate_major_cols(
        jnp.concatenate([p['w_hh_f0'], zH], axis=0),
        jnp.concatenate([zH, p['w_hh_r0']], axis=0), H)

    # ---- layer 1: paired input is
    #      [h0_f(t) | h0_r(T-1-t) | h0_f(T-1-t) | h0_r(t)], width 4H ----
    f1, r1 = p['w_ih_f1'], p['w_ih_r1']
    fwd_rows = jnp.concatenate([f1[:H], zH, zH, f1[H:]], axis=0)      # (4H, 4H)
    rev_rows = jnp.concatenate([zH, r1[H:], r1[:H], zH], axis=0)      # (4H, 4H)
    w1 = _gate_major_cols(fwd_rows, rev_rows, H)
    b1 = _gate_major_cols(p['b_f1'], p['b_r1'], H)
    whh1 = _gate_major_cols(
        jnp.concatenate([p['w_hh_f1'], zH], axis=0),
        jnp.concatenate([zH, p['w_hh_r1']], axis=0), H)

    return dict(w0=w0.astype(bf16), b0=b0, whh0=whh0.astype(bf16),
                w1=w1.astype(bf16), b1=b1, whh1=whh1.astype(bf16))


# ----------------------------------------------------------------------------
# Pallas kernel
# ----------------------------------------------------------------------------
def realistic_lstm_kernel(
    # inputs
    xp_ref,                                   # (T, Bt, 2D) paired layer-0 input
    w0_ref, b0_ref, whh0_ref,
    w1_ref, b1_ref, whh1_ref,
    attn_w_ref, attn_b_ref,
    head_w1_ref, head_b1_ref, head_w2_ref, head_b2_ref,
    # output
    o_ref,
    *, hidden_dim, seq_len,
):
    H = hidden_dim
    T = seq_len
    B = xp_ref.shape[1]                       # batch tile (8 -> full sublanes)
    H2 = 2 * H
    G = 8 * H
    bf16 = jnp.bfloat16

    def fused_bilstm(zt, w_in, b, whh):
        """Fused bidirectional LSTM layer.

        zt: (T, B, Din2) f32, paired input [inp(t) | inp(T-1-t)].
        Returns list hs, hs[i] = [h_fwd(time i) | h_rev(time T-1-i)], (B, 2H) f32.
        """
        din2 = zt.shape[-1]
        # ONE hoisted input projection for all timesteps & both directions,
        # biases folded in.  bf16 operands, f32 accumulate.
        flat = zt.reshape(T * B, din2).astype(bf16)
        gx_all = (jnp.dot(flat, w_in, preferred_element_type=jnp.float32)
                  + b).reshape(T, B, G)

        h = jnp.zeros((B, H2), jnp.float32)
        c = jnp.zeros((B, H2), jnp.float32)
        hs = []
        # Fully unrolled time loop (T=8, static indices, states live in vregs).
        # TODO(synk): if T >= 16 or B tile >= 32 this flips to spill-bound;
        # switch gx/hs to VMEM scratch + lax.fori_loop(..., unroll=2).
        for i in range(T):
            gates = gx_all[i] + jnp.dot(h.astype(bf16), whh,
                                        preferred_element_type=jnp.float32)
            # packed gate order: [i | f | o | g], each 2H = [fwd|rev].
            sig = jax.nn.sigmoid(gates[:, :3 * H2])        # one wide launch
            i_g = sig[:, 0 * H2:1 * H2]
            f_g = sig[:, 1 * H2:2 * H2]
            o_g = sig[:, 2 * H2:3 * H2]
            g_g = jnp.tanh(gates[:, 3 * H2:4 * H2])
            c = f_g * c + i_g * g_g
            h = o_g * jnp.tanh(c)
            hs.append(h)
        return hs

    # ---- LSTM layer 0 (fused bidirectional) ----
    hs0 = fused_bilstm(xp_ref[...].astype(jnp.float32),
                       w0_ref[...], b0_ref[...], whh0_ref[...])

    # ---- LSTM layer 1: paired input [hs0[i] | hs0[T-1-i]] (4H = 128 lanes) ----
    z1 = jnp.stack(
        [jnp.concatenate([hs0[i], hs0[T - 1 - i]], axis=-1) for i in range(T)],
        axis=0)                                             # (T, B, 4H)
    hs1 = fused_bilstm(z1, w1_ref[...], b1_ref[...], whh1_ref[...])

    # ---- temporal attention (un-flip of the reverse half folded in) ----
    # hs1[i] = [h1_f(i) | h1_r(T-1-i)]; natural output out1(t) = [h1_f(t)|h1_r(t)].
    attn_w = attn_w_ref[...]                                 # (1, 2H)
    attn_b = attn_b_ref[...]                                 # (1, 1)
    lane = lax.broadcasted_iota(jnp.int32, (1, H2), 1)
    aw_f = jnp.where(lane < H, attn_w, 0.0)                  # fwd-lane weights
    aw_r = jnp.where(lane >= H, attn_w, 0.0)                 # rev-lane weights
    sA = [jnp.sum(hs1[i] * aw_f, axis=-1, keepdims=True) for i in range(T)]
    sB = [jnp.sum(hs1[i] * aw_r, axis=-1, keepdims=True) for i in range(T)]
    scores = [sA[t] + sB[T - 1 - t] + attn_b for t in range(T)]   # (B, 1) each

    m = scores[0]
    for t in range(1, T):
        m = jnp.maximum(m, scores[t])
    e = [jnp.exp(scores[t] - m) for t in range(T)]
    denom = e[0]
    for t in range(1, T):
        denom = denom + e[t]
    inv = pl.reciprocal(denom, approx=True)                  # EUP divide
    w_t = [e[t] * inv for t in range(T)]                     # softmax over time

    # context = sum_t out1(t) * w(t); in fused layout hs1[i] is weighted by
    # w(i) on fwd lanes and w(T-1-i) on rev lanes.
    rev_mask = lane >= H                                     # (1, 2H)
    context = jnp.zeros((B, H2), jnp.float32)
    for i in range(T):
        wi = jnp.where(rev_mask, w_t[T - 1 - i], w_t[i])     # (B, 2H)
        context = context + hs1[i] * wi

    # dropout is identity at inference time.

    # ---- MLP head: Linear(2H, H) -> ReLU -> Linear(H, O) (f32, tiny) ----
    h1 = jnp.maximum(
        jnp.dot(context, head_w1_ref[...],
                preferred_element_type=jnp.float32) + head_b1_ref[...], 0.0)
    o_ref[...] = (jnp.dot(h1, head_w2_ref[...],
                          preferred_element_type=jnp.float32)
                  + head_b2_ref[...])                        # (B, O)


# ----------------------------------------------------------------------------
# Wrapper
# ----------------------------------------------------------------------------
def realistic_lstm_forward(x, params, hidden_dim=32, output_dim=1):
    """x: (B, T, D) batch-first (as in PyTorch).  Returns (B, output_dim)."""
    B, T, D = x.shape
    H = hidden_dim
    BT = 8                                   # batch tile: full sublane occupancy
    B_pad = ((B + BT - 1) // BT) * BT

    x_tm = jnp.transpose(x, (1, 0, 2)).astype(jnp.float32)       # (T, B, D)
    if B_pad != B:
        x_tm = jnp.concatenate(
            [x_tm, jnp.zeros((T, B_pad - B, D), jnp.float32)], axis=1)
    # Paired layer-0 input [x(t) | x(T-1-t)] for the merged projection matmul.
    x_pair = jnp.concatenate([x_tm, x_tm[::-1]], axis=-1)        # (T, B_pad, 2D)

    pk = pack_params(params, H)
    args = [
        x_pair,
        pk['w0'], pk['b0'], pk['whh0'],
        pk['w1'], pk['b1'], pk['whh1'],
        params['attn_w'], params['attn_b'],
        params['head_w1'], params['head_b1'],
        params['head_w2'], params['head_b2'],
    ]

    def full_spec(shape):
        return pl.BlockSpec(shape, lambda i: (0,) * len(shape))

    in_specs = [pl.BlockSpec((T, BT, 2 * D), lambda i: (0, i, 0))]
    in_specs += [full_spec(a.shape) for a in args[1:]]

    kernel = functools.partial(realistic_lstm_kernel, hidden_dim=H, seq_len=T)

    out = pl.pallas_call(
        kernel,
        out_shape=jax.ShapeDtypeStruct((B_pad, output_dim), jnp.float32),
        grid=(B_pad // BT,),
        in_specs=in_specs,
        out_specs=pl.BlockSpec((BT, output_dim), lambda i: (i, 0)),
        compiler_params=pltpu.CompilerParams(
            dimension_semantics=("parallel",)),
    )(*args)
    return out[:B]


# ----------------------------------------------------------------------------
# Deterministic parameter init (uniform(-1/sqrt(H), 1/sqrt(H)), PyTorch-style)
# ----------------------------------------------------------------------------
def init_params(key, input_dim, hidden_dim=32, output_dim=1):
    D, H, O = input_dim, hidden_dim, output_dim
    bound = 1.0 / (H ** 0.5)
    names_shapes = [
        ('w_ih_f0', (D, 4 * H)), ('w_hh_f0', (H, 4 * H)), ('b_f0', (1, 4 * H)),
        ('w_ih_r0', (D, 4 * H)), ('w_hh_r0', (H, 4 * H)), ('b_r0', (1, 4 * H)),
        ('w_ih_f1', (2 * H, 4 * H)), ('w_hh_f1', (H, 4 * H)), ('b_f1', (1, 4 * H)),
        ('w_ih_r1', (2 * H, 4 * H)), ('w_hh_r1', (H, 4 * H)), ('b_r1', (1, 4 * H)),
        ('attn_w', (1, 2 * H)), ('attn_b', (1, 1)),
        ('head_w1', (2 * H, H)), ('head_b1', (1, H)),
        ('head_w2', (H, O)), ('head_b2', (1, O)),
    ]
    keys = jax.random.split(key, len(names_shapes))
    return {n: jax.random.uniform(k, s, jnp.float32, -bound, bound)
            for (n, s), k in zip(names_shapes, keys)}


# ----------------------------------------------------------------------------
# Pure-JAX reference (for correctness check only; uses unpacked params)
# ----------------------------------------------------------------------------
def _ref_lstm_dir(x_tm, w_ih, w_hh, b, reverse):
    T, B, _ = x_tm.shape
    H = w_hh.shape[0]
    xs = x_tm[::-1] if reverse else x_tm

    def step(carry, x_t):
        h, c = carry
        gates = x_t @ w_ih + h @ w_hh + b
        i = jax.nn.sigmoid(gates[:, :H])
        f = jax.nn.sigmoid(gates[:, H:2 * H])
        g = jnp.tanh(gates[:, 2 * H:3 * H])
        o = jax.nn.sigmoid(gates[:, 3 * H:])
        c = f * c + i * g
        h = o * jnp.tanh(c)
        return (h, c), h

    _, hs = lax.scan(step, (jnp.zeros((B, H)), jnp.zeros((B, H))), xs)
    return hs[::-1] if reverse else hs


def reference_forward(x, p, hidden_dim=32, output_dim=1):
    x_tm = jnp.transpose(x, (1, 0, 2))
    f0 = _ref_lstm_dir(x_tm, p['w_ih_f0'], p['w_hh_f0'], p['b_f0'], False)
    r0 = _ref_lstm_dir(x_tm, p['w_ih_r0'], p['w_hh_r0'], p['b_r0'], True)
    out0 = jnp.concatenate([f0, r0], axis=-1)
    f1 = _ref_lstm_dir(out0, p['w_ih_f1'], p['w_hh_f1'], p['b_f1'], False)
    r1 = _ref_lstm_dir(out0, p['w_ih_r1'], p['w_hh_r1'], p['b_r1'], True)
    out1 = jnp.concatenate([f1, r1], axis=-1)                      # (T, B, 2H)
    scores = jnp.sum(out1 * p['attn_w'], axis=-1) + p['attn_b'][0, 0]  # (T, B)
    w = jax.nn.softmax(scores, axis=0)
    context = jnp.sum(out1 * w[:, :, None], axis=0)                # (B, 2H)
    h1 = jnp.maximum(context @ p['head_w1'] + p['head_b1'], 0.0)
    return h1 @ p['head_w2'] + p['head_b2']


# ----------------------------------------------------------------------------
if __name__ == "__main__":
    B, T, D, H, O = 2, 8, 4, 32, 1

    key = jax.random.PRNGKey(0)
    kx, kp = jax.random.split(key)
    x = jax.random.normal(kx, (B, T, D), jnp.float32)
    params = init_params(kp, D, H, O)

    out = realistic_lstm_forward(x, params, hidden_dim=H, output_dim=O)
    out = jax.block_until_ready(out)
    assert out.shape == (B, O)

    ref = jax.block_until_ready(reference_forward(x, params, H, O))
    max_diff = float(jnp.max(jnp.abs(out - ref)))
    assert max_diff < 2e-2, f"kernel/reference mismatch: {max_diff}"

    print("KERNEL_OK")
</pallas_src>

<mosaic_0001>
module attributes {stable_mosaic.version = 11 : i64} {
  func.func @realistic_lstm_kernel(%arg0: i32, %arg1: memref<8x8x8xf32, #tpu.memory_space<vmem>>, %arg2: memref<8x256xbf16, #tpu.memory_space<vmem>>, %arg3: memref<1x256xf32, #tpu.memory_space<vmem>>, %arg4: memref<64x256xbf16, #tpu.memory_space<vmem>>, %arg5: memref<128x256xbf16, #tpu.memory_space<vmem>>, %arg6: memref<1x256xf32, #tpu.memory_space<vmem>>, %arg7: memref<64x256xbf16, #tpu.memory_space<vmem>>, %arg8: memref<1x64xf32, #tpu.memory_space<vmem>>, %arg9: memref<1x1xf32, #tpu.memory_space<vmem>>, %arg10: memref<64x32xf32, #tpu.memory_space<vmem>>, %arg11: memref<1x32xf32, #tpu.memory_space<vmem>>, %arg12: memref<32x1xf32, #tpu.memory_space<vmem>>, %arg13: memref<1x1xf32, #tpu.memory_space<vmem>>, %arg14: memref<8x1xf32, #tpu.memory_space<vmem>>) attributes {dimension_semantics = [#tpu.dimension_semantics<parallel>], iteration_bounds = array<i64: 1>, scalar_prefetch = 0 : i64, scratch_operands = 0 : i64, tpu.core_type = #tpu.core_type<tc>, window_params = [{transform_indices = @transform_0, window_bounds = array<i64: 8, 8, 8>}, {pipeline_mode = #tpu.pipeline_mode<synchronous>, transform_indices = @transform_1, window_bounds = array<i64: 8, 256>}, {pipeline_mode = #tpu.pipeline_mode<synchronous>, transform_indices = @transform_2, window_bounds = array<i64: 1, 256>}, {pipeline_mode = #tpu.pipeline_mode<synchronous>, transform_indices = @transform_3, window_bounds = array<i64: 64, 256>}, {pipeline_mode = #tpu.pipeline_mode<synchronous>, transform_indices = @transform_4, window_bounds = array<i64: 128, 256>}, {pipeline_mode = #tpu.pipeline_mode<synchronous>, transform_indices = @transform_5, window_bounds = array<i64: 1, 256>}, {pipeline_mode = #tpu.pipeline_mode<synchronous>, transform_indices = @transform_6, window_bounds = array<i64: 64, 256>}, {pipeline_mode = #tpu.pipeline_mode<synchronous>, transform_indices = @transform_7, window_bounds = array<i64: 1, 64>}, {pipeline_mode = #tpu.pipeline_mode<synchronous>, transform_indices = @transform_8, window_bounds = array<i64: 1, 1>}, {pipeline_mode = #tpu.pipeline_mode<synchronous>, transform_indices = @transform_9, window_bounds = array<i64: 64, 32>}, {pipeline_mode = #tpu.pipeline_mode<synchronous>, transform_indices = @transform_10, window_bounds = array<i64: 1, 32>}, {pipeline_mode = #tpu.pipeline_mode<synchronous>, transform_indices = @transform_11, window_bounds = array<i64: 32, 1>}, {pipeline_mode = #tpu.pipeline_mode<synchronous>, transform_indices = @transform_12, window_bounds = array<i64: 1, 1>}, {transform_indices = @transform_13, window_bounds = array<i64: 8, 1>}]} {
    %c0 = arith.constant 0 : index
    %c0_0 = arith.constant 0 : index
    %c0_1 = arith.constant 0 : index
    %0 = vector.load %arg1[%c0, %c0_0, %c0_1] : memref<8x8x8xf32, #tpu.memory_space<vmem>>, vector<8x8x8xf32>
    %c0_2 = arith.constant 0 : index
    %c0_3 = arith.constant 0 : index
    %1 = vector.load %arg2[%c0_2, %c0_3] : memref<8x256xbf16, #tpu.memory_space<vmem>>, vector<8x256xbf16>
    %c0_4 = arith.constant 0 : index
    %c0_5 = arith.constant 0 : index
    %2 = vector.load %arg3[%c0_4, %c0_5] : memref<1x256xf32, #tpu.memory_space<vmem>>, vector<1x256xf32>
    %c0_6 = arith.constant 0 : index
    %c0_7 = arith.constant 0 : index
    %3 = vector.load %arg4[%c0_6, %c0_7] : memref<64x256xbf16, #tpu.memory_space<vmem>>, vector<64x256xbf16>
    %4 = vector.shape_cast %0 : vector<8x8x8xf32> to vector<64x8xf32>
    %5 = arith.truncf %4 : vector<64x8xf32> to vector<64x8xbf16>
    %cst = arith.constant dense<0.000000e+00> : vector<64x256xf32>
    %6 = tpu.matmul %5, %1, %cst {dimension_numbers = #tpu.dot_dimension_numbers<[1], [0], [0], [1], [0, 0, 1, 1], [], []>} : vector<64x8xbf16>, vector<8x256xbf16>, vector<64x256xf32> -> vector<64x256xf32>
    %7 = vector.broadcast %2 : vector<1x256xf32> to vector<64x256xf32>
    %8 = arith.addf %6, %7 : vector<64x256xf32>
    %9 = vector.shape_cast %8 : vector<64x256xf32> to vector<8x8x256xf32>
    %cst_8 = arith.constant 0.000000e+00 : f32
    %10 = vector.broadcast %cst_8 : f32 to vector<8x64xf32>
    %cst_9 = arith.constant 0.000000e+00 : f32
    %11 = vector.broadcast %cst_9 : f32 to vector<8x64xf32>
    %12 = vector.extract_strided_slice %9 {offsets = [0, 0, 0], sizes = [1, 8, 256], strides = [1, 1, 1]} : vector<8x8x256xf32> to vector<1x8x256xf32>
    %13 = vector.shape_cast %12 : vector<1x8x256xf32> to vector<8x256xf32>
    %14 = arith.truncf %10 : vector<8x64xf32> to vector<8x64xbf16>
    %cst_10 = arith.constant dense<0.000000e+00> : vector<8x256xf32>
    %15 = tpu.matmul %14, %3, %cst_10 {dimension_numbers = #tpu.dot_dimension_numbers<[1], [0], [0], [1], [0, 0, 1, 1], [], []>} : vector<8x64xbf16>, vector<64x256xbf16>, vector<8x256xf32> -> vector<8x256xf32>
    %16 = arith.addf %13, %15 : vector<8x256xf32>
    %17 = vector.extract_strided_slice %16 {offsets = [0, 0], sizes = [8, 192], strides = [1, 1]} : vector<8x256xf32> to vector<8x192xf32>
    %18 = arith.negf %17 : vector<8x192xf32>
    %19 = math.exp %18 : vector<8x192xf32>
    %cst_11 = arith.constant 1.000000e+00 : f32
    %20 = vector.broadcast %cst_11 : f32 to vector<8x192xf32>
    %21 = arith.addf %20, %19 : vector<8x192xf32>
    %22 = arith.divf %20, %21 : vector<8x192xf32>
    %23 = vector.extract_strided_slice %22 {offsets = [0, 0], sizes = [8, 64], strides = [1, 1]} : vector<8x192xf32> to vector<8x64xf32>
    %24 = vector.extract_strided_slice %22 {offsets = [0, 64], sizes = [8, 64], strides = [1, 1]} : vector<8x192xf32> to vector<8x64xf32>
    %25 = vector.extract_strided_slice %22 {offsets = [0, 128], sizes = [8, 64], strides = [1, 1]} : vector<8x192xf32> to vector<8x64xf32>
    %26 = vector.extract_strided_slice %16 {offsets = [0, 192], sizes = [8, 64], strides = [1, 1]} : vector<8x256xf32> to vector<8x64xf32>
    %27 = math.tanh %26 : vector<8x64xf32>
    %28 = arith.mulf %24, %11 : vector<8x64xf32>
    %29 = arith.mulf %23, %27 : vector<8x64xf32>
    %30 = arith.addf %28, %29 : vector<8x64xf32>
    %31 = math.tanh %30 : vector<8x64xf32>
    %32 = arith.mulf %25, %31 : vector<8x64xf32>
    %33 = vector.extract_strided_slice %9 {offsets = [1, 0, 0], sizes = [1, 8, 256], strides = [1, 1, 1]} : vector<8x8x256xf32> to vector<1x8x256xf32>
    %34 = vector.shape_cast %33 : vector<1x8x256xf32> to vector<8x256xf32>
    %35 = arith.truncf %32 : vector<8x64xf32> to vector<8x64xbf16>
    %cst_12 = arith.constant dense<0.000000e+00> : vector<8x256xf32>
    %36 = tpu.matmul %35, %3, %cst_12 {dimension_numbers = #tpu.dot_dimension_numbers<[1], [0], [0], [1], [0, 0, 1, 1], [], []>} : vector<8x64xbf16>, vector<64x256xbf16>, vector<8x256xf32> -> vector<8x256xf32>
    %37 = arith.addf %34, %36 : vector<8x256xf32>
    %38 = vector.extract_strided_slice %37 {offsets = [0, 0], sizes = [8, 192], strides = [1, 1]} : vector<8x256xf32> to vector<8x192xf32>
    %39 = arith.negf %38 : vector<8x192xf32>
    %40 = math.exp %39 : vector<8x192xf32>
    %cst_13 = arith.constant 1.000000e+00 : f32
    %41 = vector.broadcast %cst_13 : f32 to vector<8x192xf32>
    %42 = arith.addf %41, %40 : vector<8x192xf32>
    %43 = arith.divf %41, %42 : vector<8x192xf32>
    %44 = vector.extract_strided_slice %43 {offsets = [0, 0], sizes = [8, 64], strides = [1, 1]} : vector<8x192xf32> to vector<8x64xf32>
    %45 = vector.extract_strided_slice %43 {offsets = [0, 64], sizes = [8, 64], strides = [1, 1]} : vector<8x192xf32> to vector<8x64xf32>
    %46 = vector.extract_strided_slice %43 {offsets = [0, 128], sizes = [8, 64], strides = [1, 1]} : vector<8x192xf32> to vector<8x64xf32>
    %47 = vector.extract_strided_slice %37 {offsets = [0, 192], sizes = [8, 64], strides = [1, 1]} : vector<8x256xf32> to vector<8x64xf32>
    %48 = math.tanh %47 : vector<8x64xf32>
    %49 = arith.mulf %45, %30 : vector<8x64xf32>
    %50 = arith.mulf %44, %48 : vector<8x64xf32>
    %51 = arith.addf %49, %50 : vector<8x64xf32>
    %52 = math.tanh %51 : vector<8x64xf32>
    %53 = arith.mulf %46, %52 : vector<8x64xf32>
    %54 = vector.extract_strided_slice %9 {offsets = [2, 0, 0], sizes = [1, 8, 256], strides = [1, 1, 1]} : vector<8x8x256xf32> to vector<1x8x256xf32>
    %55 = vector.shape_cast %54 : vector<1x8x256xf32> to vector<8x256xf32>
    %56 = arith.truncf %53 : vector<8x64xf32> to vector<8x64xbf16>
    %cst_14 = arith.constant dense<0.000000e+00> : vector<8x256xf32>
    %57 = tpu.matmul %56, %3, %cst_14 {dimension_numbers = #tpu.dot_dimension_numbers<[1], [0], [0], [1], [0, 0, 1, 1], [], []>} : vector<8x64xbf16>, vector<64x256xbf16>, vector<8x256xf32> -> vector<8x256xf32>
    %58 = arith.addf %55, %57 : vector<8x256xf32>
    %59 = vector.extract_strided_slice %58 {offsets = [0, 0], sizes = [8, 192], strides = [1, 1]} : vector<8x256xf32> to vector<8x192xf32>
    %60 = arith.negf %59 : vector<8x192xf32>
    %61 = math.exp %60 : vector<8x192xf32>
    %cst_15 = arith.constant 1.000000e+00 : f32
    %62 = vector.broadcast %cst_15 : f32 to vector<8x192xf32>
    %63 = arith.addf %62, %61 : vector<8x192xf32>
    %64 = arith.divf %62, %63 : vector<8x192xf32>
    %65 = vector.extract_strided_slice %64 {offsets = [0, 0], sizes = [8, 64], strides = [1, 1]} : vector<8x192xf32> to vector<8x64xf32>
    %66 = vector.extract_strided_slice %64 {offsets = [0, 64], sizes = [8, 64], strides = [1, 1]} : vector<8x192xf32> to vector<8x64xf32>
    %67 = vector.extract_strided_slice %64 {offsets = [0, 128], sizes = [8, 64], strides = [1, 1]} : vector<8x192xf32> to vector<8x64xf32>
    %68 = vector.extract_strided_slice %58 {offsets = [0, 192], sizes = [8, 64], strides = [1, 1]} : vector<8x256xf32> to vector<8x64xf32>
    %69 = math.tanh %68 : vector<8x64xf32>
    %70 = arith.mulf %66, %51 : vector<8x64xf32>
    %71 = arith.mulf %65, %69 : vector<8x64xf32>
    %72 = arith.addf %70, %71 : vector<8x64xf32>
    %73 = math.tanh %72 : vector<8x64xf32>
    %74 = arith.mulf %67, %73 : vector<8x64xf32>
    %75 = vector.extract_strided_slice %9 {offsets = [3, 0, 0], sizes = [1, 8, 256], strides = [1, 1, 1]} : vector<8x8x256xf32> to vector<1x8x256xf32>
    %76 = vector.shape_cast %75 : vector<1x8x256xf32> to vector<8x256xf32>
    %77 = arith.truncf %74 : vector<8x64xf32> to vector<8x64xbf16>
    %cst_16 = arith.constant dense<0.000000e+00> : vector<8x256xf32>
    %78 = tpu.matmul %77, %3, %cst_16 {dimension_numbers = #tpu.dot_dimension_numbers<[1], [0], [0], [1], [0, 0, 1, 1], [], []>} : vector<8x64xbf16>, vector<64x256xbf16>, vector<8x256xf32> -> vector<8x256xf32>
    %79 = arith.addf %76, %78 : vector<8x256xf32>
    %80 = vector.extract_strided_slice %79 {offsets = [0, 0], sizes = [8, 192], strides = [1, 1]} : vector<8x256xf32> to vector<8x192xf32>
    %81 = arith.negf %80 : vector<8x192xf32>
    %82 = math.exp %81 : vector<8x192xf32>
    %cst_17 = arith.constant 1.000000e+00 : f32
    %83 = vector.broadcast %cst_17 : f32 to vector<8x192xf32>
    %84 = arith.addf %83, %82 : vector<8x192xf32>
    %85 = arith.divf %83, %84 : vector<8x192xf32>
    %86 = vector.extract_strided_slice %85 {offsets = [0, 0], sizes = [8, 64], strides = [1, 1]} : vector<8x192xf32> to vector<8x64xf32>
    %87 = vector.extract_strided_slice %85 {offsets = [0, 64], sizes = [8, 64], strides = [1, 1]} : vector<8x192xf32> to vector<8x64xf32>
    %88 = vector.extract_strided_slice %85 {offsets = [0, 128], sizes = [8, 64], strides = [1, 1]} : vector<8x192xf32> to vector<8x64xf32>
    %89 = vector.extract_strided_slice %79 {offsets = [0, 192], sizes = [8, 64], strides = [1, 1]} : vector<8x256xf32> to vector<8x64xf32>
    %90 = math.tanh %89 : vector<8x64xf32>
    %91 = arith.mulf %87, %72 : vector<8x64xf32>
    %92 = arith.mulf %86, %90 : vector<8x64xf32>
    %93 = arith.addf %91, %92 : vector<8x64xf32>
    %94 = math.tanh %93 : vector<8x64xf32>
    %95 = arith.mulf %88, %94 : vector<8x64xf32>
    %96 = vector.extract_strided_slice %9 {offsets = [4, 0, 0], sizes = [1, 8, 256], strides = [1, 1, 1]} : vector<8x8x256xf32> to vector<1x8x256xf32>
    %97 = vector.shape_cast %96 : vector<1x8x256xf32> to vector<8x256xf32>
    %98 = arith.truncf %95 : vector<8x64xf32> to vector<8x64xbf16>
    %cst_18 = arith.constant dense<0.000000e+00> : vector<8x256xf32>
    %99 = tpu.matmul %98, %3, %cst_18 {dimension_numbers = #tpu.dot_dimension_numbers<[1], [0], [0], [1], [0, 0, 1, 1], [], []>} : vector<8x64xbf16>, vector<64x256xbf16>, vector<8x256xf32> -> vector<8x256xf32>
    %100 = arith.addf %97, %99 : vector<8x256xf32>
    %101 = vector.extract_strided_slice %100 {offsets = [0, 0], sizes = [8, 192], strides = [1, 1]} : vector<8x256xf32> to vector<8x192xf32>
    %102 = arith.negf %101 : vector<8x192xf32>
    %103 = math.exp %102 : vector<8x192xf32>
    %cst_19 = arith.constant 1.000000e+00 : f32
    %104 = vector.broadcast %cst_19 : f32 to vector<8x192xf32>
    %105 = arith.addf %104, %103 : vector<8x192xf32>
    %106 = arith.divf %104, %105 : vector<8x192xf32>
    %107 = vector.extract_strided_slice %106 {offsets = [0, 0], sizes = [8, 64], strides = [1, 1]} : vector<8x192xf32> to vector<8x64xf32>
    %108 = vector.extract_strided_slice %106 {offsets = [0, 64], sizes = [8, 64], strides = [1, 1]} : vector<8x192xf32> to vector<8x64xf32>
    %109 = vector.extract_strided_slice %106 {offsets = [0, 128], sizes = [8, 64], strides = [1, 1]} : vector<8x192xf32> to vector<8x64xf32>
    %110 = vector.extract_strided_slice %100 {offsets = [0, 192], sizes = [8, 64], strides = [1, 1]} : vector<8x256xf32> to vector<8x64xf32>
    %111 = math.tanh %110 : vector<8x64xf32>
    %112 = arith.mulf %108, %93 : vector<8x64xf32>
    %113 = arith.mulf %107, %111 : vector<8x64xf32>
    %114 = arith.addf %112, %113 : vector<8x64xf32>
    %115 = math.tanh %114 : vector<8x64xf32>
    %116 = arith.mulf %109, %115 : vector<8x64xf32>
    %117 = vector.extract_strided_slice %9 {offsets = [5, 0, 0], sizes = [1, 8, 256], strides = [1, 1, 1]} : vector<8x8x256xf32> to vector<1x8x256xf32>
    %118 = vector.shape_cast %117 : vector<1x8x256xf32> to vector<8x256xf32>
    %119 = arith.truncf %116 : vector<8x64xf32> to vector<8x64xbf16>
    %cst_20 = arith.constant dense<0.000000e+00> : vector<8x256xf32>
    %120 = tpu.matmul %119, %3, %cst_20 {dimension_numbers = #tpu.dot_dimension_numbers<[1], [0], [0], [1], [0, 0, 1, 1], [], []>} : vector<8x64xbf16>, vector<64x256xbf16>, vector<8x256xf32> -> vector<8x256xf32>
    %121 = arith.addf %118, %120 : vector<8x256xf32>
    %122 = vector.extract_strided_slice %121 {offsets = [0, 0], sizes = [8, 192], strides = [1, 1]} : vector<8x256xf32> to vector<8x192xf32>
    %123 = arith.negf %122 : vector<8x192xf32>
    %124 = math.exp %123 : vector<8x192xf32>
    %cst_21 = arith.constant 1.000000e+00 : f32
    %125 = vector.broadcast %cst_21 : f32 to vector<8x192xf32>
    %126 = arith.addf %125, %124 : vector<8x192xf32>
    %127 = arith.divf %125, %126 : vector<8x192xf32>
    %128 = vector.extract_strided_slice %127 {offsets = [0, 0], sizes = [8, 64], strides = [1, 1]} : vector<8x192xf32> to vector<8x64xf32>
    %129 = vector.extract_strided_slice %127 {offsets = [0, 64], sizes = [8, 64], strides = [1, 1]} : vector<8x192xf32> to vector<8x64xf32>
    %130 = vector.extract_strided_slice %127 {offsets = [0, 128], sizes = [8, 64], strides = [1, 1]} : vector<8x192xf32> to vector<8x64xf32>
    %131 = vector.extract_strided_slice %121 {offsets = [0, 192], sizes = [8, 64], strides = [1, 1]} : vector<8x256xf32> to vector<8x64xf32>
    %132 = math.tanh %131 : vector<8x64xf32>
    %133 = arith.mulf %129, %114 : vector<8x64xf32>
    %134 = arith.mulf %128, %132 : vector<8x64xf32>
    %135 = arith.addf %133, %134 : vector<8x64xf32>
    %136 = math.tanh %135 : vector<8x64xf32>
    %137 = arith.mulf %130, %136 : vector<8x64xf32>
    %138 = vector.extract_strided_slice %9 {offsets = [6, 0, 0], sizes = [1, 8, 256], strides = [1, 1, 1]} : vector<8x8x256xf32> to vector<1x8x256xf32>
    %139 = vector.shape_cast %138 : vector<1x8x256xf32> to vector<8x256xf32>
    %140 = arith.truncf %137 : vector<8x64xf32> to vector<8x64xbf16>
    %cst_22 = arith.constant dense<0.000000e+00> : vector<8x256xf32>
    %141 = tpu.matmul %140, %3, %cst_22 {dimension_numbers = #tpu.dot_dimension_numbers<[1], [0], [0], [1], [0, 0, 1, 1], [], []>} : vector<8x64xbf16>, vector<64x256xbf16>, vector<8x256xf32> -> vector<8x256xf32>
    %142 = arith.addf %139, %141 : vector<8x256xf32>
    %143 = vector.extract_strided_slice %142 {offsets = [0, 0], sizes = [8, 192], strides = [1, 1]} : vector<8x256xf32> to vector<8x192xf32>
    %144 = arith.negf %143 : vector<8x192xf32>
    %145 = math.exp %144 : vector<8x192xf32>
    %cst_23 = arith.constant 1.000000e+00 : f32
    %146 = vector.broadcast %cst_23 : f32 to vector<8x192xf32>
    %147 = arith.addf %146, %145 : vector<8x192xf32>
    %148 = arith.divf %146, %147 : vector<8x192xf32>
    %149 = vector.extract_strided_slice %148 {offsets = [0, 0], sizes = [8, 64], strides = [1, 1]} : vector<8x192xf32> to vector<8x64xf32>
    %150 = vector.extract_strided_slice %148 {offsets = [0, 64], sizes = [8, 64], strides = [1, 1]} : vector<8x192xf32> to vector<8x64xf32>
    %151 = vector.extract_strided_slice %148 {offsets = [0, 128], sizes = [8, 64], strides = [1, 1]} : vector<8x192xf32> to vector<8x64xf32>
    %152 = vector.extract_strided_slice %142 {offsets = [0, 192], sizes = [8, 64], strides = [1, 1]} : vector<8x256xf32> to vector<8x64xf32>
    %153 = math.tanh %152 : vector<8x64xf32>
    %154 = arith.mulf %150, %135 : vector<8x64xf32>
    %155 = arith.mulf %149, %153 : vector<8x64xf32>
    %156 = arith.addf %154, %155 : vector<8x64xf32>
    %157 = math.tanh %156 : vector<8x64xf32>
    %158 = arith.mulf %151, %157 : vector<8x64xf32>
    %159 = vector.extract_strided_slice %9 {offsets = [7, 0, 0], sizes = [1, 8, 256], strides = [1, 1, 1]} : vector<8x8x256xf32> to vector<1x8x256xf32>
    %160 = vector.shape_cast %159 : vector<1x8x256xf32> to vector<8x256xf32>
    %161 = arith.truncf %158 : vector<8x64xf32> to vector<8x64xbf16>
    %cst_24 = arith.constant dense<0.000000e+00> : vector<8x256xf32>
    %162 = tpu.matmul %161, %3, %cst_24 {dimension_numbers = #tpu.dot_dimension_numbers<[1], [0], [0], [1], [0, 0, 1, 1], [], []>} : vector<8x64xbf16>, vector<64x256xbf16>, vector<8x256xf32> -> vector<8x256xf32>
    %163 = arith.addf %160, %162 : vector<8x256xf32>
    %164 = vector.extract_strided_slice %163 {offsets = [0, 0], sizes = [8, 192], strides = [1, 1]} : vector<8x256xf32> to vector<8x192xf32>
    %165 = arith.negf %164 : vector<8x192xf32>
    %166 = math.exp %165 : vector<8x192xf32>
    %cst_25 = arith.constant 1.000000e+00 : f32
    %167 = vector.broadcast %cst_25 : f32 to vector<8x192xf32>
    %168 = arith.addf %167, %166 : vector<8x192xf32>
    %169 = arith.divf %167, %168 : vector<8x192xf32>
    %170 = vector.extract_strided_slice %169 {offsets = [0, 0], sizes = [8, 64], strides = [1, 1]} : vector<8x192xf32> to vector<8x64xf32>
    %171 = vector.extract_strided_slice %169 {offsets = [0, 64], sizes = [8, 64], strides = [1, 1]} : vector<8x192xf32> to vector<8x64xf32>
    %172 = vector.extract_strided_slice %169 {offsets = [0, 128], sizes = [8, 64], strides = [1, 1]} : vector<8x192xf32> to vector<8x64xf32>
    %173 = vector.extract_strided_slice %163 {offsets = [0, 192], sizes = [8, 64], strides = [1, 1]} : vector<8x256xf32> to vector<8x64xf32>
    %174 = math.tanh %173 : vector<8x64xf32>
    %175 = arith.mulf %171, %156 : vector<8x64xf32>
    %176 = arith.mulf %170, %174 : vector<8x64xf32>
    %177 = arith.addf %175, %176 : vector<8x64xf32>
    %178 = math.tanh %177 : vector<8x64xf32>
    %179 = arith.mulf %172, %178 : vector<8x64xf32>
    %180 = tpu.concatenate %32, %179 in 1 : vector<8x64xf32>, vector<8x64xf32> -> vector<8x128xf32>
    %181 = tpu.concatenate %53, %158 in 1 : vector<8x64xf32>, vector<8x64xf32> -> vector<8x128xf32>
    %182 = tpu.concatenate %74, %137 in 1 : vector<8x64xf32>, vector<8x64xf32> -> vector<8x128xf32>
    %183 = tpu.concatenate %95, %116 in 1 : vector<8x64xf32>, vector<8x64xf32> -> vector<8x128xf32>
    %184 = tpu.concatenate %116, %95 in 1 : vector<8x64xf32>, vector<8x64xf32> -> vector<8x128xf32>
    %185 = tpu.concatenate %137, %74 in 1 : vector<8x64xf32>, vector<8x64xf32> -> vector<8x128xf32>
    %186 = tpu.concatenate %158, %53 in 1 : vector<8x64xf32>, vector<8x64xf32> -> vector<8x128xf32>
    %187 = tpu.concatenate %179, %32 in 1 : vector<8x64xf32>, vector<8x64xf32> -> vector<8x128xf32>
    %188 = vector.shape_cast %180 : vector<8x128xf32> to vector<1x8x128xf32>
    %189 = vector.shape_cast %181 : vector<8x128xf32> to vector<1x8x128xf32>
    %190 = vector.shape_cast %182 : vector<8x128xf32> to vector<1x8x128xf32>
    %191 = vector.shape_cast %183 : vector<8x128xf32> to vector<1x8x128xf32>
    %192 = vector.shape_cast %184 : vector<8x128xf32> to vector<1x8x128xf32>
    %193 = vector.shape_cast %185 : vector<8x128xf32> to vector<1x8x128xf32>
    %194 = vector.shape_cast %186 : vector<8x128xf32> to vector<1x8x128xf32>
    %195 = vector.shape_cast %187 : vector<8x128xf32> to vector<1x8x128xf32>
    %196 = tpu.concatenate %188, %189, %190, %191, %192, %193, %194, %195 in 0 : vector<1x8x128xf32>, vector<1x8x128xf32>, vector<1x8x128xf32>, vector<1x8x128xf32>, vector<1x8x128xf32>, vector<1x8x128xf32>, vector<1x8x128xf32>, vector<1x8x128xf32> -> vector<8x8x128xf32>
    %c0_26 = arith.constant 0 : index
    %c0_27 = arith.constant 0 : index
    %197 = vector.load %arg5[%c0_26, %c0_27] : memref<128x256xbf16, #tpu.memory_space<vmem>>, vector<128x256xbf16>
    %c0_28 = arith.constant 0 : index
    %c0_29 = arith.constant 0 : index
    %198 = vector.load %arg6[%c0_28, %c0_29] : memref<1x256xf32, #tpu.memory_space<vmem>>, vector<1x256xf32>
    %c0_30 = arith.constant 0 : index
    %c0_31 = arith.constant 0 : index
    %199 = vector.load %arg7[%c0_30, %c0_31] : memref<64x256xbf16, #tpu.memory_space<vmem>>, vector<64x256xbf16>
    %200 = vector.shape_cast %196 : vector<8x8x128xf32> to vector<64x128xf32>
    %201 = arith.truncf %200 : vector<64x128xf32> to vector<64x128xbf16>
    %cst_32 = arith.constant dense<0.000000e+00> : vector<64x256xf32>
    %202 = tpu.matmul %201, %197, %cst_32 {dimension_numbers = #tpu.dot_dimension_numbers<[1], [0], [0], [1], [0, 0, 1, 1], [], []>} : vector<64x128xbf16>, vector<128x256xbf16>, vector<64x256xf32> -> vector<64x256xf32>
    %203 = vector.broadcast %198 : vector<1x256xf32> to vector<64x256xf32>
    %204 = arith.addf %202, %203 : vector<64x256xf32>
    %205 = vector.shape_cast %204 : vector<64x256xf32> to vector<8x8x256xf32>
    %cst_33 = arith.constant 0.000000e+00 : f32
    %206 = vector.broadcast %cst_33 : f32 to vector<8x64xf32>
    %cst_34 = arith.constant 0.000000e+00 : f32
    %207 = vector.broadcast %cst_34 : f32 to vector<8x64xf32>
    %208 = vector.extract_strided_slice %205 {offsets = [0, 0, 0], sizes = [1, 8, 256], strides = [1, 1, 1]} : vector<8x8x256xf32> to vector<1x8x256xf32>
    %209 = vector.shape_cast %208 : vector<1x8x256xf32> to vector<8x256xf32>
    %210 = arith.truncf %206 : vector<8x64xf32> to vector<8x64xbf16>
    %cst_35 = arith.constant dense<0.000000e+00> : vector<8x256xf32>
    %211 = tpu.matmul %210, %199, %cst_35 {dimension_numbers = #tpu.dot_dimension_numbers<[1], [0], [0], [1], [0, 0, 1, 1], [], []>} : vector<8x64xbf16>, vector<64x256xbf16>, vector<8x256xf32> -> vector<8x256xf32>
    %212 = arith.addf %209, %211 : vector<8x256xf32>
    %213 = vector.extract_strided_slice %212 {offsets = [0, 0], sizes = [8, 192], strides = [1, 1]} : vector<8x256xf32> to vector<8x192xf32>
    %214 = arith.negf %213 : vector<8x192xf32>
    %215 = math.exp %214 : vector<8x192xf32>
    %cst_36 = arith.constant 1.000000e+00 : f32
    %216 = vector.broadcast %cst_36 : f32 to vector<8x192xf32>
    %217 = arith.addf %216, %215 : vector<8x192xf32>
    %218 = arith.divf %216, %217 : vector<8x192xf32>
    %219 = vector.extract_strided_slice %218 {offsets = [0, 0], sizes = [8, 64], strides = [1, 1]} : vector<8x192xf32> to vector<8x64xf32>
    %220 = vector.extract_strided_slice %218 {offsets = [0, 64], sizes = [8, 64], strides = [1, 1]} : vector<8x192xf32> to vector<8x64xf32>
    %221 = vector.extract_strided_slice %218 {offsets = [0, 128], sizes = [8, 64], strides = [1, 1]} : vector<8x192xf32> to vector<8x64xf32>
    %222 = vector.extract_strided_slice %212 {offsets = [0, 192], sizes = [8, 64], strides = [1, 1]} : vector<8x256xf32> to vector<8x64xf32>
    %223 = math.tanh %222 : vector<8x64xf32>
    %224 = arith.mulf %220, %207 : vector<8x64xf32>
    %225 = arith.mulf %219, %223 : vector<8x64xf32>
    %226 = arith.addf %224, %225 : vector<8x64xf32>
    %227 = math.tanh %226 : vector<8x64xf32>
    %228 = arith.mulf %221, %227 : vector<8x64xf32>
    %229 = vector.extract_strided_slice %205 {offsets = [1, 0, 0], sizes = [1, 8, 256], strides = [1, 1, 1]} : vector<8x8x256xf32> to vector<1x8x256xf32>
    %230 = vector.shape_cast %229 : vector<1x8x256xf32> to vector<8x256xf32>
    %231 = arith.truncf %228 : vector<8x64xf32> to vector<8x64xbf16>
    %cst_37 = arith.constant dense<0.000000e+00> : vector<8x256xf32>
    %232 = tpu.matmul %231, %199, %cst_37 {dimension_numbers = #tpu.dot_dimension_numbers<[1], [0], [0], [1], [0, 0, 1, 1], [], []>} : vector<8x64xbf16>, vector<64x256xbf16>, vector<8x256xf32> -> vector<8x256xf32>
    %233 = arith.addf %230, %232 : vector<8x256xf32>
    %234 = vector.extract_strided_slice %233 {offsets = [0, 0], sizes = [8, 192], strides = [1, 1]} : vector<8x256xf32> to vector<8x192xf32>
    %235 = arith.negf %234 : vector<8x192xf32>
    %236 = math.exp %235 : vector<8x192xf32>
    %cst_38 = arith.constant 1.000000e+00 : f32
    %237 = vector.broadcast %cst_38 : f32 to vector<8x192xf32>
    %238 = arith.addf %237, %236 : vector<8x192xf32>
    %239 = arith.divf %237, %238 : vector<8x192xf32>
    %240 = vector.extract_strided_slice %239 {offsets = [0, 0], sizes = [8, 64], strides = [1, 1]} : vector<8x192xf32> to vector<8x64xf32>
    %241 = vector.extract_strided_slice %239 {offsets = [0, 64], sizes = [8, 64], strides = [1, 1]} : vector<8x192xf32> to vector<8x64xf32>
    %242 = vector.extract_strided_slice %239 {offsets = [0, 128], sizes = [8, 64], strides = [1, 1]} : vector<8x192xf32> to vector<8x64xf32>
    %243 = vector.extract_strided_slice %233 {offsets = [0, 192], sizes = [8, 64], strides = [1, 1]} : vector<8x256xf32> to vector<8x64xf32>
    %244 = math.tanh %243 : vector<8x64xf32>
    %245 = arith.mulf %241, %226 : vector<8x64xf32>
    %246 = arith.mulf %240, %244 : vector<8x64xf32>
    %247 = arith.addf %245, %246 : vector<8x64xf32>
    %248 = math.tanh %247 : vector<8x64xf32>
    %249 = arith.mulf %242, %248 : vector<8x64xf32>
    %250 = vector.extract_strided_slice %205 {offsets = [2, 0, 0], sizes = [1, 8, 256], strides = [1, 1, 1]} : vector<8x8x256xf32> to vector<1x8x256xf32>
    %251 = vector.shape_cast %250 : vector<1x8x256xf32> to vector<8x256xf32>
    %252 = arith.truncf %249 : vector<8x64xf32> to vector<8x64xbf16>
    %cst_39 = arith.constant dense<0.000000e+00> : vector<8x256xf32>
    %253 = tpu.matmul %252, %199, %cst_39 {dimension_numbers = #tpu.dot_dimension_numbers<[1], [0], [0], [1], [0, 0, 1, 1], [], []>} : vector<8x64xbf16>, vector<64x256xbf16>, vector<8x256xf32> -> vector<8x256xf32>
    %254 = arith.addf %251, %253 : vector<8x256xf32>
    %255 = vector.extract_strided_slice %254 {offsets = [0, 0], sizes = [8, 192], strides = [1, 1]} : vector<8x256xf32> to vector<8x192xf32>
    %256 = arith.negf %255 : vector<8x192xf32>
    %257 = math.exp %256 : vector<8x192xf32>
    %cst_40 = arith.constant 1.000000e+00 : f32
    %258 = vector.broadcast %cst_40 : f32 to vector<8x192xf32>
    %259 = arith.addf %258, %257 : vector<8x192xf32>
    %260 = arith.divf %258, %259 : vector<8x192xf32>
    %261 = vector.extract_strided_slice %260 {offsets = [0, 0], sizes = [8, 64], strides = [1, 1]} : vector<8x192xf32> to vector<8x64xf32>
    %262 = vector.extract_strided_slice %260 {offsets = [0, 64], sizes = [8, 64], strides = [1, 1]} : vector<8x192xf32> to vector<8x64xf32>
    %263 = vector.extract_strided_slice %260 {offsets = [0, 128], sizes = [8, 64], strides = [1, 1]} : vector<8x192xf32> to vector<8x64xf32>
    %264 = vector.extract_strided_slice %254 {offsets = [0, 192], sizes = [8, 64], strides = [1, 1]} : vector<8x256xf32> to vector<8x64xf32>
    %265 = math.tanh %264 : vector<8x64xf32>
    %266 = arith.mulf %262, %247 : vector<8x64xf32>
    %267 = arith.mulf %261, %265 : vector<8x64xf32>
    %268 = arith.addf %266, %267 : vector<8x64xf32>
    %269 = math.tanh %268 : vector<8x64xf32>
    %270 = arith.mulf %263, %269 : vector<8x64xf32>
    %271 = vector.extract_strided_slice %205 {offsets = [3, 0, 0], sizes = [1, 8, 256], strides = [1, 1, 1]} : vector<8x8x256xf32> to vector<1x8x256xf32>
    %272 = vector.shape_cast %271 : vector<1x8x256xf32> to vector<8x256xf32>
    %273 = arith.truncf %270 : vector<8x64xf32> to vector<8x64xbf16>
    %cst_41 = arith.constant dense<0.000000e+00> : vector<8x256xf32>
    %274 = tpu.matmul %273, %199, %cst_41 {dimension_numbers = #tpu.dot_dimension_numbers<[1], [0], [0], [1], [0, 0, 1, 1], [], []>} : vector<8x64xbf16>, vector<64x256xbf16>, vector<8x256xf32> -> vector<8x256xf32>
    %275 = arith.addf %272, %274 : vector<8x256xf32>
    %276 = vector.extract_strided_slice %275 {offsets = [0, 0], sizes = [8, 192], strides = [1, 1]} : vector<8x256xf32> to vector<8x192xf32>
    %277 = arith.negf %276 : vector<8x192xf32>
    %278 = math.exp %277 : vector<8x192xf32>
    %cst_42 = arith.constant 1.000000e+00 : f32
    %279 = vector.broadcast %cst_42 : f32 to vector<8x192xf32>
    %280 = arith.addf %279, %278 : vector<8x192xf32>
    %281 = arith.divf %279, %280 : vector<8x192xf32>
    %282 = vector.extract_strided_slice %281 {offsets = [0, 0], sizes = [8, 64], strides = [1, 1]} : vector<8x192xf32> to vector<8x64xf32>
    %283 = vector.extract_strided_slice %281 {offsets = [0, 64], sizes = [8, 64], strides = [1, 1]} : vector<8x192xf32> to vector<8x64xf32>
    %284 = vector.extract_strided_slice %281 {offsets = [0, 128], sizes = [8, 64], strides = [1, 1]} : vector<8x192xf32> to vector<8x64xf32>
    %285 = vector.extract_strided_slice %275 {offsets = [0, 192], sizes = [8, 64], strides = [1, 1]} : vector<8x256xf32> to vector<8x64xf32>
    %286 = math.tanh %285 : vector<8x64xf32>
    %287 = arith.mulf %283, %268 : vector<8x64xf32>
    %288 = arith.mulf %282, %286 : vector<8x64xf32>
    %289 = arith.addf %287, %288 : vector<8x64xf32>
    %290 = math.tanh %289 : vector<8x64xf32>
    %291 = arith.mulf %284, %290 : vector<8x64xf32>
    %292 = vector.extract_strided_slice %205 {offsets = [4, 0, 0], sizes = [1, 8, 256], strides = [1, 1, 1]} : vector<8x8x256xf32> to vector<1x8x256xf32>
    %293 = vector.shape_cast %292 : vector<1x8x256xf32> to vector<8x256xf32>
    %294 = arith.truncf %291 : vector<8x64xf32> to vector<8x64xbf16>
    %cst_43 = arith.constant dense<0.000000e+00> : vector<8x256xf32>
    %295 = tpu.matmul %294, %199, %cst_43 {dimension_numbers = #tpu.dot_dimension_numbers<[1], [0], [0], [1], [0, 0, 1, 1], [], []>} : vector<8x64xbf16>, vector<64x256xbf16>, vector<8x256xf32> -> vector<8x256xf32>
    %296 = arith.addf %293, %295 : vector<8x256xf32>
    %297 = vector.extract_strided_slice %296 {offsets = [0, 0], sizes = [8, 192], strides = [1, 1]} : vector<8x256xf32> to vector<8x192xf32>
    %298 = arith.negf %297 : vector<8x192xf32>
    %299 = math.exp %298 : vector<8x192xf32>
    %cst_44 = arith.constant 1.000000e+00 : f32
    %300 = vector.broadcast %cst_44 : f32 to vector<8x192xf32>
    %301 = arith.addf %300, %299 : vector<8x192xf32>
    %302 = arith.divf %300, %301 : vector<8x192xf32>
    %303 = vector.extract_strided_slice %302 {offsets = [0, 0], sizes = [8, 64], strides = [1, 1]} : vector<8x192xf32> to vector<8x64xf32>
    %304 = vector.extract_strided_slice %302 {offsets = [0, 64], sizes = [8, 64], strides = [1, 1]} : vector<8x192xf32> to vector<8x64xf32>
    %305 = vector.extract_strided_slice %302 {offsets = [0, 128], sizes = [8, 64], strides = [1, 1]} : vector<8x192xf32> to vector<8x64xf32>
    %306 = vector.extract_strided_slice %296 {offsets = [0, 192], sizes = [8, 64], strides = [1, 1]} : vector<8x256xf32> to vector<8x64xf32>
    %307 = math.tanh %306 : vector<8x64xf32>
    %308 = arith.mulf %304, %289 : vector<8x64xf32>
    %309 = arith.mulf %303, %307 : vector<8x64xf32>
    %310 = arith.addf %308, %309 : vector<8x64xf32>
    %311 = math.tanh %310 : vector<8x64xf32>
    %312 = arith.mulf %305, %311 : vector<8x64xf32>
    %313 = vector.extract_strided_slice %205 {offsets = [5, 0, 0], sizes = [1, 8, 256], strides = [1, 1, 1]} : vector<8x8x256xf32> to vector<1x8x256xf32>
    %314 = vector.shape_cast %313 : vector<1x8x256xf32> to vector<8x256xf32>
    %315 = arith.truncf %312 : vector<8x64xf32> to vector<8x64xbf16>
    %cst_45 = arith.constant dense<0.000000e+00> : vector<8x256xf32>
    %316 = tpu.matmul %315, %199, %cst_45 {dimension_numbers = #tpu.dot_dimension_numbers<[1], [0], [0], [1], [0, 0, 1, 1], [], []>} : vector<8x64xbf16>, vector<64x256xbf16>, vector<8x256xf32> -> vector<8x256xf32>
    %317 = arith.addf %314, %316 : vector<8x256xf32>
    %318 = vector.extract_strided_slice %317 {offsets = [0, 0], sizes = [8, 192], strides = [1, 1]} : vector<8x256xf32> to vector<8x192xf32>
    %319 = arith.negf %318 : vector<8x192xf32>
    %320 = math.exp %319 : vector<8x192xf32>
    %cst_46 = arith.constant 1.000000e+00 : f32
    %321 = vector.broadcast %cst_46 : f32 to vector<8x192xf32>
    %322 = arith.addf %321, %320 : vector<8x192xf32>
    %323 = arith.divf %321, %322 : vector<8x192xf32>
    %324 = vector.extract_strided_slice %323 {offsets = [0, 0], sizes = [8, 64], strides = [1, 1]} : vector<8x192xf32> to vector<8x64xf32>
    %325 = vector.extract_strided_slice %323 {offsets = [0, 64], sizes = [8, 64], strides = [1, 1]} : vector<8x192xf32> to vector<8x64xf32>
    %326 = vector.extract_strided_slice %323 {offsets = [0, 128], sizes = [8, 64], strides = [1, 1]} : vector<8x192xf32> to vector<8x64xf32>
    %327 = vector.extract_strided_slice %317 {offsets = [0, 192], sizes = [8, 64], strides = [1, 1]} : vector<8x256xf32> to vector<8x64xf32>
    %328 = math.tanh %327 : vector<8x64xf32>
    %329 = arith.mulf %325, %310 : vector<8x64xf32>
    %330 = arith.mulf %324, %328 : vector<8x64xf32>
    %331 = arith.addf %329, %330 : vector<8x64xf32>
    %332 = math.tanh %331 : vector<8x64xf32>
    %333 = arith.mulf %326, %332 : vector<8x64xf32>
    %334 = vector.extract_strided_slice %205 {offsets = [6, 0, 0], sizes = [1, 8, 256], strides = [1, 1, 1]} : vector<8x8x256xf32> to vector<1x8x256xf32>
    %335 = vector.shape_cast %334 : vector<1x8x256xf32> to vector<8x256xf32>
    %336 = arith.truncf %333 : vector<8x64xf32> to vector<8x64xbf16>
    %cst_47 = arith.constant dense<0.000000e+00> : vector<8x256xf32>
    %337 = tpu.matmul %336, %199, %cst_47 {dimension_numbers = #tpu.dot_dimension_numbers<[1], [0], [0], [1], [0, 0, 1, 1], [], []>} : vector<8x64xbf16>, vector<64x256xbf16>, vector<8x256xf32> -> vector<8x256xf32>
    %338 = arith.addf %335, %337 : vector<8x256xf32>
    %339 = vector.extract_strided_slice %338 {offsets = [0, 0], sizes = [8, 192], strides = [1, 1]} : vector<8x256xf32> to vector<8x192xf32>
    %340 = arith.negf %339 : vector<8x192xf32>
    %341 = math.exp %340 : vector<8x192xf32>
    %cst_48 = arith.constant 1.000000e+00 : f32
    %342 = vector.broadcast %cst_48 : f32 to vector<8x192xf32>
    %343 = arith.addf %342, %341 : vector<8x192xf32>
    %344 = arith.divf %342, %343 : vector<8x192xf32>
    %345 = vector.extract_strided_slice %344 {offsets = [0, 0], sizes = [8, 64], strides = [1, 1]} : vector<8x192xf32> to vector<8x64xf32>
    %346 = vector.extract_strided_slice %344 {offsets = [0, 64], sizes = [8, 64], strides = [1, 1]} : vector<8x192xf32> to vector<8x64xf32>
    %347 = vector.extract_strided_slice %344 {offsets = [0, 128], sizes = [8, 64], strides = [1, 1]} : vector<8x192xf32> to vector<8x64xf32>
    %348 = vector.extract_strided_slice %338 {offsets = [0, 192], sizes = [8, 64], strides = [1, 1]} : vector<8x256xf32> to vector<8x64xf32>
    %349 = math.tanh %348 : vector<8x64xf32>
    %350 = arith.mulf %346, %331 : vector<8x64xf32>
    %351 = arith.mulf %345, %349 : vector<8x64xf32>
    %352 = arith.addf %350, %351 : vector<8x64xf32>
    %353 = math.tanh %352 : vector<8x64xf32>
    %354 = arith.mulf %347, %353 : vector<8x64xf32>
    %355 = vector.extract_strided_slice %205 {offsets = [7, 0, 0], sizes = [1, 8, 256], strides = [1, 1, 1]} : vector<8x8x256xf32> to vector<1x8x256xf32>
    %356 = vector.shape_cast %355 : vector<1x8x256xf32> to vector<8x256xf32>
    %357 = arith.truncf %354 : vector<8x64xf32> to vector<8x64xbf16>
    %cst_49 = arith.constant dense<0.000000e+00> : vector<8x256xf32>
    %358 = tpu.matmul %357, %199, %cst_49 {dimension_numbers = #tpu.dot_dimension_numbers<[1], [0], [0], [1], [0, 0, 1, 1], [], []>} : vector<8x64xbf16>, vector<64x256xbf16>, vector<8x256xf32> -> vector<8x256xf32>
    %359 = arith.addf %356, %358 : vector<8x256xf32>
    %360 = vector.extract_strided_slice %359 {offsets = [0, 0], sizes = [8, 192], strides = [1, 1]} : vector<8x256xf32> to vector<8x192xf32>
    %361 = arith.negf %360 : vector<8x192xf32>
    %362 = math.exp %361 : vector<8x192xf32>
    %cst_50 = arith.constant 1.000000e+00 : f32
    %363 = vector.broadcast %cst_50 : f32 to vector<8x192xf32>
    %364 = arith.addf %363, %362 : vector<8x192xf32>
    %365 = arith.divf %363, %364 : vector<8x192xf32>
    %366 = vector.extract_strided_slice %365 {offsets = [0, 0], sizes = [8, 64], strides = [1, 1]} : vector<8x192xf32> to vector<8x64xf32>
    %367 = vector.extract_strided_slice %365 {offsets = [0, 64], sizes = [8, 64], strides = [1, 1]} : vector<8x192xf32> to vector<8x64xf32>
    %368 = vector.extract_strided_slice %365 {offsets = [0, 128], sizes = [8, 64], strides = [1, 1]} : vector<8x192xf32> to vector<8x64xf32>
    %369 = vector.extract_strided_slice %359 {offsets = [0, 192], sizes = [8, 64], strides = [1, 1]} : vector<8x256xf32> to vector<8x64xf32>
    %370 = math.tanh %369 : vector<8x64xf32>
    %371 = arith.mulf %367, %352 : vector<8x64xf32>
    %372 = arith.mulf %366, %370 : vector<8x64xf32>
    %373 = arith.addf %371, %372 : vector<8x64xf32>
    %374 = math.tanh %373 : vector<8x64xf32>
    %375 = arith.mulf %368, %374 : vector<8x64xf32>
    %c0_51 = arith.constant 0 : index
    %c0_52 = arith.constant 0 : index
    %376 = vector.load %arg8[%c0_51, %c0_52] : memref<1x64xf32, #tpu.memory_space<vmem>>, vector<1x64xf32>
    %c0_53 = arith.constant 0 : index
    %c0_54 = arith.constant 0 : index
    %377 = vector.load %arg9[%c0_53, %c0_54] : memref<1x1xf32, #tpu.memory_space<vmem>>, vector<1x1xf32>
    %378 = tpu.iota {dimensions = array<i32: 1>} : vector<1x64xi32>
    %c32_i32 = arith.constant 32 : i32
    %379 = vector.broadcast %c32_i32 : i32 to vector<1x64xi32>
    %380 = arith.cmpi slt, %378, %379 : vector<1x64xi32>
    %cst_55 = arith.constant 0.000000e+00 : f32
    %381 = vector.broadcast %cst_55 : f32 to vector<1x64xf32>
    %382 = arith.select %380, %376, %381 : vector<1x64xi1>, vector<1x64xf32>
    %c32_i32_56 = arith.constant 32 : i32
    %383 = vector.broadcast %c32_i32_56 : i32 to vector<1x64xi32>
    %384 = arith.cmpi sge, %378, %383 : vector<1x64xi32>
    %cst_57 = arith.constant 0.000000e+00 : f32
    %385 = vector.broadcast %cst_57 : f32 to vector<1x64xf32>
    %386 = arith.select %384, %376, %385 : vector<1x64xi1>, vector<1x64xf32>
    %387 = vector.broadcast %382 : vector<1x64xf32> to vector<8x64xf32>
    %388 = arith.mulf %228, %387 : vector<8x64xf32>
    %cst_58 = arith.constant dense<0.000000e+00> : vector<8xf32>
    %389 = vector.multi_reduction <add>, %388, %cst_58 [1] : vector<8x64xf32> to vector<8xf32>
    %390 = vector.shape_cast %389 : vector<8xf32> to vector<8x1xf32>
    %391 = vector.broadcast %382 : vector<1x64xf32> to vector<8x64xf32>
    %392 = arith.mulf %249, %391 : vector<8x64xf32>
    %cst_59 = arith.constant dense<0.000000e+00> : vector<8xf32>
    %393 = vector.multi_reduction <add>, %392, %cst_59 [1] : vector<8x64xf32> to vector<8xf32>
    %394 = vector.shape_cast %393 : vector<8xf32> to vector<8x1xf32>
    %395 = vector.broadcast %382 : vector<1x64xf32> to vector<8x64xf32>
    %396 = arith.mulf %270, %395 : vector<8x64xf32>
    %cst_60 = arith.constant dense<0.000000e+00> : vector<8xf32>
    %397 = vector.multi_reduction <add>, %396, %cst_60 [1] : vector<8x64xf32> to vector<8xf32>
    %398 = vector.shape_cast %397 : vector<8xf32> to vector<8x1xf32>
    %399 = vector.broadcast %382 : vector<1x64xf32> to vector<8x64xf32>
    %400 = arith.mulf %291, %399 : vector<8x64xf32>
    %cst_61 = arith.constant dense<0.000000e+00> : vector<8xf32>
    %401 = vector.multi_reduction <add>, %400, %cst_61 [1] : vector<8x64xf32> to vector<8xf32>
    %402 = vector.shape_cast %401 : vector<8xf32> to vector<8x1xf32>
    %403 = vector.broadcast %382 : vector<1x64xf32> to vector<8x64xf32>
    %404 = arith.mulf %312, %403 : vector<8x64xf32>
    %cst_62 = arith.constant dense<0.000000e+00> : vector<8xf32>
    %405 = vector.multi_reduction <add>, %404, %cst_62 [1] : vector<8x64xf32> to vector<8xf32>
    %406 = vector.shape_cast %405 : vector<8xf32> to vector<8x1xf32>
    %407 = vector.broadcast %382 : vector<1x64xf32> to vector<8x64xf32>
    %408 = arith.mulf %333, %407 : vector<8x64xf32>
    %cst_63 = arith.constant dense<0.000000e+00> : vector<8xf32>
    %409 = vector.multi_reduction <add>, %408, %cst_63 [1] : vector<8x64xf32> to vector<8xf32>
    %410 = vector.shape_cast %409 : vector<8xf32> to vector<8x1xf32>
    %411 = vector.broadcast %382 : vector<1x64xf32> to vector<8x64xf32>
    %412 = arith.mulf %354, %411 : vector<8x64xf32>
    %cst_64 = arith.constant dense<0.000000e+00> : vector<8xf32>
    %413 = vector.multi_reduction <add>, %412, %cst_64 [1] : vector<8x64xf32> to vector<8xf32>
    %414 = vector.shape_cast %413 : vector<8xf32> to vector<8x1xf32>
    %415 = vector.broadcast %382 : vector<1x64xf32> to vector<8x64xf32>
    %416 = arith.mulf %375, %415 : vector<8x64xf32>
    %cst_65 = arith.constant dense<0.000000e+00> : vector<8xf32>
    %417 = vector.multi_reduction <add>, %416, %cst_65 [1] : vector<8x64xf32> to vector<8xf32>
    %418 = vector.shape_cast %417 : vector<8xf32> to vector<8x1xf32>
    %419 = vector.broadcast %386 : vector<1x64xf32> to vector<8x64xf32>
    %420 = arith.mulf %228, %419 : vector<8x64xf32>
    %cst_66 = arith.constant dense<0.000000e+00> : vector<8xf32>
    %421 = vector.multi_reduction <add>, %420, %cst_66 [1] : vector<8x64xf32> to vector<8xf32>
    %422 = vector.shape_cast %421 : vector<8xf32> to vector<8x1xf32>
    %423 = vector.broadcast %386 : vector<1x64xf32> to vector<8x64xf32>
    %424 = arith.mulf %249, %423 : vector<8x64xf32>
    %cst_67 = arith.constant dense<0.000000e+00> : vector<8xf32>
    %425 = vector.multi_reduction <add>, %424, %cst_67 [1] : vector<8x64xf32> to vector<8xf32>
    %426 = vector.shape_cast %425 : vector<8xf32> to vector<8x1xf32>
    %427 = vector.broadcast %386 : vector<1x64xf32> to vector<8x64xf32>
    %428 = arith.mulf %270, %427 : vector<8x64xf32>
    %cst_68 = arith.constant dense<0.000000e+00> : vector<8xf32>
    %429 = vector.multi_reduction <add>, %428, %cst_68 [1] : vector<8x64xf32> to vector<8xf32>
    %430 = vector.shape_cast %429 : vector<8xf32> to vector<8x1xf32>
    %431 = vector.broadcast %386 : vector<1x64xf32> to vector<8x64xf32>
    %432 = arith.mulf %291, %431 : vector<8x64xf32>
    %cst_69 = arith.constant dense<0.000000e+00> : vector<8xf32>
    %433 = vector.multi_reduction <add>, %432, %cst_69 [1] : vector<8x64xf32> to vector<8xf32>
    %434 = vector.shape_cast %433 : vector<8xf32> to vector<8x1xf32>
    %435 = vector.broadcast %386 : vector<1x64xf32> to vector<8x64xf32>
    %436 = arith.mulf %312, %435 : vector<8x64xf32>
    %cst_70 = arith.constant dense<0.000000e+00> : vector<8xf32>
    %437 = vector.multi_reduction <add>, %436, %cst_70 [1] : vector<8x64xf32> to vector<8xf32>
    %438 = vector.shape_cast %437 : vector<8xf32> to vector<8x1xf32>
    %439 = vector.broadcast %386 : vector<1x64xf32> to vector<8x64xf32>
    %440 = arith.mulf %333, %439 : vector<8x64xf32>
    %cst_71 = arith.constant dense<0.000000e+00> : vector<8xf32>
    %441 = vector.multi_reduction <add>, %440, %cst_71 [1] : vector<8x64xf32> to vector<8xf32>
    %442 = vector.shape_cast %441 : vector<8xf32> to vector<8x1xf32>
    %443 = vector.broadcast %386 : vector<1x64xf32> to vector<8x64xf32>
    %444 = arith.mulf %354, %443 : vector<8x64xf32>
    %cst_72 = arith.constant dense<0.000000e+00> : vector<8xf32>
    %445 = vector.multi_reduction <add>, %444, %cst_72 [1] : vector<8x64xf32> to vector<8xf32>
    %446 = vector.shape_cast %445 : vector<8xf32> to vector<8x1xf32>
    %447 = vector.broadcast %386 : vector<1x64xf32> to vector<8x64xf32>
    %448 = arith.mulf %375, %447 : vector<8x64xf32>
    %cst_73 = arith.constant dense<0.000000e+00> : vector<8xf32>
    %449 = vector.multi_reduction <add>, %448, %cst_73 [1] : vector<8x64xf32> to vector<8xf32>
    %450 = vector.shape_cast %449 : vector<8xf32> to vector<8x1xf32>
    %451 = arith.addf %390, %450 : vector<8x1xf32>
    %452 = vector.broadcast %377 : vector<1x1xf32> to vector<8x1xf32>
    %453 = arith.addf %451, %452 : vector<8x1xf32>
    %454 = arith.addf %394, %446 : vector<8x1xf32>
    %455 = vector.broadcast %377 : vector<1x1xf32> to vector<8x1xf32>
    %456 = arith.addf %454, %455 : vector<8x1xf32>
    %457 = arith.addf %398, %442 : vector<8x1xf32>
    %458 = vector.broadcast %377 : vector<1x1xf32> to vector<8x1xf32>
    %459 = arith.addf %457, %458 : vector<8x1xf32>
    %460 = arith.addf %402, %438 : vector<8x1xf32>
    %461 = vector.broadcast %377 : vector<1x1xf32> to vector<8x1xf32>
    %462 = arith.addf %460, %461 : vector<8x1xf32>
    %463 = arith.addf %406, %434 : vector<8x1xf32>
    %464 = vector.broadcast %377 : vector<1x1xf32> to vector<8x1xf32>
    %465 = arith.addf %463, %464 : vector<8x1xf32>
    %466 = arith.addf %410, %430 : vector<8x1xf32>
    %467 = vector.broadcast %377 : vector<1x1xf32> to vector<8x1xf32>
    %468 = arith.addf %466, %467 : vector<8x1xf32>
    %469 = arith.addf %414, %426 : vector<8x1xf32>
    %470 = vector.broadcast %377 : vector<1x1xf32> to vector<8x1xf32>
    %471 = arith.addf %469, %470 : vector<8x1xf32>
    %472 = arith.addf %418, %422 : vector<8x1xf32>
    %473 = vector.broadcast %377 : vector<1x1xf32> to vector<8x1xf32>
    %474 = arith.addf %472, %473 : vector<8x1xf32>
    %475 = arith.maximumf %453, %456 : vector<8x1xf32>
    %476 = arith.maximumf %475, %459 : vector<8x1xf32>
    %477 = arith.maximumf %476, %462 : vector<8x1xf32>
    %478 = arith.maximumf %477, %465 : vector<8x1xf32>
    %479 = arith.maximumf %478, %468 : vector<8x1xf32>
    %480 = arith.maximumf %479, %471 : vector<8x1xf32>
    %481 = arith.maximumf %480, %474 : vector<8x1xf32>
    %482 = arith.subf %453, %481 : vector<8x1xf32>
    %483 = math.exp %482 : vector<8x1xf32>
    %484 = arith.subf %456, %481 : vector<8x1xf32>
    %485 = math.exp %484 : vector<8x1xf32>
    %486 = arith.subf %459, %481 : vector<8x1xf32>
    %487 = math.exp %486 : vector<8x1xf32>
    %488 = arith.subf %462, %481 : vector<8x1xf32>
    %489 = math.exp %488 : vector<8x1xf32>
    %490 = arith.subf %465, %481 : vector<8x1xf32>
    %491 = math.exp %490 : vector<8x1xf32>
    %492 = arith.subf %468, %481 : vector<8x1xf32>
    %493 = math.exp %492 : vector<8x1xf32>
    %494 = arith.subf %471, %481 : vector<8x1xf32>
    %495 = math.exp %494 : vector<8x1xf32>
    %496 = arith.subf %474, %481 : vector<8x1xf32>
    %497 = math.exp %496 : vector<8x1xf32>
    %498 = arith.addf %483, %485 : vector<8x1xf32>
    %499 = arith.addf %498, %487 : vector<8x1xf32>
    %500 = arith.addf %499, %489 : vector<8x1xf32>
    %501 = arith.addf %500, %491 : vector<8x1xf32>
    %502 = arith.addf %501, %493 : vector<8x1xf32>
    %503 = arith.addf %502, %495 : vector<8x1xf32>
    %504 = arith.addf %503, %497 : vector<8x1xf32>
    %505 = tpu.reciprocal %504 {approx = true} : vector<8x1xf32> -> vector<8x1xf32>
    %506 = arith.mulf %483, %505 : vector<8x1xf32>
    %507 = arith.mulf %485, %505 : vector<8x1xf32>
    %508 = arith.mulf %487, %505 : vector<8x1xf32>
    %509 = arith.mulf %489, %505 : vector<8x1xf32>
    %510 = arith.mulf %491, %505 : vector<8x1xf32>
    %511 = arith.mulf %493, %505 : vector<8x1xf32>
    %512 = arith.mulf %495, %505 : vector<8x1xf32>
    %513 = arith.mulf %497, %505 : vector<8x1xf32>
    %c32_i32_74 = arith.constant 32 : i32
    %514 = vector.broadcast %c32_i32_74 : i32 to vector<1x64xi32>
    %515 = arith.cmpi sge, %378, %514 : vector<1x64xi32>
    %cst_75 = arith.constant 0.000000e+00 : f32
    %516 = vector.broadcast %cst_75 : f32 to vector<8x64xf32>
    %517 = vector.shape_cast %515 : vector<1x64xi1> to vector<1x64xi1>
    %518 = vector.broadcast %517 : vector<1x64xi1> to vector<8x64xi1>
    %519 = vector.shape_cast %513 : vector<8x1xf32> to vector<8x1xf32>
    %520 = vector.broadcast %519 : vector<8x1xf32> to vector<8x64xf32>
    %521 = vector.shape_cast %506 : vector<8x1xf32> to vector<8x1xf32>
    %522 = vector.broadcast %521 : vector<8x1xf32> to vector<8x64xf32>
    %523 = arith.select %518, %520, %522 : vector<8x64xi1>, vector<8x64xf32>
    %524 = arith.mulf %228, %523 : vector<8x64xf32>
    %525 = arith.addf %516, %524 : vector<8x64xf32>
    %526 = vector.shape_cast %515 : vector<1x64xi1> to vector<1x64xi1>
    %527 = vector.broadcast %526 : vector<1x64xi1> to vector<8x64xi1>
    %528 = vector.shape_cast %512 : vector<8x1xf32> to vector<8x1xf32>
    %529 = vector.broadcast %528 : vector<8x1xf32> to vector<8x64xf32>
    %530 = vector.shape_cast %507 : vector<8x1xf32> to vector<8x1xf32>
    %531 = vector.broadcast %530 : vector<8x1xf32> to vector<8x64xf32>
    %532 = arith.select %527, %529, %531 : vector<8x64xi1>, vector<8x64xf32>
    %533 = arith.mulf %249, %532 : vector<8x64xf32>
    %534 = arith.addf %525, %533 : vector<8x64xf32>
    %535 = vector.shape_cast %515 : vector<1x64xi1> to vector<1x64xi1>
    %536 = vector.broadcast %535 : vector<1x64xi1> to vector<8x64xi1>
    %537 = vector.shape_cast %511 : vector<8x1xf32> to vector<8x1xf32>
    %538 = vector.broadcast %537 : vector<8x1xf32> to vector<8x64xf32>
    %539 = vector.shape_cast %508 : vector<8x1xf32> to vector<8x1xf32>
    %540 = vector.broadcast %539 : vector<8x1xf32> to vector<8x64xf32>
    %541 = arith.select %536, %538, %540 : vector<8x64xi1>, vector<8x64xf32>
    %542 = arith.mulf %270, %541 : vector<8x64xf32>
    %543 = arith.addf %534, %542 : vector<8x64xf32>
    %544 = vector.shape_cast %515 : vector<1x64xi1> to vector<1x64xi1>
    %545 = vector.broadcast %544 : vector<1x64xi1> to vector<8x64xi1>
    %546 = vector.shape_cast %510 : vector<8x1xf32> to vector<8x1xf32>
    %547 = vector.broadcast %546 : vector<8x1xf32> to vector<8x64xf32>
    %548 = vector.shape_cast %509 : vector<8x1xf32> to vector<8x1xf32>
    %549 = vector.broadcast %548 : vector<8x1xf32> to vector<8x64xf32>
    %550 = arith.select %545, %547, %549 : vector<8x64xi1>, vector<8x64xf32>
    %551 = arith.mulf %291, %550 : vector<8x64xf32>
    %552 = arith.addf %543, %551 : vector<8x64xf32>
    %553 = vector.shape_cast %515 : vector<1x64xi1> to vector<1x64xi1>
    %554 = vector.broadcast %553 : vector<1x64xi1> to vector<8x64xi1>
    %555 = vector.shape_cast %509 : vector<8x1xf32> to vector<8x1xf32>
    %556 = vector.broadcast %555 : vector<8x1xf32> to vector<8x64xf32>
    %557 = vector.shape_cast %510 : vector<8x1xf32> to vector<8x1xf32>
    %558 = vector.broadcast %557 : vector<8x1xf32> to vector<8x64xf32>
    %559 = arith.select %554, %556, %558 : vector<8x64xi1>, vector<8x64xf32>
    %560 = arith.mulf %312, %559 : vector<8x64xf32>
    %561 = arith.addf %552, %560 : vector<8x64xf32>
    %562 = vector.shape_cast %515 : vector<1x64xi1> to vector<1x64xi1>
    %563 = vector.broadcast %562 : vector<1x64xi1> to vector<8x64xi1>
    %564 = vector.shape_cast %508 : vector<8x1xf32> to vector<8x1xf32>
    %565 = vector.broadcast %564 : vector<8x1xf32> to vector<8x64xf32>
    %566 = vector.shape_cast %511 : vector<8x1xf32> to vector<8x1xf32>
    %567 = vector.broadcast %566 : vector<8x1xf32> to vector<8x64xf32>
    %568 = arith.select %563, %565, %567 : vector<8x64xi1>, vector<8x64xf32>
    %569 = arith.mulf %333, %568 : vector<8x64xf32>
    %570 = arith.addf %561, %569 : vector<8x64xf32>
    %571 = vector.shape_cast %515 : vector<1x64xi1> to vector<1x64xi1>
    %572 = vector.broadcast %571 : vector<1x64xi1> to vector<8x64xi1>
    %573 = vector.shape_cast %507 : vector<8x1xf32> to vector<8x1xf32>
    %574 = vector.broadcast %573 : vector<8x1xf32> to vector<8x64xf32>
    %575 = vector.shape_cast %512 : vector<8x1xf32> to vector<8x1xf32>
    %576 = vector.broadcast %575 : vector<8x1xf32> to vector<8x64xf32>
    %577 = arith.select %572, %574, %576 : vector<8x64xi1>, vector<8x64xf32>
    %578 = arith.mulf %354, %577 : vector<8x64xf32>
    %579 = arith.addf %570, %578 : vector<8x64xf32>
    %580 = vector.shape_cast %515 : vector<1x64xi1> to vector<1x64xi1>
    %581 = vector.broadcast %580 : vector<1x64xi1> to vector<8x64xi1>
    %582 = vector.shape_cast %506 : vector<8x1xf32> to vector<8x1xf32>
    %583 = vector.broadcast %582 : vector<8x1xf32> to vector<8x64xf32>
    %584 = vector.shape_cast %513 : vector<8x1xf32> to vector<8x1xf32>
    %585 = vector.broadcast %584 : vector<8x1xf32> to vector<8x64xf32>
    %586 = arith.select %581, %583, %585 : vector<8x64xi1>, vector<8x64xf32>
    %587 = arith.mulf %375, %586 : vector<8x64xf32>
    %588 = arith.addf %579, %587 : vector<8x64xf32>
    %c0_76 = arith.constant 0 : index
    %c0_77 = arith.constant 0 : index
    %589 = vector.load %arg10[%c0_76, %c0_77] : memref<64x32xf32, #tpu.memory_space<vmem>>, vector<64x32xf32>
    %cst_78 = arith.constant dense<0.000000e+00> : vector<8x32xf32>
    %590 = tpu.matmul %588, %589, %cst_78 {dimension_numbers = #tpu.dot_dimension_numbers<[1], [0], [0], [1], [0, 0, 1, 1], [], []>} : vector<8x64xf32>, vector<64x32xf32>, vector<8x32xf32> -> vector<8x32xf32>
    %c0_79 = arith.constant 0 : index
    %c0_80 = arith.constant 0 : index
    %591 = vector.load %arg11[%c0_79, %c0_80] : memref<1x32xf32, #tpu.memory_space<vmem>>, vector<1x32xf32>
    %592 = vector.broadcast %591 : vector<1x32xf32> to vector<8x32xf32>
    %593 = arith.addf %590, %592 : vector<8x32xf32>
    %cst_81 = arith.constant 0.000000e+00 : f32
    %594 = vector.broadcast %cst_81 : f32 to vector<8x32xf32>
    %595 = arith.maximumf %593, %594 : vector<8x32xf32>
    %c0_82 = arith.constant 0 : index
    %c0_83 = arith.constant 0 : index
    %596 = vector.load %arg12[%c0_82, %c0_83] : memref<32x1xf32, #tpu.memory_space<vmem>>, vector<32x1xf32>
    %cst_84 = arith.constant dense<0.000000e+00> : vector<8x1xf32>
    %597 = tpu.matmul %595, %596, %cst_84 {dimension_numbers = #tpu.dot_dimension_numbers<[1], [0], [0], [1], [0, 0, 1, 1], [], []>} : vector<8x32xf32>, vector<32x1xf32>, vector<8x1xf32> -> vector<8x1xf32>
    %c0_85 = arith.constant 0 : index
    %c0_86 = arith.constant 0 : index
    %598 = vector.load %arg13[%c0_85, %c0_86] : memref<1x1xf32, #tpu.memory_space<vmem>>, vector<1x1xf32>
    %599 = vector.broadcast %598 : vector<1x1xf32> to vector<8x1xf32>
    %600 = arith.addf %597, %599 : vector<8x1xf32>
    %c0_87 = arith.constant 0 : index
    %c0_88 = arith.constant 0 : index
    %601 = vector.load %arg14[%c0_87, %c0_88] : memref<8x1xf32, #tpu.memory_space<vmem>>, vector<8x1xf32>
    tpu.vector_store %arg14[%c0_87, %c0_88], %600 {strides = array<i32>} : memref<8x1xf32, #tpu.memory_space<vmem>>, vector<8x1xf32>,
    return
  }
  func.func @transform_0(%arg0: i32) -> (i32, i32, i32) {
    %c0_i32 = arith.constant 0 : i32
    %c0_i32_0 = arith.constant 0 : i32
    %c0_i32_1 = arith.constant 0 : i32
    return %c0_i32, %arg0, %c0_i32_0 : i32, i32, i32
  }
  func.func @transform_1(%arg0: i32) -> (i32, i32) {
    %c0_i32 = arith.constant 0 : i32
    %c0_i32_0 = arith.constant 0 : i32
    %c0_i32_1 = arith.constant 0 : i32
    return %c0_i32, %c0_i32_0 : i32, i32
  }
  func.func @transform_2(%arg0: i32) -> (i32, i32) {
    %c0_i32 = arith.constant 0 : i32
    %c0_i32_0 = arith.constant 0 : i32
    %c0_i32_1 = arith.constant 0 : i32
    return %c0_i32, %c0_i32_0 : i32, i32
  }
  func.func @transform_3(%arg0: i32) -> (i32, i32) {
    %c0_i32 = arith.constant 0 : i32
    %c0_i32_0 = arith.constant 0 : i32
    %c0_i32_1 = arith.constant 0 : i32
    return %c0_i32, %c0_i32_0 : i32, i32
  }
  func.func @transform_4(%arg0: i32) -> (i32, i32) {
    %c0_i32 = arith.constant 0 : i32
    %c0_i32_0 = arith.constant 0 : i32
    %c0_i32_1 = arith.constant 0 : i32
    return %c0_i32, %c0_i32_0 : i32, i32
  }
  func.func @transform_5(%arg0: i32) -> (i32, i32) {
    %c0_i32 = arith.constant 0 : i32
    %c0_i32_0 = arith.constant 0 : i32
    %c0_i32_1 = arith.constant 0 : i32
    return %c0_i32, %c0_i32_0 : i32, i32
  }
  func.func @transform_6(%arg0: i32) -> (i32, i32) {
    %c0_i32 = arith.constant 0 : i32
    %c0_i32_0 = arith.constant 0 : i32
    %c0_i32_1 = arith.constant 0 : i32
    return %c0_i32, %c0_i32_0 : i32, i32
  }
  func.func @transform_7(%arg0: i32) -> (i32, i32) {
    %c0_i32 = arith.constant 0 : i32
    %c0_i32_0 = arith.constant 0 : i32
    %c0_i32_1 = arith.constant 0 : i32
    return %c0_i32, %c0_i32_0 : i32, i32
  }
  func.func @transform_8(%arg0: i32) -> (i32, i32) {
    %c0_i32 = arith.constant 0 : i32
    %c0_i32_0 = arith.constant 0 : i32
    %c0_i32_1 = arith.constant 0 : i32
    return %c0_i32, %c0_i32_0 : i32, i32
  }
  func.func @transform_9(%arg0: i32) -> (i32, i32) {
    %c0_i32 = arith.constant 0 : i32
    %c0_i32_0 = arith.constant 0 : i32
    %c0_i32_1 = arith.constant 0 : i32
    return %c0_i32, %c0_i32_0 : i32, i32
  }
  func.func @transform_10(%arg0: i32) -> (i32, i32) {
    %c0_i32 = arith.constant 0 : i32
    %c0_i32_0 = arith.constant 0 : i32
    %c0_i32_1 = arith.constant 0 : i32
    return %c0_i32, %c0_i32_0 : i32, i32
  }
  func.func @transform_11(%arg0: i32) -> (i32, i32) {
    %c0_i32 = arith.constant 0 : i32
    %c0_i32_0 = arith.constant 0 : i32
    %c0_i32_1 = arith.constant 0 : i32
    return %c0_i32, %c0_i32_0 : i32, i32
  }
  func.func @transform_12(%arg0: i32) -> (i32, i32) {
    %c0_i32 = arith.constant 0 : i32
    %c0_i32_0 = arith.constant 0 : i32
    %c0_i32_1 = arith.constant 0 : i32
    return %c0_i32, %c0_i32_0 : i32, i32
  }
  func.func @transform_13(%arg0: i32) -> (i32, i32) {
    %c0_i32 = arith.constant 0 : i32
    %c0_i32_0 = arith.constant 0 : i32
    return %arg0, %c0_i32 : i32, i32
  }
}

</mosaic_0001>

<bundles_post_ra>
// kernel: tpu_custom_call.1
= control target key start
LH: loop header
LB: loop body
LE: loop exit
PB: predicated region body
PF: predicated region fallthrough
CT: control target
= control target key end

     0   :  { %s3519_s0 = inlined_call_operand.hbm [shape: f32[8,8,8], index: 0, kind: input, shape index: {}]   ;;  %s3520_s1 = inlined_call_operand.hbm [shape: bf16[8,256], index: 1, kind: input, shape index: {}]   ;;  %s3521_s2 = inlined_call_operand.vmem [shape: f32[1,256], index: 2, kind: input, shape index: {}]   ;;  %s3522_s3 = inlined_call_operand.hbm [shape: bf16[64,256], index: 3, kind: input, shape index: {}]   ;;  %s3523_s4 = inlined_call_operand.vmem [shape: bf16[128,256], index: 4, kind: input, shape index: {}]   ;;  %s3524_s5 = inlined_call_operand.hbm [shape: f32[1,256], index: 5, kind: input, shape index: {}]   ;;  %s3525_s6 = inlined_call_operand.hbm [shape: bf16[64,256], index: 6, kind: input, shape index: {}]   ;;  %s3526_s7 = inlined_call_operand.vmem [shape: f32[1,64], index: 7, kind: input, shape index: {}]   ;;  %s3527_s8 = inlined_call_operand.<no memory space> [shape: f32[1,1], index: 8, kind: input, shape index: {}]   ;;  %s3528_s9 = inlined_call_operand.vmem [shape: f32[64,32], index: 9, kind: input, shape index: {}]   ;;  %s3529_s10 = inlined_call_operand.vmem [shape: f32[1,32], index: 10, kind: input, shape index: {}]   ;;  %s3530_s11 = inlined_call_operand.vmem [shape: f32[32,1], index: 11, kind: input, shape index: {}]   ;;  %s3531_s13 = inlined_call_operand.vmem [shape: f32[8,1], index: 13, kind: output, shape index: {}]   ;;  %s3532_s12 = inlined_call_operand.<no memory space> [shape: f32[1,1], index: 12, kind: input, shape index: {}]  }
   0x1   :  { %v18_v0 = vstv %s3527_s8  ;;  %v20_v1 = vstv %s3532_s12 }
   0x2   :  { %19 = vst [vmem:[#allocation2] sm:$0x1] %v18_v0  ;;  %21 = vst [vmem:[#allocation3] sm:$0x1] %v20_v1 }
   0x3   :  { %22 = vsyncpa [#allocation5], 0 }
   0x4   :  { %23 = vsyncpa [#allocation7], 0 }
   0x5   :  { %24 = vsyncpa [#allocation10], 0  ;;  %s2745_s29 = smov [#allocation6]   ;;  %s2746_s14 = smov [#allocation9]  }
   0x6   :  { %s43_s30 = sshll.u32 %s2745_s29, 4  ;;  %s69_s15 = sshll.u32 %s2746_s14, 4  ;;  %s44_s30 = int_to_ptr.vmem [resolvable:$true] %s43_s30  ;;  %s70_s15 = int_to_ptr.vmem [resolvable:$true] %s69_s15 }
   0x7   :  { %s2629_s18 = scalar_lea.hbm %s3520_s1, 128 }
   0x8   :  { %p2630_p0 = scmp.ne.s32.totalorder %s3520_s1, %s2629_s18  ;;  %p2633_p1 = scmp.lt.u32.totalorder %s2629_s18, %s3520_s1 }
   0xa   :  { %p2635_p2 = pnand %p2633_p1, %p2630_p0 }
   0xc   :  { %2638 = shalt.err (!%p2635_p2)
}
   0xd   :  { %s2639_s21 = scalar_lea.vmem %s44_s30, 128  ;;  %p2644_p4 = scmp.lt.s32.totalorder %s44_s30, %s44_s30 }
   0xe   :  { %p2640_p3 = scmp.ne.s32.totalorder %s44_s30, %s2639_s21  ;;  %p2645_p5 = scmp.lt.s32.totalorder %s2639_s21, %s2639_s21 }
  0x10   :  { %p2646_p6 = por %p2645_p5, %p2644_p4 }
  0x12   :  { %p2647_p7 = pnand %p2646_p6, %p2640_p3 }
  0x14   :  { %2650 = shalt.err (!%p2647_p7)
}
  0x15   :  { %46 = dma.hbm_to_vmem [thread:$0]  %s3520_s1, 128, %s44_s30, [#allocation7]  }
  0x16   :  { %s2651_s26 = scalar_lea.hbm %s3524_s5, 32 }
  0x17   :  { %p2652_p8 = scmp.ne.s32.totalorder %s3524_s5, %s2651_s26  ;;  %p2655_p9 = scmp.lt.u32.totalorder %s2651_s26, %s3524_s5 }
  0x19   :  { %p2657_p10 = pnand %p2655_p9, %p2652_p8 }
  0x1b   :  { %2660 = shalt.err (!%p2657_p10)
}
  0x1c   :  { %s2661_s16 = scalar_lea.vmem %s70_s15, 32  ;;  %p2666_p12 = scmp.lt.s32.totalorder %s70_s15, %s70_s15 }
  0x1d   :  { %p2662_p11 = scmp.ne.s32.totalorder %s70_s15, %s2661_s16  ;;  %p2667_p13 = scmp.lt.s32.totalorder %s2661_s16, %s2661_s16 }
  0x1f   :  { %p2668_p0 = por %p2667_p13, %p2666_p12 }
  0x21   :  { %p2669_p1 = pnand %p2668_p0, %p2662_p11 }
  0x23   :  { %2672 = shalt.err (!%p2669_p1)
}
  0x24   :  { %72 = dma.hbm_to_vmem [thread:$0]  %s3524_s5, 32, %s70_s15, [#allocation10]  }
  0x25   :  { %s2747_s17 = smov [#allocation4]   ;;  %s2673_s12 = scalar_lea.hbm %s3519_s0, 1024 }
  0x26   :  { %s30_s18 = sshll.u32 %s2747_s17, 4  ;;  %p2674_p2 = scmp.ne.s32.totalorder %s3519_s0, %s2673_s12  ;;  %s31_s18 = int_to_ptr.vmem [resolvable:$true] %s30_s18 }
  0x27   :  { %p2677_p3 = scmp.lt.u32.totalorder %s2673_s12, %s3519_s0 }
  0x29   :  { %p2679_p4 = pnand %p2677_p3, %p2674_p2 }
  0x2b   :  { %2682 = shalt.err (!%p2679_p4)
}
  0x2c   :  { %s2683_s24 = scalar_lea.vmem %s31_s18, 1024  ;;  %p2688_p6 = scmp.lt.s32.totalorder %s31_s18, %s31_s18 }
  0x2d   :  { %p2684_p5 = scmp.ne.s32.totalorder %s31_s18, %s2683_s24  ;;  %p2689_p7 = scmp.lt.s32.totalorder %s2683_s24, %s2683_s24 }
  0x2f   :  { %p2690_p8 = por %p2689_p7, %p2688_p6 }
  0x31   :  { %p2691_p9 = pnand %p2690_p8, %p2684_p5 }
  0x33   :  { %2694 = shalt.err (!%p2691_p9)
}
  0x34   :  { %s2748_s5 = smov 128   ;;  %s2749_s15 = smov 8  }
  0x35   :  { %36 = dma.hbm_to_vmem [thread:$0]  %s3519_s0, 1024, %s31_s18, [#allocation5], %s2748_s5, %s2748_s5, %s2749_s15  }
  0x36   :  { %s2750_s27 = smov [#allocation8]   ;;  %s2751_s29 = smov [#allocation11]  }
  0x37   :  { %s54_s28 = sshll.u32 %s2750_s27, 4  ;;  %s78_s14 = sshll.u32 %s2751_s29, 4  ;;  %s55_s28 = int_to_ptr.vmem [resolvable:$true] %s54_s28  ;;  %s79_s14 = int_to_ptr.vmem [resolvable:$true] %s78_s14 }
  0x38   :  { %s2695_s30 = scalar_lea.hbm %s3522_s3, 1024 }
  0x39   :  { %p2696_p10 = scmp.ne.s32.totalorder %s3522_s3, %s2695_s30  ;;  %p2699_p11 = scmp.lt.u32.totalorder %s2695_s30, %s3522_s3 }
  0x3b   :  { %p2701_p12 = pnand %p2699_p11, %p2696_p10 }
  0x3d   :  { %2704 = shalt.err (!%p2701_p12)
}
  0x3e   :  { %s2705_s0 = scalar_lea.vmem %s55_s28, 1024  ;;  %p2710_p0 = scmp.lt.s32.totalorder %s55_s28, %s55_s28 }
  0x3f   :  { %p2706_p13 = scmp.ne.s32.totalorder %s55_s28, %s2705_s0  ;;  %p2711_p1 = scmp.lt.s32.totalorder %s2705_s0, %s2705_s0 }
  0x41   :  { %p2712_p2 = por %p2711_p1, %p2710_p0 }
  0x43   :  { %p2713_p3 = pnand %p2712_p2, %p2706_p13 }
  0x45   :  { %2716 = shalt.err (!%p2713_p3)
}
  0x46   :  { %60 = dma.hbm_to_vmem [thread:$0]  %s3522_s3, 1024, %s55_s28, [#allocation7], %s2748_s5, %s2748_s5, %s2749_s15  }
  0x47   :  { %s2717_s23 = scalar_lea.hbm %s3525_s6, 1024 }
  0x48   :  { %p2718_p4 = scmp.ne.s32.totalorder %s3525_s6, %s2717_s23  ;;  %p2721_p5 = scmp.lt.u32.totalorder %s2717_s23, %s3525_s6 }
  0x4a   :  { %p2723_p6 = pnand %p2721_p5, %p2718_p4 }
  0x4c   :  { %2726 = shalt.err (!%p2723_p6)
}
  0x4d   :  { %s2727_s29 = scalar_lea.vmem %s79_s14, 1024  ;;  %p2732_p8 = scmp.lt.s32.totalorder %s79_s14, %s79_s14 }
  0x4e   :  { %p2728_p7 = scmp.ne.s32.totalorder %s79_s14, %s2727_s29  ;;  %p2733_p9 = scmp.lt.s32.totalorder %s2727_s29, %s2727_s29 }
  0x50   :  { %p2734_p10 = por %p2733_p9, %p2732_p8 }
  0x52   :  { %p2735_p11 = pnand %p2734_p10, %p2728_p7 }
  0x54   :  { %2738 = shalt.err (!%p2735_p11)
}
  0x55   :  { %84 = dma.hbm_to_vmem [thread:$0]  %s3525_s6, 1024, %s79_s14, [#allocation10], %s2748_s5, %s2748_s5, %s2749_s15  }
  0x56   :  { %2739 = dma.done.wait [#allocation5], 1024  }
  0x57   :  { %2740 = vsyncadd [#allocation5], 4294966272 }
  0x58   :  { %2741 = dma.done.wait [#allocation7], 1152  }
  0x59   :  { %2742 = vsyncadd [#allocation7], 4294966144 }
  0x5a   :  { %2743 = dma.done.wait [#allocation10], 1056  }
  0x5b   :  { %2744 = vsyncadd [#allocation10], 4294966240  ;;  %v2752_v2 = vmov 0   ;;  %v2906_v3 = vld [vmem:[#allocation8 + $0x4] ss:$8 sps:$4 sm:$0xff]   ;;  %v121_v6 = vld [vmem:[#allocation6] sm:$0xff]  ;;  %v136_v18 = vlaneseq }
  0x5c   :  { %203 = vmatprep.mubr.bf16.mxu0 %v2752_v2  ;;  %320 = vmatprep.mubr.bf16.mxu1 %v2752_v2  ;;  %v2908_v4 = vld [vmem:[#allocation8] ss:$8 sps:$4 sm:$0xff]   ;;  %v2911_v5 = vld [vmem:[#allocation8 + $0x14] ss:$8 sps:$4 sm:$0xff]   ;;  %vm164_vm0 = vcmask 1043456   ;;  %v2184_v8 = vcombine.high %v121_v6, %v121_v6  ;;  %v2183_v9 = vcombine.low %v121_v6, %v121_v6  ;;  %vm151_vm1 = vcmask 64512  }
  0x5d   :  { %2368 = vset.pattern.permute.xlu0 %v2752_v2  ;;  %2367 = vset.pattern.permute.xlu1 %v2752_v2  ;;  %v2914_v7 = vld [vmem:[#allocation8 + $0x10] ss:$8 sps:$4 sm:$0xff]   ;;  %v2917_v10 = vld [vmem:[#allocation8 + $0x24] ss:$8 sps:$4 sm:$0xff]   ;;  %v2919_v15 = vld [vmem:[#allocation8 + $0x20] ss:$8 sps:$4 sm:$0xff]  }
  0x5e   :  { %288 = vmatprep.subr.bf16.mxu1 %v2906_v3  ;;  %v113_v11 = vld [vmem:[#allocation4] sm:$0xff]  ;;  %v114_v12 = vld [vmem:[#allocation4 + $0x8] sm:$0xff]  ;;  %2185 = vmatprep.subr.msk.bf16.mxu0 %vm164_vm0, %v2184_v8  ;;  %v166_v13 = vsel %vm164_vm0, %v2183_v9, 0  ;;  %v2953_v19 = vshrl.u32 %v136_v18, 7  ;;  %v122_v21 = vld [vmem:[%s3521_s2] sm:$0x3] }
  0x5f   :  { %289 = vmatpush1.bf16.msra.mxu1 %v2908_v4  ;;  %v131_v14 = vpack.c.bf16 %v114_v12, %v113_v11  ;;  %172 = vmatpush1.bf16.msra.mxu0 %v166_v13  ;;  %v2921_v16 = vld [vmem:[#allocation8 + $0x34] ss:$8 sps:$4 sm:$0xff]   ;;  %v2927_v17 = vld [vmem:[#allocation8 + $0x30] ss:$8 sps:$4 sm:$0xff]   ;;  %s2753_s2 = smov 64   ;;  %vm284_vm2 = vcmask 523264  }
  0x60   :  { %290 = vmatprep.subr.bf16.mxu1 %v2911_v5  ;;  %442 = vmatprep.subr.bf16.mxu0 %v2906_v3  ;;  %v2956_v20 = vsub.s32 0, %v2953_v19  ;;  %v142_v22 = vsub.s32 1, %v2953_v19  ;;  %v115_v12 = vld [vmem:[#allocation4 + $0x10] sm:$0xff]  ;;  %v116_v13 = vld [vmem:[#allocation4 + $0x18] sm:$0xff]  ;;  %vm2755_vm5 = vmmov 0   ;;  %vm2100_vm6 = vcmask 261120  }
  0x61   :  { %vm2174_vm7 = vcmask 7168  }
  0x62   :  { %2186 = vmatmul.mubr.msk.bf16.vlgmr.msra.gmra.mrb[0].mxu0 %vm151_vm1, %v131_v14  ;;  %v2963_v25 = vrot.slane %v122_v21, %v2956_v20  ;;  %v2967_v27 = vrot.slane %v122_v21, %v142_v22  ;;  %v132_v14 = vpack.c.bf16 %v116_v13, %v115_v12  ;;  %v117_v21 = vld [vmem:[#allocation4 + $0x20] sm:$0xff] }
  0x63   :  { %291 = vmatpush1.bf16.msra.mxu1 %v2914_v7  ;;  %443 = vmatpush1.bf16.msra.mxu0 %v2908_v4 }
  0x64   :  { %292 = vmatprep.subr.bf16.mxu1 %v2917_v10  ;;  %213 = vmatprep.mubr.bf16.mxu0 %v2752_v2 }
  0x65   :  { %444 = vmatprep.subr.bf16.mxu0 %v2911_v5 }
  0x67   :  { %293 = vmatpush1.bf16.msra.mxu1 %v2919_v15  ;;  %445 = vmatpush1.bf16.msra.mxu0 %v2914_v7 }
  0x68   :  { %294 = vmatprep.subr.bf16.mxu1 %v2921_v16  ;;  %446 = vmatprep.subr.bf16.mxu0 %v2917_v10 }
  0x6a   :  { %2187 = vmatmul.mubr.msk.bf16.gmra.mrb[4].mxu0 %vm151_vm1, %v132_v14 }
  0x6b   :  { %295 = vmatpush1.bf16.msra.mxu1 %v2927_v17  ;;  %447 = vmatpush1.bf16.msra.mxu0 %v2919_v15 }
  0x6c   :  { %365 = vmatprep.subr.bf16.mxu1 %v2906_v3  ;;  %448 = vmatprep.subr.bf16.mxu0 %v2921_v16 }
  0x6d   :  { %223 = vmatprep.mubr.bf16.mxu0 %v2752_v2 }
  0x6e   :  { %321 = vmatmul.mubr.bf16.vlgmr.msra.gmra.mrb[0].mxu1 %v2752_v2 }
  0x6f   :  { %366 = vmatpush1.bf16.msra.mxu1 %v2908_v4  ;;  %397 = vmatprep.mubr.bf16.mxu1 %v2752_v2 }
  0x70   :  { %367 = vmatprep.subr.bf16.mxu1 %v2911_v5  ;;  %449 = vmatpush1.bf16.msra.mxu0 %v2927_v17 }
  0x71   :  { %596 = vmatprep.subr.bf16.mxu0 %v2906_v3 }
  0x73   :  { %368 = vmatpush1.bf16.msra.mxu1 %v2914_v7 }
  0x74   :  { %369 = vmatprep.subr.bf16.mxu1 %v2917_v10 }
  0x77   :  { %370 = vmatpush1.bf16.msra.mxu1 %v2919_v15 }
  0x78   :  { %371 = vmatprep.subr.bf16.mxu1 %v2921_v16 }
  0x7b   :  { %372 = vmatpush1.bf16.msra.mxu1 %v2927_v17 }
  0x7c   :  { %519 = vmatprep.subr.bf16.mxu1 %v2906_v3 }
 0x135   :  { %v205_v23 = vpop.f32.mrb[0].mxu0 }
 0x136   :  { %v207_v24 = vpop.f32.mrb[1].mxu0  ;;  %v206_v29 = vadd.f32 %v205_v23, %v2963_v25  ;;  %v118_v23 = vld [vmem:[#allocation4 + $0x28] sm:$0xff] }
 0x137   :  { %v209_v26 = vpop.f32.mrb[2].mxu0  ;;  %v208_v30 = vadd.f32 %v207_v24, %v2967_v27  ;;  %v133_v24 = vpack.c.bf16 %v118_v23, %v117_v21 }
 0x138   :  { %v211_v28 = vpop.f32.mrb[3].mxu0  ;;  %v210_v55 = vadd.f32 %v209_v26, %v2963_v25  ;;  %v119_v26 = vld [vmem:[#allocation4 + $0x30] sm:$0xff] }
 0x139   :  { %v212_v56 = vadd.f32 %v211_v28, %v2967_v27  ;;  %2188 = vmatmul.mubr.msk.bf16.gmra.mrb[8].mxu0 %vm151_vm1, %v133_v24  ;;  %v120_v28 = vld [vmem:[#allocation4 + $0x38] sm:$0xff] }
 0x13a   :  { %233 = vmatprep.mubr.bf16.mxu0 %v2752_v2 }
 0x141   :  { %v322_v31 = vpop.f32.mrb[0].mxu1 }
 0x142   :  { %v329_v32 = vadd.f32 %v322_v31, %v206_v29  ;;  %v324_v33 = vpop.f32.mrb[1].mxu1  ;;  %v134_v29 = vpack.c.bf16 %v120_v28, %v119_v26 }
 0x143   :  { %v330_v34 = vadd.f32 %v324_v33, %v208_v30  ;;  %v326_v35 = vpop.f32.mrb[2].mxu1 }
 0x144   :  { %v327_v36 = vpop.f32.mrb[3].mxu1  ;;  %v2198_v38 = vmul.f32 -1.442695, %v329_v32  ;;  %2189 = vmatmul.mubr.msk.bf16.gmra.mrb[12].mxu0 %vm151_vm1, %v134_v29  ;;  %v215_v35 = vpop.f32.mrb[4].mxu0 }
 0x145   :  { %2419 = vtanh.f32 %v330_v34  ;;  %v2199_v48 = vmul.f32 -1.442695, %v330_v34  ;;  %474 = vmatprep.mubr.bf16.mxu0 %v2752_v2  ;;  %v217_v36 = vpop.f32.mrb[5].mxu0 }
 0x146   :  { %2421 = vpow2.f32 %v2198_v38 }
 0x14f   :  { %v2420_v37 = vpop.eup %2419 }
 0x150   :  { %346 = vrot.lane.b32.xlu0 %v2420_v37, %s2753_s2  ;;  %v2422_v39 = vpop.eup %2421  ;;  %v2999_v37 = vpop.f32.mrb[6].mxu0 }
 0x151   :  { %v337_v40 = vadd.f32 1.0, %v2422_v39  ;;  %v3001_v38 = vpop.f32.mrb[7].mxu0 }
 0x153   :  { %2423 = vrcp.f32 %v337_v40 }
 0x15d   :  { %v2424_v41 = vpop.eup %2423 }
 0x15e   :  { %v344_v44 = vmul.f32 0.0, %v2424_v41 }
 0x1c2   :  { %v347_v42 = vpop.permute.xlu0 %346 }
 0x1c3   :  { %v349_v43 = vmul.f32 %v2424_v41, %v347_v42 }
 0x1c5   :  { %351 = vrot.lane.b32.xlu0 %v349_v43, %s2753_s2 }
 0x20c   :  { %v3003_v39 = vpop.f32.mrb[8].mxu0 }
 0x20d   :  { %v3005_v40 = vpop.f32.mrb[9].mxu0 }
 0x20e   :  { %v3007_v41 = vpop.f32.mrb[10].mxu0 }
 0x20f   :  { %v3009_v43 = vpop.f32.mrb[11].mxu0 }
 0x237   :  { %v352_v45 = vpop.permute.xlu0 %351 }
 0x238   :  { %v354_v46 = vadd.f32 %v352_v45, %v344_v44  ;;  %v3011_v45 = vpop.f32.mrb[12].mxu0 }
 0x23a   :  { %2425 = vtanh.f32 %v354_v46 }
 0x23b   :  { %2427 = vpow2.f32 %v2199_v48 }
 0x244   :  { %v2426_v47 = vpop.eup %2425 }
 0x245   :  { %357 = vrot.lane.b32.xlu1 %v2426_v47, %s2753_s2  ;;  %v2428_v49 = vpop.eup %2427 }
 0x246   :  { %v338_v50 = vadd.f32 1.0, %v2428_v49 }
 0x248   :  { %2429 = vrcp.f32 %v338_v50 }
 0x252   :  { %v2430_v51 = vpop.eup %2429 }
 0x2b7   :  { %v358_v52 = vpop.permute.xlu1 %357 }
 0x2b8   :  { %v2974_v53 = vmul.f32 %v2430_v51, %v358_v52 }
 0x2ba   :  { %v361_v54 = vpack.c.bf16 %v2974_v53, %v2974_v53 }
 0x2bc   :  { %2200 = vmatmul.mubr.msk.bf16.vlgmr.msra.gmra.mrb[4].mxu1 %vm284_vm2, %v361_v54  ;;  %v216_v54 = vadd.f32 %v215_v35, %v2963_v25 }
 0x2bd   :  { %520 = vmatpush1.bf16.msra.mxu1 %v2908_v4  ;;  %551 = vmatprep.mubr.bf16.mxu1 %v2752_v2 }
 0x2be   :  { %521 = vmatprep.subr.bf16.mxu1 %v2911_v5 }
 0x2c1   :  { %522 = vmatpush1.bf16.msra.mxu1 %v2914_v7 }
 0x2c2   :  { %523 = vmatprep.subr.bf16.mxu1 %v2917_v10 }
 0x2c5   :  { %524 = vmatpush1.bf16.msra.mxu1 %v2919_v15 }
 0x2c6   :  { %525 = vmatprep.subr.bf16.mxu1 %v2921_v16 }
 0x2c9   :  { %526 = vmatpush1.bf16.msra.mxu1 %v2927_v17 }
 0x2ca   :  { %673 = vmatprep.subr.bf16.mxu1 %v2906_v3 }
 0x38f   :  { %v399_v57 = vpop.f32.mrb[4].mxu1 }
 0x390   :  { %v406_v58 = vadd.f32 %v399_v57, %v210_v55  ;;  %v401_v59 = vpop.f32.mrb[5].mxu1  ;;  %v218_v55 = vadd.f32 %v217_v36, %v2967_v27 }
 0x391   :  { %v407_v60 = vadd.f32 %v401_v59, %v212_v56  ;;  %v403_v61 = vpop.f32.mrb[6].mxu1 }
 0x392   :  { %v404_v62 = vpop.f32.mrb[7].mxu1  ;;  %v2201_v0 = vmul.f32 -1.442695, %v406_v58 }
 0x393   :  { %2431 = vtanh.f32 %v407_v60  ;;  %v2202_v34 = vmul.f32 -1.442695, %v407_v60 }
 0x394   :  { %2433 = vpow2.f32 %v2201_v0 }
 0x39d   :  { %v2432_v63 = vpop.eup %2431 }
 0x39e   :  { %423 = vrot.lane.b32.xlu1 %v2432_v63, %s2753_s2  ;;  %v2434_v1 = vpop.eup %2433 }
 0x39f   :  { %v414_v6 = vadd.f32 1.0, %v2434_v1 }
 0x3a1   :  { %2435 = vrcp.f32 %v414_v6 }
 0x3ab   :  { %v2436_v8 = vpop.eup %2435 }
 0x3ac   :  { %v421_v30 = vmul.f32 %v2436_v8, %v354_v46  ;;  %v3013_v46 = vpop.f32.mrb[13].mxu0 }
 0x3ad   :  { %v3015_v47 = vpop.f32.mrb[14].mxu0 }
 0x3ae   :  { %v3017_v48 = vpop.f32.mrb[15].mxu0 }
 0x410   :  { %v424_v9 = vpop.permute.xlu1 %423 }
 0x411   :  { %v426_v11 = vmul.f32 %v2436_v8, %v424_v9 }
 0x413   :  { %428 = vrot.lane.b32.xlu0 %v426_v11, %s2753_s2 }
 0x485   :  { %v429_v31 = vpop.permute.xlu0 %428 }
 0x486   :  { %v431_v32 = vadd.f32 %v429_v31, %v421_v30  ;;  %v220_v31 = vadd.f32 %v2999_v37, %v2963_v25 }
 0x488   :  { %2437 = vtanh.f32 %v431_v32 }
 0x489   :  { %2439 = vpow2.f32 %v2202_v34 }
 0x492   :  { %v2438_v33 = vpop.eup %2437 }
 0x493   :  { %434 = vrot.lane.b32.xlu1 %v2438_v33, %s2753_s2  ;;  %v2440_v42 = vpop.eup %2439 }
 0x494   :  { %v415_v44 = vadd.f32 1.0, %v2440_v42 }
 0x496   :  { %2441 = vrcp.f32 %v415_v44 }
 0x4a0   :  { %v2442_v49 = vpop.eup %2441 }
 0x505   :  { %v435_v50 = vpop.permute.xlu1 %434 }
 0x506   :  { %v3019_v51 = vmul.f32 %v2442_v49, %v435_v50 }
 0x508   :  { %v438_v52 = vpack.c.bf16 %v3019_v51, %v3019_v51 }
 0x50a   :  { %2203 = vmatmul.mubr.msk.bf16.vlgmr.msra.gmra.mrb[16].mxu0 %vm284_vm2, %v438_v52 }
 0x50b   :  { %597 = vmatpush1.bf16.msra.mxu0 %v2908_v4  ;;  %628 = vmatprep.mubr.bf16.mxu0 %v2752_v2 }
 0x50c   :  { %598 = vmatprep.subr.bf16.mxu0 %v2911_v5 }
 0x50f   :  { %599 = vmatpush1.bf16.msra.mxu0 %v2914_v7 }
 0x510   :  { %600 = vmatprep.subr.bf16.mxu0 %v2917_v10 }
 0x513   :  { %601 = vmatpush1.bf16.msra.mxu0 %v2919_v15 }
 0x514   :  { %602 = vmatprep.subr.bf16.mxu0 %v2921_v16 }
 0x517   :  { %603 = vmatpush1.bf16.msra.mxu0 %v2927_v17 }
 0x518   :  { %750 = vmatprep.subr.bf16.mxu0 %v2906_v3 }
 0x5dd   :  { %v476_v56 = vpop.f32.mrb[16].mxu0 }
 0x5de   :  { %v483_v57 = vadd.f32 %v476_v56, %v216_v54  ;;  %v478_v58 = vpop.f32.mrb[17].mxu0 }
 0x5df   :  { %v484_v59 = vadd.f32 %v478_v58, %v218_v55  ;;  %v480_v60 = vpop.f32.mrb[18].mxu0 }
 0x5e0   :  { %v481_v61 = vpop.f32.mrb[19].mxu0  ;;  %v2204_v63 = vmul.f32 -1.442695, %v483_v57 }
 0x5e1   :  { %2443 = vtanh.f32 %v484_v59  ;;  %v2205_v21 = vmul.f32 -1.442695, %v484_v59 }
 0x5e2   :  { %2445 = vpow2.f32 %v2204_v63 }
 0x5eb   :  { %v2444_v62 = vpop.eup %2443 }
 0x5ec   :  { %500 = vrot.lane.b32.xlu0 %v2444_v62, %s2753_s2  ;;  %v2446_v0 = vpop.eup %2445 }
 0x5ed   :  { %v491_v1 = vadd.f32 1.0, %v2446_v0 }
 0x5ef   :  { %2447 = vrcp.f32 %v491_v1 }
 0x5f9   :  { %v2448_v6 = vpop.eup %2447 }
 0x5fa   :  { %v498_v11 = vmul.f32 %v2448_v6, %v431_v32  ;;  %v222_v32 = vadd.f32 %v3001_v38, %v2967_v27 }
 0x65e   :  { %v501_v8 = vpop.permute.xlu0 %500 }
 0x65f   :  { %v503_v9 = vmul.f32 %v2448_v6, %v501_v8  ;;  %v226_v6 = vadd.f32 %v3003_v39, %v2963_v25  ;;  %v228_v8 = vadd.f32 %v3005_v40, %v2967_v27 }
 0x661   :  { %505 = vrot.lane.b32.xlu1 %v503_v9, %s2753_s2 }
 0x6d3   :  { %v506_v12 = vpop.permute.xlu1 %505 }
 0x6d4   :  { %v508_v13 = vadd.f32 %v506_v12, %v498_v11 }
 0x6d6   :  { %2449 = vtanh.f32 %v508_v13 }
 0x6d7   :  { %2451 = vpow2.f32 %v2205_v21 }
 0x6e0   :  { %v2450_v14 = vpop.eup %2449 }
 0x6e1   :  { %511 = vrot.lane.b32.xlu0 %v2450_v14, %s2753_s2  ;;  %v2452_v23 = vpop.eup %2451 }
 0x6e2   :  { %v492_v24 = vadd.f32 1.0, %v2452_v23 }
 0x6e4   :  { %2453 = vrcp.f32 %v492_v24 }
 0x6ee   :  { %v2454_v26 = vpop.eup %2453 }
 0x753   :  { %v512_v28 = vpop.permute.xlu0 %511 }
 0x754   :  { %v3038_v29 = vmul.f32 %v2454_v26, %v512_v28 }
 0x756   :  { %v515_v30 = vpack.c.bf16 %v3038_v29, %v3038_v29 }
 0x758   :  { %2206 = vmatmul.mubr.msk.bf16.vlgmr.msra.gmra.mrb[8].mxu1 %vm284_vm2, %v515_v30 }
 0x759   :  { %674 = vmatpush1.bf16.msra.mxu1 %v2908_v4  ;;  %705 = vmatprep.mubr.bf16.mxu1 %v2752_v2 }
 0x75a   :  { %675 = vmatprep.subr.bf16.mxu1 %v2911_v5 }
 0x75d   :  { %676 = vmatpush1.bf16.msra.mxu1 %v2914_v7 }
 0x75e   :  { %677 = vmatprep.subr.bf16.mxu1 %v2917_v10 }
 0x761   :  { %678 = vmatpush1.bf16.msra.mxu1 %v2919_v15 }
 0x762   :  { %679 = vmatprep.subr.bf16.mxu1 %v2921_v16 }
 0x765   :  { %680 = vmatpush1.bf16.msra.mxu1 %v2927_v17 }
 0x766   :  { %827 = vmatprep.subr.bf16.mxu1 %v2906_v3 }
 0x82b   :  { %v553_v33 = vpop.f32.mrb[8].mxu1 }
 0x82c   :  { %v560_v34 = vadd.f32 %v553_v33, %v220_v31  ;;  %v555_v35 = vpop.f32.mrb[9].mxu1 }
 0x82d   :  { %v561_v36 = vadd.f32 %v555_v35, %v222_v32  ;;  %v557_v42 = vpop.f32.mrb[10].mxu1 }
 0x82e   :  { %v558_v44 = vpop.f32.mrb[11].mxu1  ;;  %v2207_v50 = vmul.f32 -1.442695, %v560_v34 }
 0x82f   :  { %2455 = vtanh.f32 %v561_v36  ;;  %v2208_v59 = vmul.f32 -1.442695, %v561_v36 }
 0x830   :  { %2457 = vpow2.f32 %v2207_v50 }
 0x839   :  { %v2456_v49 = vpop.eup %2455 }
 0x83a   :  { %577 = vrot.lane.b32.xlu1 %v2456_v49, %s2753_s2  ;;  %v2458_v52 = vpop.eup %2457 }
 0x83b   :  { %v568_v3 = vadd.f32 1.0, %v2458_v52 }
 0x83d   :  { %2459 = vrcp.f32 %v568_v3  ;;  %v230_v3 = vadd.f32 %v3007_v41, %v2963_v25 }
 0x847   :  { %v2460_v54 = vpop.eup %2459 }
 0x848   :  { %v575_v38 = vmul.f32 %v2460_v54, %v508_v13 }
 0x8ac   :  { %v578_v37 = vpop.permute.xlu1 %577 }
 0x8ad   :  { %v580_v55 = vmul.f32 %v2460_v54, %v578_v37 }
 0x8af   :  { %582 = vrot.lane.b32.xlu0 %v580_v55, %s2753_s2 }
 0x921   :  { %v583_v56 = vpop.permute.xlu0 %582 }
 0x922   :  { %v585_v57 = vadd.f32 %v583_v56, %v575_v38 }
 0x924   :  { %2461 = vtanh.f32 %v585_v57 }
 0x925   :  { %2463 = vpow2.f32 %v2208_v59 }
 0x92e   :  { %v2462_v58 = vpop.eup %2461 }
 0x92f   :  { %588 = vrot.lane.b32.xlu1 %v2462_v58, %s2753_s2  ;;  %v2464_v60 = vpop.eup %2463 }
 0x930   :  { %v569_v61 = vadd.f32 1.0, %v2464_v60 }
 0x932   :  { %2465 = vrcp.f32 %v569_v61 }
 0x93c   :  { %v2466_v62 = vpop.eup %2465 }
 0x9a1   :  { %v589_v63 = vpop.permute.xlu1 %588 }
 0x9a2   :  { %v3059_v0 = vmul.f32 %v2466_v62, %v589_v63 }
 0x9a4   :  { %v592_v1 = vpack.c.bf16 %v3059_v0, %v3059_v0 }
 0x9a6   :  { %2209 = vmatmul.mubr.msk.bf16.vlgmr.msra.gmra.mrb[20].mxu0 %vm284_vm2, %v592_v1 }
 0x9a7   :  { %751 = vmatpush1.bf16.msra.mxu0 %v2908_v4  ;;  %782 = vmatprep.mubr.bf16.mxu0 %v2752_v2 }
 0x9a8   :  { %752 = vmatprep.subr.bf16.mxu0 %v2911_v5 }
 0x9ab   :  { %753 = vmatpush1.bf16.msra.mxu0 %v2914_v7 }
 0x9ac   :  { %754 = vmatprep.subr.bf16.mxu0 %v2917_v10 }
 0x9af   :  { %755 = vmatpush1.bf16.msra.mxu0 %v2919_v15 }
 0x9b0   :  { %756 = vmatprep.subr.bf16.mxu0 %v2921_v16 }
 0x9b3   :  { %757 = vmatpush1.bf16.msra.mxu0 %v2927_v17 }
 0xa79   :  { %v630_v9 = vpop.f32.mrb[20].mxu0 }
 0xa7a   :  { %v637_v11 = vadd.f32 %v630_v9, %v226_v6  ;;  %v632_v12 = vpop.f32.mrb[21].mxu0 }
 0xa7b   :  { %v638_v13 = vadd.f32 %v632_v12, %v228_v8  ;;  %v634_v14 = vpop.f32.mrb[22].mxu0  ;;  %v238_v12 = vadd.f32 %v3013_v46, %v2967_v27 }
 0xa7c   :  { %v635_v21 = vpop.f32.mrb[23].mxu0  ;;  %v2210_v24 = vmul.f32 -1.442695, %v637_v11  ;;  %v236_v11 = vadd.f32 %v3011_v45, %v2963_v25 }
 0xa7d   :  { %2467 = vtanh.f32 %v638_v13  ;;  %v2211_v35 = vmul.f32 -1.442695, %v638_v13 }
 0xa7e   :  { %2469 = vpow2.f32 %v2210_v24 }
 0xa87   :  { %v2468_v23 = vpop.eup %2467 }
 0xa88   :  { %654 = vrot.lane.b32.xlu0 %v2468_v23, %s2753_s2  ;;  %v2470_v26 = vpop.eup %2469 }
 0xa89   :  { %v645_v28 = vadd.f32 1.0, %v2470_v26 }
 0xa8b   :  { %2471 = vrcp.f32 %v645_v28 }
 0xa95   :  { %v2472_v30 = vpop.eup %2471 }
 0xa96   :  { %v652_v40 = vmul.f32 %v2472_v30, %v585_v57 }
 0xafa   :  { %v655_v39 = vpop.permute.xlu0 %654 }
 0xafb   :  { %v657_v31 = vmul.f32 %v2472_v30, %v655_v39 }
 0xafd   :  { %659 = vrot.lane.b32.xlu1 %v657_v31, %s2753_s2 }
 0xb6f   :  { %v660_v32 = vpop.permute.xlu1 %659 }
 0xb70   :  { %v662_v33 = vadd.f32 %v660_v32, %v652_v40 }
 0xb72   :  { %2473 = vtanh.f32 %v662_v33 }
 0xb73   :  { %2475 = vpow2.f32 %v2211_v35 }
 0xb7c   :  { %v2474_v34 = vpop.eup %2473 }
 0xb7d   :  { %665 = vrot.lane.b32.xlu0 %v2474_v34, %s2753_s2  ;;  %v2476_v36 = vpop.eup %2475 }
 0xb7e   :  { %v646_v42 = vadd.f32 1.0, %v2476_v36 }
 0xb80   :  { %2477 = vrcp.f32 %v646_v42 }
 0xb8a   :  { %v2478_v44 = vpop.eup %2477 }
 0xbef   :  { %v666_v49 = vpop.permute.xlu0 %665 }
 0xbf0   :  { %v3079_v50 = vmul.f32 %v2478_v44, %v666_v49 }
 0xbf2   :  { %v669_v52 = vpack.c.bf16 %v3079_v50, %v3079_v50 }
 0xbf4   :  { %2212 = vmatmul.mubr.msk.bf16.vlgmr.msra.gmra.mrb[12].mxu1 %vm284_vm2, %v669_v52 }
 0xbf5   :  { %828 = vmatpush1.bf16.msra.mxu1 %v2908_v4  ;;  %859 = vmatprep.mubr.bf16.mxu1 %v2752_v2  ;;  %v232_v4 = vadd.f32 %v3009_v43, %v2967_v27 }
 0xbf6   :  { %829 = vmatprep.subr.bf16.mxu1 %v2911_v5 }
 0xbf9   :  { %830 = vmatpush1.bf16.msra.mxu1 %v2914_v7 }
 0xbfa   :  { %831 = vmatprep.subr.bf16.mxu1 %v2917_v10 }
 0xbfd   :  { %832 = vmatpush1.bf16.msra.mxu1 %v2919_v15 }
 0xbfe   :  { %833 = vmatprep.subr.bf16.mxu1 %v2921_v16 }
 0xc01   :  { %834 = vmatpush1.bf16.msra.mxu1 %v2927_v17 }
 0xcc7   :  { %v707_v54 = vpop.f32.mrb[12].mxu1 }
 0xcc8   :  { %v714_v37 = vadd.f32 %v707_v54, %v230_v3  ;;  %v709_v55 = vpop.f32.mrb[13].mxu1  ;;  %v240_v54 = vadd.f32 %v3015_v47, %v2963_v25 }
 0xcc9   :  { %v715_v5 = vadd.f32 %v709_v55, %v232_v4  ;;  %v711_v38 = vpop.f32.mrb[14].mxu1 }
 0xcca   :  { %v712_v7 = vpop.f32.mrb[15].mxu1  ;;  %v2213_v15 = vmul.f32 -1.442695, %v714_v37  ;;  %v242_v37 = vadd.f32 %v3017_v48, %v2967_v27 }
 0xccb   :  { %2479 = vtanh.f32 %v715_v5  ;;  %v2214_v61 = vmul.f32 -1.442695, %v715_v5 }
 0xccc   :  { %2481 = vpow2.f32 %v2213_v15 }
 0xcd5   :  { %v2480_v10 = vpop.eup %2479 }
 0xcd6   :  { %731 = vrot.lane.b32.xlu1 %v2480_v10, %s2753_s2  ;;  %v2482_v16 = vpop.eup %2481 }
 0xcd7   :  { %v722_v17 = vadd.f32 1.0, %v2482_v16 }
 0xcd9   :  { %2483 = vrcp.f32 %v722_v17 }
 0xce3   :  { %v2484_v56 = vpop.eup %2483 }
 0xce4   :  { %v729_v43 = vmul.f32 %v2484_v56, %v662_v33 }
 0xd48   :  { %v732_v41 = vpop.permute.xlu1 %731 }
 0xd49   :  { %v734_v57 = vmul.f32 %v2484_v56, %v732_v41 }
 0xd4b   :  { %736 = vrot.lane.b32.xlu0 %v734_v57, %s2753_s2 }
 0xdbd   :  { %v737_v58 = vpop.permute.xlu0 %736 }
 0xdbe   :  { %v739_v59 = vadd.f32 %v737_v58, %v729_v43  ;;  %v2383_v58 = vld [vmem:[%s3523_s4] ss:$8 sps:$4 sm:$0xff]  }
 0xdc0   :  { %2485 = vtanh.f32 %v739_v59 }
 0xdc1   :  { %2487 = vpow2.f32 %v2214_v61  ;;  %v3133_v61 = vld [vmem:[#allocation11 + $0x4] ss:$8 sps:$4 sm:$0xff]  }
 0xdc2   :  { %1173 = vmatprep.subr.bf16.mxu1 %v3133_v61 }
 0xdca   :  { %v2486_v60 = vpop.eup %2485 }
 0xdcb   :  { %742 = vrot.lane.b32.xlu1 %v2486_v60, %s2753_s2  ;;  %v2488_v62 = vpop.eup %2487  ;;  %v2388_v60 = vld [vmem:[%s3523_s4 + $0x14] ss:$8 sps:$4 sm:$0xff]  }
 0xdcc   :  { %v723_v63 = vadd.f32 1.0, %v2488_v62  ;;  %v2386_v62 = vld [vmem:[%s3523_s4 + $0x10] ss:$8 sps:$4 sm:$0xff]  }
 0xdce   :  { %2489 = vrcp.f32 %v723_v63  ;;  %v3138_v63 = vld [vmem:[#allocation11] ss:$8 sps:$4 sm:$0xff]  }
 0xdd8   :  { %v2490_v1 = vpop.eup %2489 }
 0xe3d   :  { %v743_v6 = vpop.permute.xlu1 %742 }
 0xe3e   :  { %v3099_v8 = vmul.f32 %v2490_v1, %v743_v6  ;;  %v2391_v1 = vld [vmem:[%s3523_s4 + $0x24] ss:$8 sps:$4 sm:$0xff]   ;;  %v3144_v6 = vld [vmem:[#allocation11 + $0x14] ss:$8 sps:$4 sm:$0xff]  }
 0xe40   :  { %v746_v9 = vpack.c.bf16 %v3099_v8, %v3099_v8 }
 0xe42   :  { %2215 = vmatmul.mubr.msk.bf16.vlgmr.msra.gmra.mrb[24].mxu0 %vm284_vm2, %v746_v9  ;;  %v3147_v9 = vld [vmem:[#allocation11 + $0x10] ss:$8 sps:$4 sm:$0xff]  }
 0xe43   :  { %1092 = vmatprep.mubr.bf16.mxu0 %v2752_v2 }
 0xf15   :  { %v784_v13 = vpop.f32.mrb[24].mxu0 }
 0xf16   :  { %v791_v14 = vadd.f32 %v784_v13, %v236_v11  ;;  %v786_v21 = vpop.f32.mrb[25].mxu0  ;;  %v3150_v11 = vld [vmem:[#allocation11 + $0x24] ss:$8 sps:$4 sm:$0xff]  }
 0xf17   :  { %v792_v23 = vadd.f32 %v786_v21, %v238_v12  ;;  %v788_v24 = vpop.f32.mrb[26].mxu0  ;;  %v2389_v12 = vld [vmem:[%s3523_s4 + $0x20] ss:$8 sps:$4 sm:$0xff]   ;;  %v3160_v21 = vld [vmem:[#allocation11 + $0x20] ss:$8 sps:$4 sm:$0xff]  }
 0xf18   :  { %v789_v26 = vpop.f32.mrb[27].mxu0  ;;  %v2216_v30 = vmul.f32 -1.442695, %v791_v14  ;;  %v2394_v14 = vld [vmem:[%s3523_s4 + $0x34] ss:$8 sps:$4 sm:$0xff]  }
 0xf19   :  { %2491 = vtanh.f32 %v792_v23  ;;  %v2217_v36 = vmul.f32 -1.442695, %v792_v23  ;;  %v2392_v23 = vld [vmem:[%s3523_s4 + $0x30] ss:$8 sps:$4 sm:$0xff]   ;;  %v2399_v24 = vld [vmem:[%s3523_s4 + $0x44] ss:$8 sps:$4 sm:$0xff]  }
 0xf1a   :  { %2493 = vpow2.f32 %v2216_v30  ;;  %v2397_v26 = vld [vmem:[%s3523_s4 + $0x40] ss:$8 sps:$4 sm:$0xff]   ;;  %v2403_v30 = vld [vmem:[%s3523_s4 + $0x50] ss:$8 sps:$4 sm:$0xff]  }
 0xf23   :  { %v2492_v28 = vpop.eup %2491 }
 0xf24   :  { %808 = vrot.lane.b32.xlu0 %v2492_v28, %s2753_s2  ;;  %v2494_v39 = vpop.eup %2493  ;;  %v2405_v28 = vld [vmem:[%s3523_s4 + $0x54] ss:$8 sps:$4 sm:$0xff]  }
 0xf25   :  { %v799_v31 = vadd.f32 1.0, %v2494_v39  ;;  %v2411_v39 = vld [vmem:[%s3523_s4 + $0x64] ss:$8 sps:$4 sm:$0xff]  }
 0xf27   :  { %2495 = vrcp.f32 %v799_v31  ;;  %v2409_v31 = vld [vmem:[%s3523_s4 + $0x60] ss:$8 sps:$4 sm:$0xff]  }
 0xf31   :  { %v2496_v40 = vpop.eup %2495 }
 0xf32   :  { %v806_v46 = vmul.f32 %v2496_v40, %v739_v59  ;;  %v2385_v59 = vld [vmem:[%s3523_s4 + $0x4] ss:$8 sps:$4 sm:$0xff]  }
 0xf33   :  { %1060 = vmatprep.subr.bf16.mxu0 %v2385_v59 }
 0xf34   :  { %1061 = vmatpush1.bf16.msra.mxu0 %v2383_v58 }
 0xf35   :  { %1062 = vmatprep.subr.bf16.mxu0 %v2388_v60 }
 0xf38   :  { %1063 = vmatpush1.bf16.msra.mxu0 %v2386_v62 }
 0xf39   :  { %1064 = vmatprep.subr.bf16.mxu0 %v2391_v1 }
 0xf3c   :  { %1065 = vmatpush1.bf16.msra.mxu0 %v2389_v12 }
 0xf3d   :  { %1066 = vmatprep.subr.bf16.mxu0 %v2394_v14 }
 0xf40   :  { %1067 = vmatpush1.bf16.msra.mxu0 %v2392_v23 }
 0xf41   :  { %1068 = vmatprep.subr.bf16.mxu0 %v2399_v24 }
 0xf44   :  { %1069 = vmatpush1.bf16.msra.mxu0 %v2397_v26 }
 0xf45   :  { %1070 = vmatprep.subr.bf16.mxu0 %v2405_v28 }
 0xf48   :  { %1071 = vmatpush1.bf16.msra.mxu0 %v2403_v30 }
 0xf49   :  { %1072 = vmatprep.subr.bf16.mxu0 %v2411_v39 }
 0xf4c   :  { %1073 = vmatpush1.bf16.msra.mxu0 %v2409_v31 }
 0xf96   :  { %v809_v45 = vpop.permute.xlu0 %808 }
 0xf97   :  { %v811_v32 = vmul.f32 %v2496_v40, %v809_v45 }
 0xf99   :  { %813 = vrot.lane.b32.xlu1 %v811_v32, %s2753_s2 }
0x100b   :  { %v814_v33 = vpop.permute.xlu1 %813 }
0x100c   :  { %v816_v34 = vadd.f32 %v814_v33, %v806_v46  ;;  %v3185_v46 = vld [vmem:[#allocation11 + $0x34] ss:$8 sps:$4 sm:$0xff]   ;;  %v2417_v33 = vld [vmem:[%s3523_s4 + $0x74] ss:$8 sps:$4 sm:$0xff]  }
0x100d   :  { %1074 = vmatprep.subr.bf16.mxu0 %v2417_v33 }
0x100e   :  { %2497 = vtanh.f32 %v816_v34 }
0x100f   :  { %2499 = vpow2.f32 %v2217_v36 }
0x1018   :  { %v2498_v35 = vpop.eup %2497 }
0x1019   :  { %819 = vrot.lane.b32.xlu0 %v2498_v35, %s2753_s2  ;;  %v2500_v42 = vpop.eup %2499  ;;  %v2415_v35 = vld [vmem:[%s3523_s4 + $0x70] ss:$8 sps:$4 sm:$0xff]  }
0x101a   :  { %v800_v44 = vadd.f32 1.0, %v2500_v42  ;;  %1075 = vmatpush1.bf16.msra.mxu0 %v2415_v35 }
0x101b   :  { %1404 = vmatprep.subr.bf16.mxu0 %v3133_v61 }
0x101c   :  { %2501 = vrcp.f32 %v800_v44 }
0x1026   :  { %v2502_v49 = vpop.eup %2501 }
0x108b   :  { %v820_v52 = vpop.permute.xlu0 %819 }
0x108c   :  { %v3112_v3 = vmul.f32 %v2502_v49, %v820_v52 }
0x108e   :  { %v823_v4 = vpack.c.bf16 %v3112_v3, %v3112_v3 }
0x1090   :  { %2218 = vmatmul.mubr.msk.bf16.vlgmr.msra.gmra.mrb[16].mxu1 %vm284_vm2, %v823_v4 }
0x1091   :  { %1205 = vmatprep.mubr.bf16.mxu1 %v2752_v2  ;;  %1174 = vmatpush1.bf16.msra.mxu1 %v3138_v63 }
0x1092   :  { %1175 = vmatprep.subr.bf16.mxu1 %v3144_v6 }
0x1095   :  { %1176 = vmatpush1.bf16.msra.mxu1 %v3147_v9 }
0x1096   :  { %1177 = vmatprep.subr.bf16.mxu1 %v3150_v11 }
0x1099   :  { %1178 = vmatpush1.bf16.msra.mxu1 %v3160_v21 }
0x109a   :  { %1179 = vmatprep.subr.bf16.mxu1 %v3185_v46 }
0x1163   :  { %v861_v55 = vpop.f32.mrb[16].mxu1 }
0x1164   :  { %v868_v5 = vadd.f32 %v861_v55, %v240_v54  ;;  %v863_v38 = vpop.f32.mrb[17].mxu1 }
0x1165   :  { %v869_v7 = vadd.f32 %v863_v38, %v242_v37  ;;  %v865_v10 = vpop.f32.mrb[18].mxu1 }
0x1166   :  { %v866_v15 = vpop.f32.mrb[19].mxu1  ;;  %v2219_v17 = vmul.f32 -1.442695, %v868_v5 }
0x1167   :  { %2503 = vtanh.f32 %v869_v7  ;;  %v2220_v40 = vmul.f32 -1.442695, %v869_v7 }
0x1168   :  { %2505 = vpow2.f32 %v2219_v17 }
0x1171   :  { %v2504_v16 = vpop.eup %2503 }
0x1172   :  { %885 = vrot.lane.b32.xlu1 %v2504_v16, %s2753_s2  ;;  %v2506_v56 = vpop.eup %2505  ;;  %v956_v16 = vld [vmem:[#allocation9] sm:$0x3] }
0x1173   :  { %v876_v41 = vadd.f32 1.0, %v2506_v56  ;;  %v3228_v17 = vrot.slane %v956_v16, %v2956_v20  ;;  %v3232_v56 = vrot.slane %v956_v16, %v142_v22 }
0x1175   :  { %2507 = vrcp.f32 %v876_v41 }
0x117f   :  { %v2508_v57 = vpop.eup %2507 }
0x1180   :  { %v883_v27 = vmul.f32 %v2508_v57, %v816_v34  ;;  %v3190_v34 = vld [vmem:[#allocation11 + $0x30] ss:$8 sps:$4 sm:$0xff]  }
0x1181   :  { %1180 = vmatpush1.bf16.msra.mxu1 %v3190_v34 }
0x1182   :  { %1250 = vmatprep.subr.bf16.mxu1 %v3133_v61 }
0x1184   :  { %1206 = vmatmul.mubr.bf16.vlgmr.msra.gmra.mrb[20].mxu1 %v2752_v2 }
0x1185   :  { %1251 = vmatpush1.bf16.msra.mxu1 %v3138_v63  ;;  %1282 = vmatprep.mubr.bf16.mxu1 %v2752_v2 }
0x1186   :  { %1252 = vmatprep.subr.bf16.mxu1 %v3144_v6 }
0x1189   :  { %1253 = vmatpush1.bf16.msra.mxu1 %v3147_v9 }
0x118a   :  { %1254 = vmatprep.subr.bf16.mxu1 %v3150_v11 }
0x118d   :  { %1255 = vmatpush1.bf16.msra.mxu1 %v3160_v21 }
0x118e   :  { %1256 = vmatprep.subr.bf16.mxu1 %v3185_v46 }
0x1191   :  { %1257 = vmatpush1.bf16.msra.mxu1 %v3190_v34 }
0x1192   :  { %1327 = vmatprep.subr.bf16.mxu1 %v3133_v61 }
0x11e4   :  { %v886_v25 = vpop.permute.xlu1 %885 }
0x11e5   :  { %v888_v47 = vmul.f32 %v2508_v57, %v886_v25 }
0x11e7   :  { %890 = vrot.lane.b32.xlu0 %v888_v47, %s2753_s2 }
0x1257   :  { %v1207_v38 = vpop.f32.mrb[20].mxu1 }
0x1258   :  { %v1209_v7 = vpop.f32.mrb[21].mxu1 }
0x1259   :  { %v891_v48 = vpop.permute.xlu0 %890  ;;  %v1211_v10 = vpop.f32.mrb[22].mxu1 }
0x125a   :  { %v893_v43 = vadd.f32 %v891_v48, %v883_v27  ;;  %v1212_v15 = vpop.f32.mrb[23].mxu1 }
0x125c   :  { %2509 = vtanh.f32 %v893_v43 }
0x125d   :  { %2511 = vpow2.f32 %v2220_v40 }
0x1266   :  { %v2510_v13 = vpop.eup %2509 }
0x1267   :  { %896 = vrot.lane.b32.xlu1 %v2510_v13, %s2753_s2  ;;  %v2512_v45 = vpop.eup %2511 }
0x1268   :  { %v877_v32 = vadd.f32 1.0, %v2512_v45 }
0x126a   :  { %2513 = vrcp.f32 %v877_v32 }
0x1274   :  { %v2514_v36 = vpop.eup %2513 }
0x12d9   :  { %v897_v42 = vpop.permute.xlu1 %896 }
0x12da   :  { %v3203_v44 = vmul.f32 %v2514_v36, %v897_v42 }
0x12dc   :  { %v2347_v49 = vpack.i.bf16 %v3112_v3, %v3203_v44 }
0x12de   :  { %2348 = vrot.lane.b32.xlu0 %v2347_v49, %s2753_s2 }
0x1350   :  { %v2349_v52 = vpop.permute.xlu0 %2348 }
0x1351   :  { %v2351_v4 = vunpack.i.h.bf16 %v2349_v52  ;;  %v2350_v54 = vunpack.i.l.bf16 %v2349_v52 }
0x1353   :  { %v909_v37 = vsel %vm284_vm2, %v3019_v51, %v2351_v4  ;;  %v904_v55 = vsel %vm284_vm2, %v2974_v53, %v2350_v54 }
0x1354   :  { %v965_v5 = vpack.c.bf16 %v909_v37, %v904_v55  ;;  %v2352_v37 = vpack.i.bf16 %v3079_v50, %v3099_v8 }
0x1356   :  { %1093 = vmatmul.mubr.bf16.vlgmr.msra.gmra.mrb[28].mxu0 %v965_v5 }
0x1357   :  { %1102 = vmatprep.mubr.bf16.mxu0 %v2752_v2  ;;  %1405 = vmatpush1.bf16.msra.mxu0 %v3138_v63 }
0x1358   :  { %1406 = vmatprep.subr.bf16.mxu0 %v3144_v6 }
0x135b   :  { %1407 = vmatpush1.bf16.msra.mxu0 %v3147_v9 }
0x135c   :  { %1408 = vmatprep.subr.bf16.mxu0 %v3150_v11 }
0x135f   :  { %1409 = vmatpush1.bf16.msra.mxu0 %v3160_v21 }
0x1360   :  { %1410 = vmatprep.subr.bf16.mxu0 %v3185_v46 }
0x1363   :  { %1411 = vmatpush1.bf16.msra.mxu0 %v3190_v34 }
0x1364   :  { %1558 = vmatprep.subr.bf16.mxu0 %v3133_v61 }
0x1429   :  { %v1094_v41 = vpop.f32.mrb[28].mxu0 }
0x142a   :  { %v1095_v57 = vadd.f32 %v1094_v41, %v3228_v17  ;;  %v1096_v25 = vpop.f32.mrb[29].mxu0 }
0x142b   :  { %v1097_v47 = vadd.f32 %v1096_v25, %v3232_v56  ;;  %v1098_v27 = vpop.f32.mrb[30].mxu0 }
0x142c   :  { %v1214_v48 = vadd.f32 %v1207_v38, %v1095_v57  ;;  %v1100_v43 = vpop.f32.mrb[31].mxu0  ;;  %v1099_v32 = vadd.f32 %v1098_v27, %v3228_v17 }
0x142d   :  { %v1215_v58 = vadd.f32 %v1209_v7, %v1097_v47  ;;  %v1101_v33 = vadd.f32 %v1100_v43, %v3232_v56 }
0x142e   :  { %v2245_v60 = vmul.f32 -1.442695, %v1214_v48 }
0x142f   :  { %2515 = vtanh.f32 %v1215_v58  ;;  %v2246_v26 = vmul.f32 -1.442695, %v1215_v58 }
0x1430   :  { %2517 = vpow2.f32 %v2245_v60 }
0x1439   :  { %v2516_v59 = vpop.eup %2515 }
0x143a   :  { %1231 = vrot.lane.b32.xlu1 %v2516_v59, %s2753_s2  ;;  %v2518_v62 = vpop.eup %2517 }
0x143b   :  { %v1222_v19 = vadd.f32 1.0, %v2518_v62 }
0x143d   :  { %2519 = vrcp.f32 %v1222_v19 }
0x1447   :  { %v2520_v22 = vpop.eup %2519 }
0x1448   :  { %v1229_v13 = vmul.f32 0.0, %v2520_v22 }
0x14ac   :  { %v1232_v1 = vpop.permute.xlu1 %1231 }
0x14ad   :  { %v1234_v12 = vmul.f32 %v2520_v22, %v1232_v1 }
0x14af   :  { %1236 = vrot.lane.b32.xlu0 %v1234_v12, %s2753_s2 }
0x1521   :  { %v1237_v14 = vpop.permute.xlu0 %1236 }
0x1522   :  { %v1239_v23 = vadd.f32 %v1237_v14, %v1229_v13 }
0x1524   :  { %2521 = vtanh.f32 %v1239_v23 }
0x1525   :  { %2523 = vpow2.f32 %v2246_v26 }
0x152e   :  { %v2522_v24 = vpop.eup %2521 }
0x152f   :  { %1242 = vrot.lane.b32.xlu1 %v2522_v24, %s2753_s2  ;;  %v2524_v28 = vpop.eup %2523 }
0x1530   :  { %v1223_v30 = vadd.f32 1.0, %v2524_v28 }
0x1532   :  { %2525 = vrcp.f32 %v1223_v30 }
0x153c   :  { %v2526_v39 = vpop.eup %2525 }
0x15a1   :  { %v1243_v31 = vpop.permute.xlu1 %1242 }
0x15a2   :  { %v3239_v40 = vmul.f32 %v2526_v39, %v1243_v31 }
0x15a4   :  { %v1246_v45 = vpack.c.bf16 %v3239_v40, %v3239_v40 }
0x15a6   :  { %2247 = vmatmul.mubr.msk.bf16.vlgmr.msra.gmra.mrb[24].mxu1 %vm284_vm2, %v1246_v45 }
0x15a7   :  { %1328 = vmatpush1.bf16.msra.mxu1 %v3138_v63  ;;  %1359 = vmatprep.mubr.bf16.mxu1 %v2752_v2 }
0x15a8   :  { %1329 = vmatprep.subr.bf16.mxu1 %v3144_v6 }
0x15ab   :  { %1330 = vmatpush1.bf16.msra.mxu1 %v3147_v9 }
0x15ac   :  { %1331 = vmatprep.subr.bf16.mxu1 %v3150_v11 }
0x15af   :  { %1332 = vmatpush1.bf16.msra.mxu1 %v3160_v21 }
0x15b0   :  { %1333 = vmatprep.subr.bf16.mxu1 %v3185_v46 }
0x15b3   :  { %1334 = vmatpush1.bf16.msra.mxu1 %v3190_v34 }
0x15b4   :  { %1481 = vmatprep.subr.bf16.mxu1 %v3133_v61 }
0x1679   :  { %v1284_v35 = vpop.f32.mrb[24].mxu1 }
0x167a   :  { %v1291_v36 = vadd.f32 %v1284_v35, %v1099_v32  ;;  %v1286_v42 = vpop.f32.mrb[25].mxu1 }
0x167b   :  { %v1292_v49 = vadd.f32 %v1286_v42, %v1101_v33  ;;  %v1288_v52 = vpop.f32.mrb[26].mxu1  ;;  %v2357_v42 = vpack.i.bf16 %v3038_v29, %v3059_v0 }
0x167c   :  { %v1289_v4 = vpop.f32.mrb[27].mxu1  ;;  %v2248_v55 = vmul.f32 -1.442695, %v1291_v36 }
0x167d   :  { %2527 = vtanh.f32 %v1292_v49  ;;  %v2249_v60 = vmul.f32 -1.442695, %v1292_v49 }
0x167e   :  { %2529 = vpow2.f32 %v2248_v55 }
0x1687   :  { %v2528_v54 = vpop.eup %2527 }
0x1688   :  { %1308 = vrot.lane.b32.xlu0 %v2528_v54, %s2753_s2  ;;  %v2530_v5 = vpop.eup %2529 }
0x1689   :  { %v1299_v38 = vadd.f32 1.0, %v2530_v5 }
0x168b   :  { %2531 = vrcp.f32 %v1299_v38 }
0x168c   :  { %2353 = vrot.lane.b32.xlu0 %v2352_v37, %s2753_s2 }
0x1695   :  { %v2532_v7 = vpop.eup %2531 }
0x1696   :  { %v1306_v48 = vmul.f32 %v2532_v7, %v1239_v23 }
0x16fa   :  { %v1309_v10 = vpop.permute.xlu0 %1308 }
0x16fb   :  { %v1311_v15 = vmul.f32 %v2532_v7, %v1309_v10  ;;  %v2362_v10 = vpack.i.bf16 %v2974_v53, %v3019_v51 }
0x16fd   :  { %1313 = vrot.lane.b32.xlu1 %v1311_v15, %s2753_s2 }
0x16fe   :  { %v2354_v16 = vpop.permute.xlu0 %2353 }
0x16ff   :  { %v2356_v41 = vunpack.i.h.bf16 %v2354_v16  ;;  %v2355_v57 = vunpack.i.l.bf16 %v2354_v16 }
0x1701   :  { %v914_v25 = vsel %vm284_vm2, %v3038_v29, %v2355_v57  ;;  %v919_v47 = vsel %vm284_vm2, %v3059_v0, %v2356_v41 }
0x1702   :  { %v966_v27 = vpack.c.bf16 %v919_v47, %v914_v25 }
0x1704   :  { %1103 = vmatmul.mubr.bf16.gmra.mrb[32].mxu0 %v966_v27 }
0x1705   :  { %1112 = vmatprep.mubr.bf16.mxu0 %v2752_v2 }
0x176f   :  { %v1314_v43 = vpop.permute.xlu1 %1313 }
0x1770   :  { %v1316_v58 = vadd.f32 %v1314_v43, %v1306_v48 }
0x1772   :  { %2533 = vtanh.f32 %v1316_v58 }
0x1773   :  { %2535 = vpow2.f32 %v2249_v60 }
0x177c   :  { %v2534_v59 = vpop.eup %2533 }
0x177d   :  { %1319 = vrot.lane.b32.xlu1 %v2534_v59, %s2753_s2  ;;  %v2536_v12 = vpop.eup %2535 }
0x177e   :  { %v1300_v13 = vadd.f32 1.0, %v2536_v12 }
0x1780   :  { %2537 = vrcp.f32 %v1300_v13 }
0x178a   :  { %v2538_v14 = vpop.eup %2537 }
0x17d7   :  { %v1104_v62 = vpop.f32.mrb[32].mxu0 }
0x17d8   :  { %v1106_v19 = vpop.f32.mrb[33].mxu0  ;;  %v1105_v28 = vadd.f32 %v1104_v62, %v3228_v17 }
0x17d9   :  { %v3266_v22 = vpop.f32.mrb[34].mxu0  ;;  %v1107_v30 = vadd.f32 %v1106_v19, %v3232_v56 }
0x17da   :  { %v3268_v1 = vpop.f32.mrb[35].mxu0 }
0x17ef   :  { %v1320_v24 = vpop.permute.xlu1 %1319 }
0x17f0   :  { %v3270_v23 = vmul.f32 %v2538_v14, %v1320_v24 }
0x17f2   :  { %v1323_v26 = vpack.c.bf16 %v3270_v23, %v3270_v23 }
0x17f4   :  { %2250 = vmatmul.mubr.msk.bf16.vlgmr.msra.gmra.mrb[28].mxu1 %vm284_vm2, %v1323_v26 }
0x17f5   :  { %1482 = vmatpush1.bf16.msra.mxu1 %v3138_v63  ;;  %1513 = vmatprep.mubr.bf16.mxu1 %v2752_v2 }
0x17f6   :  { %1483 = vmatprep.subr.bf16.mxu1 %v3144_v6 }
0x17f9   :  { %1484 = vmatpush1.bf16.msra.mxu1 %v3147_v9 }
0x17fa   :  { %1485 = vmatprep.subr.bf16.mxu1 %v3150_v11 }
0x17fd   :  { %1486 = vmatpush1.bf16.msra.mxu1 %v3160_v21 }
0x17fe   :  { %1487 = vmatprep.subr.bf16.mxu1 %v3185_v46 }
0x1801   :  { %1488 = vmatpush1.bf16.msra.mxu1 %v3190_v34 }
0x1802   :  { %1635 = vmatprep.subr.bf16.mxu1 %v3133_v61 }
0x18c7   :  { %v1361_v39 = vpop.f32.mrb[28].mxu1 }
0x18c8   :  { %v1368_v31 = vadd.f32 %v1361_v39, %v1105_v28  ;;  %v1363_v45 = vpop.f32.mrb[29].mxu1  ;;  %v1111_v39 = vadd.f32 %v3268_v1, %v3232_v56 }
0x18c9   :  { %v1369_v32 = vadd.f32 %v1363_v45, %v1107_v30  ;;  %v1365_v33 = vpop.f32.mrb[30].mxu1  ;;  %v1109_v30 = vadd.f32 %v3266_v22, %v3228_v17 }
0x18ca   :  { %v1366_v35 = vpop.f32.mrb[31].mxu1  ;;  %v2251_v49 = vmul.f32 -1.442695, %v1368_v31 }
0x18cb   :  { %2539 = vtanh.f32 %v1369_v32  ;;  %v2252_v48 = vmul.f32 -1.442695, %v1369_v32 }
0x18cc   :  { %2541 = vpow2.f32 %v2251_v49 }
0x18d5   :  { %v2540_v36 = vpop.eup %2539 }
0x18d6   :  { %1385 = vrot.lane.b32.xlu0 %v2540_v36, %s2753_s2  ;;  %v2542_v52 = vpop.eup %2541 }
0x18d7   :  { %v1376_v4 = vadd.f32 1.0, %v2542_v52 }
0x18d9   :  { %2543 = vrcp.f32 %v1376_v4 }
0x18da   :  { %2358 = vrot.lane.b32.xlu0 %v2357_v42, %s2753_s2 }
0x18e3   :  { %v2544_v54 = vpop.eup %2543 }
0x18e4   :  { %v1383_v16 = vmul.f32 %v2544_v54, %v1316_v58 }
0x1948   :  { %v1386_v37 = vpop.permute.xlu0 %1385 }
0x1949   :  { %v1388_v55 = vmul.f32 %v2544_v54, %v1386_v37 }
0x194b   :  { %1390 = vrot.lane.b32.xlu1 %v1388_v55, %s2753_s2 }
0x194c   :  { %v2359_v5 = vpop.permute.xlu0 %2358 }
0x194d   :  { %v2361_v38 = vunpack.i.h.bf16 %v2359_v5  ;;  %v2360_v7 = vunpack.i.l.bf16 %v2359_v5 }
0x194f   :  { %2363 = vrot.lane.b32.xlu1 %v2362_v10, %s2753_s2  ;;  %v924_v29 = vsel %vm284_vm2, %v3079_v50, %v2360_v7  ;;  %v929_v0 = vsel %vm284_vm2, %v3099_v8, %v2361_v38 }
0x1950   :  { %v967_v15 = vpack.c.bf16 %v929_v0, %v924_v29 }
0x1952   :  { %1113 = vmatmul.mubr.bf16.gmra.mrb[36].mxu0 %v967_v15 }
0x1953   :  { %1122 = vmatprep.mubr.bf16.mxu0 %v2752_v2 }
0x19bd   :  { %v1391_v41 = vpop.permute.xlu1 %1390 }
0x19be   :  { %v1393_v57 = vadd.f32 %v1391_v41, %v1383_v16 }
0x19c0   :  { %2545 = vtanh.f32 %v1393_v57 }
0x19c1   :  { %v2364_v25 = vpop.permute.xlu1 %2363  ;;  %2547 = vpow2.f32 %v2252_v48 }
0x19c2   :  { %v2366_v47 = vunpack.i.h.bf16 %v2364_v25  ;;  %v2365_v27 = vunpack.i.l.bf16 %v2364_v25 }
0x19c4   :  { %v934_v53 = vsel %vm284_vm2, %v3112_v3, %v2365_v27  ;;  %v939_v51 = vsel %vm284_vm2, %v3203_v44, %v2366_v47 }
0x19c5   :  { %v968_v50 = vpack.c.bf16 %v939_v51, %v934_v53 }
0x19c7   :  { %1123 = vmatmul.mubr.bf16.gmra.mrb[40].mxu0 %v968_v50 }
0x19c8   :  { %1436 = vmatprep.mubr.bf16.mxu0 %v2752_v2 }
0x19ca   :  { %v2546_v8 = vpop.eup %2545 }
0x19cb   :  { %1396 = vrot.lane.b32.xlu0 %v2546_v8, %s2753_s2  ;;  %v2548_v3 = vpop.eup %2547 }
0x19cc   :  { %v1377_v62 = vadd.f32 1.0, %v2548_v3 }
0x19ce   :  { %2549 = vrcp.f32 %v1377_v62 }
0x19d8   :  { %v2550_v44 = vpop.eup %2549 }
0x1a25   :  { %v3305_v43 = vpop.f32.mrb[36].mxu0 }
0x1a26   :  { %v3307_v58 = vpop.f32.mrb[37].mxu0  ;;  %v1115_v41 = vadd.f32 %v3305_v43, %v3228_v17 }
0x1a27   :  { %v3309_v59 = vpop.f32.mrb[38].mxu0 }
0x1a28   :  { %v3311_v60 = vpop.f32.mrb[39].mxu0 }
0x1a3d   :  { %v1397_v19 = vpop.permute.xlu0 %1396 }
0x1a3e   :  { %v3313_v12 = vmul.f32 %v2550_v44, %v1397_v19 }
0x1a40   :  { %v1400_v13 = vpack.c.bf16 %v3313_v12, %v3313_v12 }
0x1a42   :  { %2253 = vmatmul.mubr.msk.bf16.vlgmr.msra.gmra.mrb[44].mxu0 %vm284_vm2, %v1400_v13 }
0x1a43   :  { %1559 = vmatpush1.bf16.msra.mxu0 %v3138_v63  ;;  %1590 = vmatprep.mubr.bf16.mxu0 %v2752_v2 }
0x1a44   :  { %1560 = vmatprep.subr.bf16.mxu0 %v3144_v6 }
0x1a47   :  { %1561 = vmatpush1.bf16.msra.mxu0 %v3147_v9 }
0x1a48   :  { %1562 = vmatprep.subr.bf16.mxu0 %v3150_v11 }
0x1a4b   :  { %1563 = vmatpush1.bf16.msra.mxu0 %v3160_v21 }
0x1a4c   :  { %1564 = vmatprep.subr.bf16.mxu0 %v3185_v46 }
0x1a4f   :  { %1565 = vmatpush1.bf16.msra.mxu0 %v3190_v34 }
0x1a50   :  { %1712 = vmatprep.subr.bf16.mxu0 %v3133_v61 }
0x1a9a   :  { %v3327_v14 = vpop.f32.mrb[40].mxu0 }
0x1a9b   :  { %v3329_v24 = vpop.f32.mrb[41].mxu0 }
0x1a9c   :  { %v3331_v26 = vpop.f32.mrb[42].mxu0 }
0x1a9d   :  { %v3333_v28 = vpop.f32.mrb[43].mxu0 }
0x1b15   :  { %v1438_v31 = vpop.f32.mrb[44].mxu0 }
0x1b16   :  { %v1445_v45 = vadd.f32 %v1438_v31, %v1109_v30  ;;  %v1440_v32 = vpop.f32.mrb[45].mxu0 }
0x1b17   :  { %v1446_v33 = vadd.f32 %v1440_v32, %v1111_v39  ;;  %v1442_v35 = vpop.f32.mrb[46].mxu0 }
0x1b18   :  { %v1443_v61 = vpop.f32.mrb[47].mxu0  ;;  %v2254_v42 = vmul.f32 -1.442695, %v1445_v45 }
0x1b19   :  { %2551 = vtanh.f32 %v1446_v33  ;;  %v2255_v38 = vmul.f32 -1.442695, %v1446_v33 }
0x1b1a   :  { %2553 = vpow2.f32 %v2254_v42  ;;  %v1119_v42 = vadd.f32 %v3309_v59, %v3228_v17 }
0x1b23   :  { %v2552_v36 = vpop.eup %2551 }
0x1b24   :  { %1462 = vrot.lane.b32.xlu1 %v2552_v36, %s2753_s2  ;;  %v2554_v49 = vpop.eup %2553 }
0x1b25   :  { %v1453_v52 = vadd.f32 1.0, %v2554_v49 }
0x1b27   :  { %2555 = vrcp.f32 %v1453_v52 }
0x1b31   :  { %v2556_v4 = vpop.eup %2555 }
0x1b32   :  { %v1460_v1 = vmul.f32 %v2556_v4, %v1393_v57  ;;  %v1117_v57 = vadd.f32 %v3307_v58, %v3232_v56 }
0x1b96   :  { %v1463_v22 = vpop.permute.xlu1 %1462 }
0x1b97   :  { %v1465_v54 = vmul.f32 %v2556_v4, %v1463_v22 }
0x1b99   :  { %1467 = vrot.lane.b32.xlu0 %v1465_v54, %s2753_s2 }
0x1c0b   :  { %v1468_v37 = vpop.permute.xlu0 %1467 }
0x1c0c   :  { %v1470_v55 = vadd.f32 %v1468_v37, %v1460_v1 }
0x1c0e   :  { %2557 = vtanh.f32 %v1470_v55 }
0x1c0f   :  { %2559 = vpow2.f32 %v2255_v38 }
0x1c18   :  { %v2558_v5 = vpop.eup %2557 }
0x1c19   :  { %1473 = vrot.lane.b32.xlu1 %v2558_v5, %s2753_s2  ;;  %v2560_v7 = vpop.eup %2559 }
0x1c1a   :  { %v1454_v10 = vadd.f32 1.0, %v2560_v7 }
0x1c1c   :  { %2561 = vrcp.f32 %v1454_v10 }
0x1c26   :  { %v2562_v29 = vpop.eup %2561 }
0x1c8b   :  { %v1474_v0 = vpop.permute.xlu1 %1473 }
0x1c8c   :  { %v3342_v15 = vmul.f32 %v2562_v29, %v1474_v0 }
0x1c8e   :  { %v1477_v16 = vpack.c.bf16 %v3342_v15, %v3342_v15 }
0x1c90   :  { %2256 = vmatmul.mubr.msk.bf16.vlgmr.msra.gmra.mrb[32].mxu1 %vm284_vm2, %v1477_v16 }
0x1c91   :  { %1636 = vmatpush1.bf16.msra.mxu1 %v3138_v63  ;;  %1667 = vmatprep.mubr.bf16.mxu1 %v2752_v2 }
0x1c92   :  { %1637 = vmatprep.subr.bf16.mxu1 %v3144_v6 }
0x1c95   :  { %1638 = vmatpush1.bf16.msra.mxu1 %v3147_v9 }
0x1c96   :  { %1639 = vmatprep.subr.bf16.mxu1 %v3150_v11 }
0x1c99   :  { %1640 = vmatpush1.bf16.msra.mxu1 %v3160_v21 }
0x1c9a   :  { %1641 = vmatprep.subr.bf16.mxu1 %v3185_v46 }
0x1c9d   :  { %1642 = vmatpush1.bf16.msra.mxu1 %v3190_v34 }
0x1d63   :  { %v1515_v25 = vpop.f32.mrb[32].mxu1 }
0x1d64   :  { %v1522_v47 = vadd.f32 %v1515_v25, %v1115_v41  ;;  %v1517_v27 = vpop.f32.mrb[33].mxu1  ;;  %v1125_v41 = vadd.f32 %v3327_v14, %v3228_v17 }
0x1d65   :  { %v1523_v53 = vadd.f32 %v1517_v27, %v1117_v57  ;;  %v1519_v51 = vpop.f32.mrb[34].mxu1  ;;  %v1127_v57 = vadd.f32 %v3329_v24, %v3232_v56 }
0x1d66   :  { %v1520_v50 = vpop.f32.mrb[35].mxu1  ;;  %v2257_v48 = vmul.f32 -1.442695, %v1522_v47 }
0x1d67   :  { %2563 = vtanh.f32 %v1523_v53  ;;  %v2258_v31 = vmul.f32 -1.442695, %v1523_v53 }
0x1d68   :  { %2565 = vpow2.f32 %v2257_v48 }
0x1d71   :  { %v2564_v8 = vpop.eup %2563 }
0x1d72   :  { %1539 = vrot.lane.b32.xlu0 %v2564_v8, %s2753_s2  ;;  %v2566_v3 = vpop.eup %2565 }
0x1d73   :  { %v1530_v62 = vadd.f32 1.0, %v2566_v3 }
0x1d75   :  { %2567 = vrcp.f32 %v1530_v62 }
0x1d7f   :  { %v2568_v44 = vpop.eup %2567 }
0x1d80   :  { %v1537_v58 = vmul.f32 %v2568_v44, %v1470_v55 }
0x1de4   :  { %v1540_v43 = vpop.permute.xlu0 %1539 }
0x1de5   :  { %v1542_v19 = vmul.f32 %v2568_v44, %v1540_v43 }
0x1de7   :  { %1544 = vrot.lane.b32.xlu1 %v1542_v19, %s2753_s2 }
0x1e59   :  { %v1545_v13 = vpop.permute.xlu1 %1544 }
0x1e5a   :  { %v1547_v30 = vadd.f32 %v1545_v13, %v1537_v58 }
0x1e5c   :  { %2569 = vtanh.f32 %v1547_v30 }
0x1e5d   :  { %2571 = vpow2.f32 %v2258_v31 }
0x1e66   :  { %v2570_v39 = vpop.eup %2569 }
0x1e67   :  { %1550 = vrot.lane.b32.xlu0 %v2570_v39, %s2753_s2  ;;  %v2572_v45 = vpop.eup %2571 }
0x1e68   :  { %v1531_v32 = vadd.f32 1.0, %v2572_v45 }
0x1e6a   :  { %2573 = vrcp.f32 %v1531_v32 }
0x1e74   :  { %v2574_v33 = vpop.eup %2573 }
0x1ed9   :  { %v1551_v35 = vpop.permute.xlu0 %1550 }
0x1eda   :  { %v3362_v61 = vmul.f32 %v2574_v33, %v1551_v35 }
0x1edc   :  { %v1554_v36 = vpack.c.bf16 %v3362_v61, %v3362_v61 }
0x1ede   :  { %2259 = vmatmul.mubr.msk.bf16.vlgmr.msra.gmra.mrb[48].mxu0 %vm284_vm2, %v1554_v36  ;;  %v1129_v36 = vadd.f32 %v3331_v26, %v3228_v17 }
0x1edf   :  { %1713 = vmatpush1.bf16.msra.mxu0 %v3138_v63  ;;  %1744 = vmatprep.mubr.bf16.mxu0 %v2752_v2  ;;  %v1121_v63 = vadd.f32 %v3311_v60, %v3232_v56 }
0x1ee0   :  { %1714 = vmatprep.subr.bf16.mxu0 %v3144_v6 }
0x1ee3   :  { %1715 = vmatpush1.bf16.msra.mxu0 %v3147_v9 }
0x1ee4   :  { %1716 = vmatprep.subr.bf16.mxu0 %v3150_v11 }
0x1ee7   :  { %1717 = vmatpush1.bf16.msra.mxu0 %v3160_v21 }
0x1ee8   :  { %1718 = vmatprep.subr.bf16.mxu0 %v3185_v46 }
0x1eeb   :  { %1719 = vmatpush1.bf16.msra.mxu0 %v3190_v34 }
0x1fb1   :  { %v1592_v49 = vpop.f32.mrb[48].mxu0 }
0x1fb2   :  { %v1599_v2 = vadd.f32 %v1592_v49, %v1119_v42  ;;  %v1594_v52 = vpop.f32.mrb[49].mxu0  ;;  %v1131_v42 = vadd.f32 %v3333_v28, %v3232_v56  ;;  %v3406_v56 = vand.u32 127, %v136_v18  ;;  %v1785_v28 = vld [vmem:[%s3526_s7] sm:$0x1] }
0x1fb3   :  { %v1600_v6 = vadd.f32 %v1594_v52, %v1121_v63  ;;  %v1596_v4 = vpop.f32.mrb[50].mxu0 }
0x1fb4   :  { %v1597_v9 = vpop.f32.mrb[51].mxu0  ;;  %v2260_v21 = vmul.f32 -1.442695, %v1599_v2  ;;  %vm1789_vm3 = vcmp.lt.s32.totalorder %v3406_v56, 32  ;;  %vm1791_vm4 = vcmp.ge.s32.totalorder %v3406_v56, 32 }
0x1fb5   :  { %2575 = vtanh.f32 %v1600_v6  ;;  %v2261_v5 = vmul.f32 -1.442695, %v1600_v6 }
0x1fb6   :  { %2577 = vpow2.f32 %v2260_v21 }
0x1fbf   :  { %v2576_v11 = vpop.eup %2575 }
0x1fc0   :  { %1616 = vrot.lane.b32.xlu1 %v2576_v11, %s2753_s2  ;;  %v2578_v46 = vpop.eup %2577 }
0x1fc1   :  { %v1607_v34 = vadd.f32 1.0, %v2578_v46 }
0x1fc3   :  { %2579 = vrcp.f32 %v1607_v34 }
0x1fcd   :  { %v2580_v22 = vpop.eup %2579 }
0x1fce   :  { %v1614_v60 = vmul.f32 %v2580_v22, %v1547_v30 }
0x2032   :  { %v1617_v59 = vpop.permute.xlu1 %1616 }
0x2033   :  { %v1619_v54 = vmul.f32 %v2580_v22, %v1617_v59  ;;  %v1790_v22 = vsel %vm1789_vm3, %v1785_v28, 0.0 }
0x2034   :  { %v1796_v59 = vrot.slane %v1790_v22, %v2956_v20  ;;  %v2268_v22 = vld [vmem:[#allocation2] ss:$0 sm:$0xff] }
0x2035   :  { %1621 = vrot.lane.b32.xlu0 %v1619_v54, %s2753_s2  ;;  %v1792_v54 = vsel %vm1791_vm4, %v1785_v28, 0.0 }
0x20a7   :  { %v1622_v1 = vpop.permute.xlu0 %1621 }
0x20a8   :  { %v1624_v37 = vadd.f32 %v1622_v1, %v1614_v60  ;;  %v1797_v60 = vmul.f32 %v1796_v59, %v3239_v40  ;;  %v1832_v1 = vrot.slane %v1792_v54, %v2956_v20 }
0x20aa   :  { %2581 = vtanh.f32 %v1624_v37  ;;  %v1798_v18 = vsel %vm284_vm2, %v1797_v60, 0.0 }
0x20ab   :  { %2583 = vpow2.f32 %v2261_v5 }
0x20b4   :  { %v2582_v55 = vpop.eup %2581 }
0x20b5   :  { %1627 = vrot.lane.b32.xlu1 %v2582_v55, %s2753_s2  ;;  %v2584_v38 = vpop.eup %2583 }
0x20b6   :  { %v1608_v7 = vadd.f32 1.0, %v2584_v38 }
0x20b8   :  { %2585 = vrcp.f32 %v1608_v7  ;;  %v1849_v7 = vmul.f32 %v1832_v1, %v3362_v61 }
0x20c2   :  { %v2586_v10 = vpop.eup %2585 }
0x2127   :  { %v1628_v29 = vpop.permute.xlu1 %1627 }
0x2128   :  { %v3382_v0 = vmul.f32 %v2586_v10, %v1628_v29  ;;  %v1850_v10 = vsel %vm284_vm2, %v1849_v7, 0.0  ;;  %v1845_v29 = vmul.f32 %v1832_v1, %v3342_v15 }
0x212a   :  { %v1631_v16 = vpack.c.bf16 %v3382_v0, %v3382_v0  ;;  %v1853_v5 = vmul.f32 %v1832_v1, %v3382_v0  ;;  %v1846_v20 = vsel %vm284_vm2, %v1845_v29, 0.0 }
0x212c   :  { %2262 = vmatmul.mubr.msk.bf16.vlgmr.msra.gmra.mrb[36].mxu1 %vm284_vm2, %v1631_v16  ;;  %v1854_v38 = vsel %vm284_vm2, %v1853_v5, 0.0 }
0x21ff   :  { %v1669_v25 = vpop.f32.mrb[36].mxu1 }
0x2200   :  { %v1676_v47 = vadd.f32 %v1669_v25, %v1125_v41  ;;  %v1671_v27 = vpop.f32.mrb[37].mxu1 }
0x2201   :  { %v1677_v53 = vadd.f32 %v1671_v27, %v1127_v57  ;;  %v1673_v51 = vpop.f32.mrb[38].mxu1 }
0x2202   :  { %v1674_v50 = vpop.f32.mrb[39].mxu1  ;;  %v2263_v48 = vmul.f32 -1.442695, %v1676_v47  ;;  %v1801_v47 = vmul.f32 %v1796_v59, %v3270_v23 }
0x2203   :  { %2587 = vtanh.f32 %v1677_v53  ;;  %v2264_v30 = vmul.f32 -1.442695, %v1677_v53  ;;  %v1805_v53 = vmul.f32 %v1796_v59, %v3313_v12  ;;  %v1809_v50 = vmul.f32 %v1796_v59, %v3342_v15 }
0x2204   :  { %2589 = vpow2.f32 %v2263_v48  ;;  %v1802_v27 = vsel %vm284_vm2, %v1801_v47, 0.0  ;;  %v1813_v48 = vmul.f32 %v1796_v59, %v3362_v61 }
0x2205   :  { %v1806_v51 = vsel %vm284_vm2, %v1805_v53, 0.0 }
0x220d   :  { %v2588_v8 = vpop.eup %2587 }
0x220e   :  { %1693 = vrot.lane.b32.xlu0 %v2588_v8, %s2753_s2  ;;  %v2590_v3 = vpop.eup %2589  ;;  %v1810_v8 = vsel %vm284_vm2, %v1809_v50, 0.0 }
0x220f   :  { %v1684_v62 = vadd.f32 1.0, %v2590_v3  ;;  %v1814_v3 = vsel %vm284_vm2, %v1813_v48, 0.0 }
0x2211   :  { %2591 = vrcp.f32 %v1684_v62  ;;  %v1817_v62 = vmul.f32 %v1796_v59, %v3382_v0 }
0x221b   :  { %v2592_v44 = vpop.eup %2591 }
0x221c   :  { %v1691_v24 = vmul.f32 %v2592_v44, %v1624_v37 }
0x2280   :  { %v1694_v14 = vpop.permute.xlu0 %1693 }
0x2281   :  { %v1696_v43 = vmul.f32 %v2592_v44, %v1694_v14  ;;  %v1818_v44 = vsel %vm284_vm2, %v1817_v62, 0.0 }
0x2283   :  { %1698 = vrot.lane.b32.xlu1 %v1696_v43, %s2753_s2 }
0x22f5   :  { %v1699_v19 = vpop.permute.xlu1 %1698 }
0x22f6   :  { %v1701_v58 = vadd.f32 %v1699_v19, %v1691_v24 }
0x22f8   :  { %2593 = vtanh.f32 %v1701_v58 }
0x22f9   :  { %2595 = vpow2.f32 %v2264_v30 }
0x2302   :  { %v2594_v13 = vpop.eup %2593 }
0x2303   :  { %1704 = vrot.lane.b32.xlu0 %v2594_v13, %s2753_s2  ;;  %v2596_v39 = vpop.eup %2595 }
0x2304   :  { %v1685_v31 = vadd.f32 1.0, %v2596_v39 }
0x2306   :  { %2597 = vrcp.f32 %v1685_v31 }
0x2310   :  { %v2598_v45 = vpop.eup %2597 }
0x2375   :  { %v1705_v32 = vpop.permute.xlu0 %1704 }
0x2376   :  { %v3394_v33 = vmul.f32 %v2598_v45, %v1705_v32 }
0x2378   :  { %v1708_v35 = vpack.c.bf16 %v3394_v33, %v3394_v33  ;;  %v1857_v37 = vmul.f32 %v1832_v1, %v3394_v33  ;;  %v1821_v14 = vmul.f32 %v1796_v59, %v3394_v33 }
0x237a   :  { %2265 = vmatmul.mubr.msk.bf16.vlgmr.msra.gmra.mrb[52].mxu0 %vm284_vm2, %v1708_v35  ;;  %v1858_v55 = vsel %vm284_vm2, %v1857_v37, 0.0  ;;  %v1822_v43 = vsel %vm284_vm2, %v1821_v14, 0.0 }
0x244d   :  { %v1746_v63 = vpop.f32.mrb[52].mxu0 }
0x244e   :  { %v1753_v49 = vadd.f32 %v1746_v63, %v1129_v36  ;;  %v1748_v2 = vpop.f32.mrb[53].mxu0  ;;  %v1841_v36 = vmul.f32 %v1832_v1, %v3313_v12  ;;  %v1837_v63 = vmul.f32 %v1832_v1, %v3270_v23 }
0x244f   :  { %v1754_v52 = vadd.f32 %v1748_v2, %v1131_v42  ;;  %v1750_v6 = vpop.f32.mrb[54].mxu0  ;;  %v1833_v2 = vmul.f32 %v1832_v1, %v3239_v40 }
0x2450   :  { %v1751_v4 = vpop.f32.mrb[55].mxu0  ;;  %v2266_v11 = vmul.f32 -1.442695, %v1753_v49  ;;  %v1842_v42 = vsel %vm284_vm2, %v1841_v36, 0.0  ;;  %v1838_v49 = vsel %vm284_vm2, %v1837_v63, 0.0 }
0x2451   :  { %2599 = vtanh.f32 %v1754_v52  ;;  %v2267_v24 = vmul.f32 -1.442695, %v1754_v52  ;;  %v1834_v52 = vsel %vm284_vm2, %v1833_v2, 0.0 }
0x2452   :  { %2601 = vpow2.f32 %v2266_v11 }
0x245b   :  { %v2600_v9 = vpop.eup %2599 }
0x245c   :  { %1770 = vrot.lane.b32.xlu1 %v2600_v9, %s2753_s2  ;;  %v2602_v21 = vpop.eup %2601 }
0x245d   :  { %v1761_v46 = vadd.f32 1.0, %v2602_v21 }
0x245f   :  { %2603 = vrcp.f32 %v1761_v46 }
0x2469   :  { %v2604_v34 = vpop.eup %2603 }
0x246a   :  { %v1768_v16 = vmul.f32 %v2604_v34, %v1701_v58 }
0x24ce   :  { %v1771_v17 = vpop.permute.xlu1 %1770 }
0x24cf   :  { %v1773_v26 = vmul.f32 %v2604_v34, %v1771_v17 }
0x24d1   :  { %1775 = vrot.lane.b32.xlu0 %v1773_v26, %s2753_s2 }
0x24f0   :  { %1799 = vadd.xlane.f32.xlu0 %v1798_v18 }
0x24f4   :  { %1859 = vadd.xlane.f32.xlu0 %v1858_v55 }
0x24f8   :  { %1855 = vadd.xlane.f32.xlu0 %v1854_v38 }
0x24fc   :  { %1851 = vadd.xlane.f32.xlu0 %v1850_v10 }
0x2500   :  { %1847 = vadd.xlane.f32.xlu0 %v1846_v20 }
0x2543   :  { %v1776_v41 = vpop.permute.xlu0 %1775 }
0x2544   :  { %v1778_v57 = vadd.f32 %v1776_v41, %v1768_v16 }
0x2546   :  { %2605 = vtanh.f32 %v1778_v57 }
0x2547   :  { %2607 = vpow2.f32 %v2267_v24 }
0x2550   :  { %v2606_v25 = vpop.eup %2605 }
0x2551   :  { %1781 = vrot.lane.b32.xlu1 %v2606_v25, %s2753_s2  ;;  %v2608_v19 = vpop.eup %2607 }
0x2552   :  { %v1762_v58 = vadd.f32 1.0, %v2608_v19 }
0x2554   :  { %2609 = vrcp.f32 %v1762_v58 }
0x255e   :  { %v2610_v13 = vpop.eup %2609 }
0x2575   :  { %1803 = vadd.xlane.f32.xlu1 %v1802_v27 }
0x2579   :  { %1807 = vadd.xlane.f32.xlu1 %v1806_v51 }
0x257d   :  { %1811 = vadd.xlane.f32.xlu1 %v1810_v8  ;;  %v1800_v6 = vpop.xlane.xlu0 %1799 }
0x2581   :  { %1815 = vadd.xlane.f32.xlu1 %v1814_v3  ;;  %v1860_v4 = vpop.xlane.xlu0 %1859 }
0x2585   :  { %1819 = vadd.xlane.f32.xlu1 %v1818_v44  ;;  %v1856_v11 = vpop.xlane.xlu0 %1855 }
0x2589   :  { %1823 = vadd.xlane.f32.xlu1 %v1822_v43  ;;  %v1852_v46 = vpop.xlane.xlu0 %1851 }
0x258d   :  { %v1848_v17 = vpop.xlane.xlu0 %1847 }
0x25c3   :  { %v1782_v30 = vpop.permute.xlu1 %1781 }
0x25c4   :  { %v3440_v39 = vmul.f32 %v2610_v13, %v1782_v30 }
0x25c6   :  { %v1861_v31 = vmul.f32 %v1832_v1, %v3440_v39  ;;  %v1825_v45 = vmul.f32 %v1796_v59, %v3440_v39 }
0x25c8   :  { %v1862_v32 = vsel %vm284_vm2, %v1861_v31, 0.0  ;;  %v1826_v35 = vsel %vm284_vm2, %v1825_v45, 0.0 }
0x25c9   :  { %1863 = vadd.xlane.f32.xlu0 %v1862_v32  ;;  %1827 = vadd.xlane.f32.xlu1 %v1826_v35 }
0x25cd   :  { %1843 = vadd.xlane.f32.xlu0 %v1842_v42 }
0x25d1   :  { %1839 = vadd.xlane.f32.xlu0 %v1838_v49 }
0x25d5   :  { %1835 = vadd.xlane.f32.xlu0 %v1834_v52 }
0x2602   :  { %v1804_v9 = vpop.xlane.xlu1 %1803 }
0x2603   :  { %v1873_v28 = vadd.f32 %v1860_v4, %v1804_v9 }
0x2605   :  { %v1874_v1 = vadd.f32 %v2268_v22, %v1873_v28 }
0x2606   :  { %v1808_v21 = vpop.xlane.xlu1 %1807 }
0x2607   :  { %v1875_v54 = vadd.f32 %v1856_v11, %v1808_v21 }
0x2609   :  { %v1876_v38 = vadd.f32 %v2268_v22, %v1875_v54 }
0x260a   :  { %v1812_v34 = vpop.xlane.xlu1 %1811 }
0x260b   :  { %v1877_v37 = vadd.f32 %v1852_v46, %v1812_v34 }
0x260d   :  { %v1878_v29 = vadd.f32 %v2268_v22, %v1877_v37 }
0x260e   :  { %v1816_v26 = vpop.xlane.xlu1 %1815 }
0x260f   :  { %v1879_v7 = vadd.f32 %v1848_v17, %v1816_v26 }
0x2611   :  { %v1880_v25 = vadd.f32 %v2268_v22, %v1879_v7 }
0x2612   :  { %v1820_v18 = vpop.xlane.xlu1 %1819 }
0x2616   :  { %v1824_v41 = vpop.xlane.xlu1 %1823 }
0x2656   :  { %v1864_v59 = vpop.xlane.xlu0 %1863  ;;  %v1828_v50 = vpop.xlane.xlu1 %1827 }
0x2657   :  { %v1865_v60 = vadd.f32 %v1864_v59, %v1800_v6 }
0x2659   :  { %v1872_v55 = vadd.f32 %v2268_v22, %v1865_v60 }
0x265a   :  { %v1844_v5 = vpop.xlane.xlu0 %1843 }
0x265b   :  { %v1887_v10 = vmax.f32 %v1872_v55, %v1874_v1  ;;  %v1881_v16 = vadd.f32 %v1844_v5, %v1820_v18 }
0x265d   :  { %v1888_v20 = vmax.f32 %v1887_v10, %v1876_v38  ;;  %v1882_v51 = vadd.f32 %v2268_v22, %v1881_v16  ;;  %v2000_v16 = vld [vmem:[%s3528_s9] sm:$0xff] }
0x265e   :  { %v1840_v57 = vpop.xlane.xlu0 %1839 }
0x265f   :  { %v1889_v47 = vmax.f32 %v1888_v20, %v1878_v29  ;;  %v1883_v27 = vadd.f32 %v1840_v57, %v1824_v41  ;;  %v2001_v41 = vld [vmem:[%s3528_s9 + $0x8] sm:$0xff]  ;;  %v2754_v57 = vmov 0.0|0.0  }
0x2660   :  { %2317 = vmatprep.subr.bf16.mxu1 %v2754_v57  ;;  %2329 = vmatprep.subr.bf16.mxu0 %v2754_v57 }
0x2661   :  { %v1890_v53 = vmax.f32 %v1889_v47, %v1880_v25  ;;  %v1884_v3 = vadd.f32 %v2268_v22, %v1883_v27  ;;  %v2002_v27 = vld [vmem:[%s3528_s9 + $0x10] sm:$0xff] }
0x2662   :  { %v1836_v8 = vpop.xlane.xlu0 %1835 }
0x2663   :  { %v1891_v48 = vmax.f32 %v1890_v53, %v1882_v51  ;;  %v1885_v62 = vadd.f32 %v1836_v8, %v1828_v50  ;;  %v2003_v53 = vld [vmem:[%s3528_s9 + $0x18] sm:$0xff]  ;;  %v2004_v50 = vld [vmem:[%s3528_s9 + $0x20] sm:$0xff]  ;;  %v2005_v8 = vld [vmem:[%s3528_s9 + $0x28] sm:$0xff] }
0x2665   :  { %v1892_v44 = vmax.f32 %v1891_v48, %v1884_v3  ;;  %v1886_v14 = vadd.f32 %v2268_v22, %v1885_v62  ;;  %v2324_v48 = vpack.c.bf16 %v2005_v8, %v2004_v50  ;;  %v2007_v62 = vld [vmem:[%s3528_s9 + $0x38] sm:$0xff] }
0x2667   :  { %v1893_v43 = vmax.f32 %v1892_v44, %v1886_v14 }
0x2669   :  { %v1894_v24 = vsub.f32 %v1872_v55, %v1893_v43  ;;  %v1897_v19 = vsub.f32 %v1874_v1, %v1893_v43  ;;  %v1900_v58 = vsub.f32 %v1876_v38, %v1893_v43  ;;  %v1903_v13 = vsub.f32 %v1878_v29, %v1893_v43 }
0x266a   :  { %v1906_v32 = vsub.f32 %v1880_v25, %v1893_v43  ;;  %v1909_v36 = vsub.f32 %v1882_v51, %v1893_v43  ;;  %v1912_v63 = vsub.f32 %v1884_v3, %v1893_v43  ;;  %v1915_v2 = vsub.f32 %v1886_v14, %v1893_v43  ;;  %v2006_v3 = vld [vmem:[%s3528_s9 + $0x30] sm:$0xff]  ;;  %v2089_v43 = vld [vmem:[%s3530_s11] sm:$0xff] }
0x266b   :  { %v1895_v30 = vmul.f32 1.442695, %v1894_v24  ;;  %v1898_v31 = vmul.f32 1.442695, %v1897_v19  ;;  %v1901_v45 = vmul.f32 1.442695, %v1900_v58  ;;  %v2318_v25 = vpack.c.bf16 %v2001_v41, %v2000_v16 }
0x266c   :  { %v1904_v35 = vmul.f32 1.442695, %v1903_v13  ;;  %v1907_v42 = vmul.f32 1.442695, %v1906_v32  ;;  %v1910_v49 = vmul.f32 1.442695, %v1909_v36  ;;  %v2321_v51 = vpack.c.bf16 %v2003_v53, %v2002_v27 }
0x266d   :  { %2611 = vpow2.f32 %v1895_v30  ;;  %v1913_v52 = vmul.f32 1.442695, %v1912_v63  ;;  %v1916_v6 = vmul.f32 1.442695, %v1915_v2  ;;  %2319 = vmatpush3.bf16.msra.mxu1 %v2318_v25  ;;  %v2327_v44 = vpack.c.bf16 %v2007_v62, %v2006_v3  ;;  %v2090_v24 = vld [vmem:[%s3530_s11 + $0x8] sm:$0xff] }
0x266e   :  { %2613 = vpow2.f32 %v1898_v31  ;;  %2320 = vmatprep.subr.bf16.mxu1 %v2754_v57  ;;  %v2756_v14 = vmov 0.0   ;;  %v2330_v19 = vpack.c.bf16 %v2090_v24, %v2089_v43 }
0x266f   :  { %2615 = vpow2.f32 %v1901_v45  ;;  %2303 = vmatprep.mubr.msk.f32.mxu1 %vm2755_vm5, %v2756_v14  ;;  %2314 = vmatprep.mubr.msk.f32.mxu0 %vm2755_vm5, %v2756_v14 }
0x2670   :  { %2617 = vpow2.f32 %v1904_v35  ;;  %2331 = vmatpush3.bf16.msra.mxu0 %v2330_v19 }
0x2671   :  { %2619 = vpow2.f32 %v1907_v42  ;;  %2322 = vmatpush3.bf16.msra.mxu1 %v2321_v51  ;;  %2332 = vmatprep.subr.bf16.mxu0 %v2754_v57 }
0x2672   :  { %2621 = vpow2.f32 %v1910_v49  ;;  %2323 = vmatprep.subr.bf16.mxu1 %v2754_v57 }
0x2673   :  { %2623 = vpow2.f32 %v1913_v52 }
0x2674   :  { %2625 = vpow2.f32 %v1916_v6 }
0x2675   :  { %2325 = vmatpush3.bf16.msra.mxu1 %v2324_v48 }
0x2676   :  { %2326 = vmatprep.subr.bf16.mxu1 %v2754_v57 }
0x2677   :  { %v2612_v4 = vpop.eup %2611 }
0x2678   :  { %v2614_v9 = vpop.eup %2613 }
0x2679   :  { %v1918_v11 = vadd.f32 %v2614_v9, %v2612_v4  ;;  %v2616_v21 = vpop.eup %2615  ;;  %2328 = vmatpush3.bf16.msra.mxu1 %v2327_v44 }
0x267a   :  { %v2618_v34 = vpop.eup %2617 }
0x267b   :  { %v1919_v46 = vadd.f32 %v2616_v21, %v1918_v11  ;;  %v2620_v26 = vpop.eup %2619 }
0x267c   :  { %v2622_v22 = vpop.eup %2621 }
0x267d   :  { %v1920_v17 = vadd.f32 %v2618_v34, %v1919_v46  ;;  %v2624_v54 = vpop.eup %2623 }
0x267e   :  { %v2626_v18 = vpop.eup %2625 }
0x267f   :  { %v1921_v28 = vadd.f32 %v2620_v26, %v1920_v17 }
0x2681   :  { %v1922_v59 = vadd.f32 %v2622_v22, %v1921_v28 }
0x2683   :  { %v1923_v60 = vadd.f32 %v2624_v54, %v1922_v59 }
0x2685   :  { %v1924_v1 = vadd.f32 %v2626_v18, %v1923_v60 }
0x2687   :  { %2627 = vrcp.f32 %v1924_v1 }
0x2691   :  { %v2628_v37 = vpop.eup %2627 }
0x2692   :  { %v1933_v55 = vmul.f32 %v2628_v37, %v2626_v18  ;;  %v1926_v5 = vmul.f32 %v2628_v37, %v2612_v4  ;;  %v1932_v38 = vmul.f32 %v2628_v37, %v2624_v54  ;;  %v1927_v7 = vmul.f32 %v2628_v37, %v2614_v9 }
0x2693   :  { %v1931_v10 = vmul.f32 %v2628_v37, %v2622_v22  ;;  %v1928_v29 = vmul.f32 %v2628_v37, %v2616_v21  ;;  %v1930_v20 = vmul.f32 %v2628_v37, %v2620_v26  ;;  %v1929_v47 = vmul.f32 %v2628_v37, %v2618_v34 }
0x2694   :  { %1938 = vperm.xlu1 %2367, %v1933_v55   ;;  %1943 = vperm.xlu0 %2368, %v1926_v5   ;;  %v2271_v55 = vld [vmem:[#allocation3] ss:$0 sm:$0xff] }
0x2698   :  { %1951 = vperm.xlu1 %2367, %v1932_v38  }
0x269c   :  { %1956 = vperm.xlu1 %2367, %v1927_v7  }
0x26a0   :  { %1964 = vperm.xlu1 %2367, %v1931_v10  }
0x26a4   :  { %1969 = vperm.xlu1 %2367, %v1928_v29  }
0x26a8   :  { %1977 = vperm.xlu1 %2367, %v1930_v20  }
0x26ac   :  { %1982 = vperm.xlu1 %2367, %v1929_v47  }
0x2713   :  { %v1939_v58 = vpop.permute.xlu1 %1938  ;;  %v1944_v45 = vpop.permute.xlu0 %1943 }
0x2714   :  { %v1946_v36 = vsel %vm1791_vm4, %v1939_v58, %v1944_v45  ;;  %v1997_v28 = vsel %vm1791_vm4, %v1944_v45, %v1939_v58 }
0x2715   :  { %v1947_v2 = vmul.f32 %v1946_v36, %v3239_v40 }
0x2717   :  { %v1952_v13 = vpop.permute.xlu1 %1951 }
0x271b   :  { %v1957_v30 = vpop.permute.xlu1 %1956 }
0x271c   :  { %v1959_v35 = vsel %vm1791_vm4, %v1952_v13, %v1957_v30  ;;  %v1994_v40 = vsel %vm1791_vm4, %v1957_v30, %v1952_v13 }
0x271d   :  { %v1960_v63 = vmul.f32 %v1959_v35, %v3270_v23  ;;  %v1995_v22 = vmul.f32 %v1994_v40, %v3394_v33  ;;  %v2269_v33 = vld [vmem:[%s3529_s10] ss:$0 sm:$0xff] }
0x271f   :  { %v1965_v31 = vpop.permute.xlu1 %1964  ;;  %v1961_v6 = vadd.f32 %v1960_v63, %v1947_v2 }
0x2723   :  { %v1970_v32 = vpop.permute.xlu1 %1969 }
0x2724   :  { %v1972_v42 = vsel %vm1791_vm4, %v1965_v31, %v1970_v32  ;;  %v1991_v34 = vsel %vm1791_vm4, %v1970_v32, %v1965_v31 }
0x2725   :  { %v1973_v52 = vmul.f32 %v1972_v42, %v3313_v12  ;;  %v1992_v12 = vmul.f32 %v1991_v34, %v3382_v0  ;;  %v2092_v0 = vld [vmem:[%s3530_s11 + $0x18] sm:$0xff] }
0x2727   :  { %v1978_v49 = vpop.permute.xlu1 %1977  ;;  %v1974_v21 = vadd.f32 %v1973_v52, %v1961_v6 }
0x272b   :  { %v1983_v4 = vpop.permute.xlu1 %1982 }
0x272c   :  { %v1985_v9 = vsel %vm1791_vm4, %v1978_v49, %v1983_v4  ;;  %v1988_v11 = vsel %vm1791_vm4, %v1983_v4, %v1978_v49 }
0x272d   :  { %v1986_v46 = vmul.f32 %v1985_v9, %v3342_v15  ;;  %v1989_v17 = vmul.f32 %v1988_v11, %v3362_v61  ;;  %v1998_v15 = vmul.f32 %v1997_v28, %v3440_v39  ;;  %v2091_v61 = vld [vmem:[%s3530_s11 + $0x10] sm:$0xff] }
0x272e   :  { %v2333_v18 = vpack.c.bf16 %v2092_v0, %v2091_v61 }
0x272f   :  { %v1987_v23 = vadd.f32 %v1986_v46, %v1974_v21 }
0x2730   :  { %2334 = vmatpush3.bf16.msra.mxu0 %v2333_v18 }
0x2731   :  { %v1990_v26 = vadd.f32 %v1989_v17, %v1987_v23 }
0x2733   :  { %v1993_v59 = vadd.f32 %v1992_v12, %v1990_v26 }
0x2735   :  { %v1996_v54 = vadd.f32 %v1995_v22, %v1993_v59 }
0x2737   :  { %v1999_v60 = vadd.f32 %v1998_v15, %v1996_v54 }
0x2739   :  { %2304 = vmatmul.mubr.msk.f32.vlgmr.msra.gmra.mrb[40].mxu1 %vm284_vm2, %v1999_v60 }
0x280c   :  { %v2084_v56 = vpop.f32.mrb[40].mxu1 }
0x280d   :  { %v2085_v39 = vadd.f32 %v2269_v33, %v2084_v56  ;;  %v2305_v1 = vpop.f32.mrb[41].mxu1 }
0x280f   :  { %v2088_v37 = vmax.f32 %v2085_v39, 0.0 }
0x2811   :  { %2315 = vmatmul.mubr.msk.f32.vlgmr.msra.gmra.mrb[56].mxu0 %vm2100_vm6, %v2088_v37 }
0x28e4   :  { %v2170_v5 = vpop.f32.mrb[56].mxu0 }
0x28e5   :  { %v2171_v38 = vadd.f32 %v2271_v55, %v2170_v5  ;;  %v2316_v7 = vpop.f32.mrb[57].mxu0 }
0x28e7   :  { %2175 = vst.msk [vmem:[%s3531_s13] sm:$0xff] %vm2174_vm7, %v2171_v38 }
0x28e8   :  { %2180 = vsyncpa [#allocation5], 1 }
0x28e9   :  { %2181 = vsyncpa [#allocation7], 1 }
0x28ea   :  { %2182 = vsyncpa [#allocation10], 1 }

</bundles_post_ra>
